<compile_context>
chip_gen: v6e
topology: v6e:2x2x1
jax: 0.10.0
libtpu: 0.0.40
codegen_flags: <defaults>
</compile_context>

<pallas_src>
import functools
import math

import jax
import jax.numpy as jnp
from jax import lax
from jax.experimental import pallas as pl
from jax.experimental.pallas import tpu as pltpu


def _vssm_kernel(x_ref, wdelta_ref, wbc_ref, dtb_ref, a_ref, dsk_ref, o_ref,
                 d0_scr, d1_scr, bc0_scr, bc1_scr, y0_scr, y1_scr, *, L, N):
    """One (batch, layout) grid step: forward + backward selective scans of one
    spatial layout, summed contribution written to o_ref.

    Block shapes (batch & layout dims squeezed by the BlockSpecs), dir in {fwd,bwd}:
      x_ref      : (L, D)  f32   activation in this layout's sequence order
      wdelta_ref : (2, D, D)   bf16  folded (x_proj[:R] o dt_proj)^T per dir
      wbc_ref    : (2, D, 2N)  bf16  x_proj[R:]^T (B,C columns) per dir
      dtb_ref    : (2, 1, D)  f32   dt bias per dir
      a_ref      : (2, N, D)  f32   A = -exp(A_log) per dir
      dsk_ref    : (2, 1, D)  f32   skip coefficient D per dir
      o_ref      : (L, D)  f32
    """
    D = x_ref.shape[1]
    x = x_ref[...]                                    # (L, D) f32
    xb = x.astype(jnp.bfloat16)

    # ---- pointwise projections for both scan directions (bf16 MXU, f32 acc) ----
    d_scr = (d0_scr, d1_scr)
    bc_scr = (bc0_scr, bc1_scr)
    for j in range(2):
        dt = jnp.dot(xb, wdelta_ref[j], preferred_element_type=jnp.float32)   # (L, D)
        d_scr[j][...] = jax.nn.softplus(dt + dtb_ref[j])                      # delta
        bc_scr[j][...] = jnp.dot(xb, wbc_ref[j],
                                 preferred_element_type=jnp.float32)          # (L, 2N)

    a_rows = [[a_ref[j][n:n + 1, :] for n in range(N)] for j in range(2)]     # (1, D)

    # ---- two interleaved sequential recurrences (fwd at l, bwd at L-1-l) --------
    def step(l, carry):
        hs = list(carry)                              # 2*N states, each (1, D) f32
        for j in range(2):
            idx = l if j == 0 else L - 1 - l
            u = x_ref[pl.ds(idx, 1), :]               # (1, D)
            dl = d_scr[j][pl.ds(idx, 1), :]           # (1, D)
            bc = bc_scr[j][pl.ds(idx, 1), :]          # (1, 2N)
            du = dl * u
            yrow = jnp.zeros_like(u)
            for n in range(N):
                k = j * N + n
                h = jnp.exp(dl * a_rows[j][n]) * hs[k] + du * bc[:, n:n + 1]
                hs[k] = h
                yrow = yrow + bc[:, N + n:N + n + 1] * h
            if j == 0:
                y0_scr[pl.ds(idx, 1), :] = yrow
            else:
                y1_scr[pl.ds(idx, 1), :] = yrow
        return tuple(hs)

    init = tuple(jnp.zeros((1, D), jnp.float32) for _ in range(2 * N))
    lax.fori_loop(0, L, step, init)

    # Skip term D*u is direction-independent -> vectorized outside the scan loop.
    skip = (dsk_ref[0] + dsk_ref[1]) * x
    o_ref[...] = (y0_scr[...] + y1_scr[...] + skip).astype(o_ref.dtype)


def vssm_pallas(x, x_proj_weight, dt_projs_weight, dt_projs_bias, A_logs, Ds,
                *, d_state):
    """VSSM forward (expansion_ratio=1, ssm_split=False).

    Args (PyTorch parameter layouts, trailing singleton conv dims squeezed):
      x               : (B, D, H, W) f32
      x_proj_weight   : (K*(R+2N), D) f32
      dt_projs_weight : (K, D, R) f32
      dt_projs_bias   : (K, D) f32
      A_logs          : (K*D, N) f32
      Ds              : (K*D,) f32
    Returns y : (B, D, H*W) f32 (same as the module's forward).
    """
    B, D, H, W = x.shape
    K = 4
    N = d_state
    R = dt_projs_weight.shape[-1]
    R2N = R + 2 * N
    L = H * W

    # direction k = layout s (0: row-major, 1: col-major) + 2 * dir j (0 fwd, 1 bwd)
    grp = jnp.array([[0, 2], [1, 3]], dtype=jnp.int32)

    # sequence-major activations for both layouts: (B, 2, L, D)
    x_rm = jnp.transpose(x, (0, 2, 3, 1)).reshape(B, L, D)       # p = h*W + w
    x_cm = jnp.transpose(x, (0, 3, 2, 1)).reshape(B, L, D)       # p = w*H + h
    xs2 = jnp.stack([x_rm, x_cm], axis=1)

    # Weight preprocessing (done once, in f32): fold dt_proj o x_proj[:R] into a
    # single (Din -> D) projection, reorder to [layout, dir, ...], pre-cast to bf16.
    Wx = x_proj_weight.reshape(K, R2N, D)                        # group k: (R2N, D)
    Wdelta = jnp.einsum("kdr,krc->kdc", dt_projs_weight, Wx[:, :R, :])   # (K, D, D)
    wdelta_t = jnp.transpose(Wdelta, (0, 2, 1))[grp].astype(jnp.bfloat16)   # (2,2,D,D)
    wbc_t = jnp.transpose(Wx[:, R:, :], (0, 2, 1))[grp].astype(jnp.bfloat16)  # (2,2,D,2N)
    dtb = dt_projs_bias[grp][:, :, None, :].astype(jnp.float32)             # (2,2,1,D)
    a_neg = jnp.transpose((-jnp.exp(A_logs)).reshape(K, D, N), (0, 2, 1))[grp]  # (2,2,N,D)
    dsk = Ds.reshape(K, D)[grp][:, :, None, :].astype(jnp.float32)          # (2,2,1,D)

    kernel = functools.partial(_vssm_kernel, L=L, N=N)

    matmul_flops = 2 * B * 2 * 2 * (L * D * D + L * D * 2 * N)
    scan_flops = B * 2 * 2 * L * N * 8 * D
    cost = pl.CostEstimate(
        flops=int(matmul_flops + scan_flops),
        transcendentals=int(B * 2 * 2 * L * D * (1 + N)),
        bytes_accessed=int(4 * 2 * xs2.size + 2 * (wdelta_t.size + wbc_t.size)
                           + 4 * (dtb.size + a_neg.size + dsk.size)))

    grid_spec = pltpu.PrefetchScalarGridSpec(
        num_scalar_prefetch=0,
        grid=(B, 2),
        in_specs=[
            pl.BlockSpec((None, None, L, D), lambda b, s: (b, s, 0, 0)),
            pl.BlockSpec((None, 2, D, D), lambda b, s: (s, 0, 0, 0)),
            pl.BlockSpec((None, 2, D, 2 * N), lambda b, s: (s, 0, 0, 0)),
            pl.BlockSpec((None, 2, 1, D), lambda b, s: (s, 0, 0, 0)),
            pl.BlockSpec((None, 2, N, D), lambda b, s: (s, 0, 0, 0)),
            pl.BlockSpec((None, 2, 1, D), lambda b, s: (s, 0, 0, 0)),
        ],
        out_specs=pl.BlockSpec((None, None, L, D), lambda b, s: (b, s, 0, 0)),
        scratch_shapes=[
            pltpu.VMEM((L, D), jnp.float32),        # delta, fwd
            pltpu.VMEM((L, D), jnp.float32),        # delta, bwd
            pltpu.VMEM((L, 2 * N), jnp.float32),    # (B, C) columns, fwd
            pltpu.VMEM((L, 2 * N), jnp.float32),    # (B, C) columns, bwd
            pltpu.VMEM((L, D), jnp.float32),        # y, fwd
            pltpu.VMEM((L, D), jnp.float32),        # y, bwd
        ],
    )

    ys2 = pl.pallas_call(
        kernel,
        out_shape=jax.ShapeDtypeStruct((B, 2, L, D), jnp.float32),
        grid_spec=grid_spec,
        compiler_params=pltpu.CompilerParams(
            dimension_semantics=("parallel", "parallel"),
            vmem_limit_bytes=32 * 1024 * 1024),
        cost_estimate=cost,
    )(xs2, wdelta_t, wbc_t, dtb, a_neg, dsk)

    # cross-merge: map the col-major contribution back to row-major and sum.
    y_rm = ys2[:, 0]                                                    # (B, L, D)
    y_cm = ys2[:, 1].reshape(B, W, H, D).transpose(0, 2, 1, 3).reshape(B, L, D)
    return jnp.transpose(y_rm + y_cm, (0, 2, 1))                        # (B, D, L)


def vssm_reference(x, x_proj_weight, dt_projs_weight, dt_projs_bias, A_logs, Ds,
                   *, d_state):
    """Pure-JAX f32 reference mirroring the PyTorch VSSM.forward semantics."""
    B, D, H, W = x.shape
    K = 4
    N = d_state
    R = dt_projs_weight.shape[-1]
    L = H * W
    hp = lax.Precision.HIGHEST

    xf = x.reshape(B, D, L)
    xt = jnp.transpose(x, (0, 1, 3, 2)).reshape(B, D, L)
    xs = jnp.stack([xf, xt, jnp.flip(xf, -1), jnp.flip(xt, -1)], axis=1)   # (B,K,D,L)

    Wx = x_proj_weight.reshape(K, R + 2 * N, D)
    x_dbl = jnp.einsum("bkdl,krd->bkrl", xs, Wx, precision=hp)
    dts, Bs, Cs = x_dbl[:, :, :R], x_dbl[:, :, R:R + N], x_dbl[:, :, R + N:]
    dts = jnp.einsum("bkrl,kdr->bkdl", dts, dt_projs_weight, precision=hp)
    delta = jax.nn.softplus(dts + dt_projs_bias[None, :, :, None])
    A = (-jnp.exp(A_logs)).reshape(K, D, N)
    Dsk = Ds.reshape(K, D)

    def scan_one(u, dl, Ak, Bk, Ck):
        dA = jnp.exp(dl[:, :, None, :] * Ak[None, :, :, None])             # (B,D,N,L)
        dBu = (dl * u)[:, :, None, :] * Bk[:, None, :, :]                  # (B,D,N,L)

        def body(h, t):
            dA_t, dBu_t, C_t = t
            h = dA_t * h + dBu_t                                           # (B,D,N)
            return h, jnp.sum(h * C_t[:, None, :], axis=-1)                # (B,D)

        ts = (jnp.moveaxis(dA, -1, 0), jnp.moveaxis(dBu, -1, 0),
              jnp.moveaxis(Ck, -1, 0))
        _, ys = lax.scan(body, jnp.zeros((u.shape[0], u.shape[1], Ak.shape[1]),
                                         jnp.float32), ts)
        return jnp.moveaxis(ys, 0, -1)                                     # (B,D,L)

    ys = []
    for k in range(K):
        yk = scan_one(xs[:, k], delta[:, k], A[k], Bs[:, k], Cs[:, k])
        ys.append(yk + Dsk[k][None, :, None] * xs[:, k])
    ys = jnp.stack(ys, axis=1)                                             # (B,K,D,L)

    y_rm = ys[:, 0] + jnp.flip(ys[:, 2], -1)
    y_cm = ys[:, 1] + jnp.flip(ys[:, 3], -1)
    y_cm = y_cm.reshape(B, D, W, H).transpose(0, 1, 3, 2).reshape(B, D, L)
    return y_rm + y_cm


if __name__ == "__main__":
    # Small shapes consistent with the module defaults (d_state=1, dt_rank='auto').
    B, d_model, H, W = 2, 32, 16, 16
    d_state = 1
    K = 4
    R = math.ceil(d_model / 16)                   # dt_rank = 2

    keys = jax.random.split(jax.random.PRNGKey(0), 5)
    x = jax.random.normal(keys[0], (B, d_model, H, W), jnp.float32)
    x_proj_weight = 0.1 * jax.random.normal(
        keys[1], (K * (R + 2 * d_state), d_model), jnp.float32)
    dt_projs_weight = 0.3 * jax.random.normal(keys[2], (K, d_model, R), jnp.float32)
    dt = jnp.exp(jax.random.uniform(keys[3], (K, d_model), jnp.float32,
                                    minval=math.log(0.01), maxval=math.log(0.1)))
    dt_projs_bias = dt + jnp.log(-jnp.expm1(-dt))            # inverse softplus
    A_logs = jnp.zeros((K * d_model, d_state), jnp.float32)  # A = 1 for d_state=1
    Ds = jnp.ones((K * d_model,), jnp.float32)

    out = jax.block_until_ready(
        vssm_pallas(x, x_proj_weight, dt_projs_weight, dt_projs_bias, A_logs, Ds,
                    d_state=d_state))
    ref = jax.block_until_ready(
        vssm_reference(x, x_proj_weight, dt_projs_weight, dt_projs_bias, A_logs, Ds,
                       d_state=d_state))

    assert out.shape == (B, d_model, H * W)
    max_err = float(jnp.max(jnp.abs(out - ref)))
    # bf16 MXU operands (f32 accumulation & f32 recurrence) vs an exact-f32 reference.
    assert jnp.allclose(out, ref, atol=8e-2, rtol=8e-2), f"max_err={max_err}"

    print("KERNEL_OK")
</pallas_src>

<mosaic_0001>
module attributes {stable_mosaic.version = 11 : i64} {
  func.func @_vssm_kernel(%arg0: i32, %arg1: i32, %arg2: memref<1x1x256x32xf32, #tpu.memory_space<vmem>>, %arg3: memref<1x2x32x32xbf16, #tpu.memory_space<vmem>>, %arg4: memref<1x2x32x2xbf16, #tpu.memory_space<vmem>>, %arg5: memref<1x2x1x32xf32, #tpu.memory_space<vmem>>, %arg6: memref<1x2x1x32xf32, #tpu.memory_space<vmem>>, %arg7: memref<1x2x1x32xf32, #tpu.memory_space<vmem>>, %arg8: memref<1x1x256x32xf32, #tpu.memory_space<vmem>>, %arg9: memref<256x32xf32, #tpu.memory_space<vmem>>, %arg10: memref<256x32xf32, #tpu.memory_space<vmem>>, %arg11: memref<256x2xf32, #tpu.memory_space<vmem>>, %arg12: memref<256x2xf32, #tpu.memory_space<vmem>>, %arg13: memref<256x32xf32, #tpu.memory_space<vmem>>, %arg14: memref<256x32xf32, #tpu.memory_space<vmem>>) attributes {dimension_semantics = [#tpu.dimension_semantics<parallel>, #tpu.dimension_semantics<parallel>], iteration_bounds = array<i64: 2, 2>, scalar_prefetch = 0 : i64, scratch_operands = 6 : i64, tpu.core_type = #tpu.core_type<tc>, window_params = [{transform_indices = @transform_0, window_bounds = array<i64: 1, 1, 256, 32>}, {transform_indices = @transform_1, window_bounds = array<i64: 1, 2, 32, 32>}, {transform_indices = @transform_2, window_bounds = array<i64: 1, 2, 32, 2>}, {transform_indices = @transform_3, window_bounds = array<i64: 1, 2, 1, 32>}, {transform_indices = @transform_4, window_bounds = array<i64: 1, 2, 1, 32>}, {transform_indices = @transform_5, window_bounds = array<i64: 1, 2, 1, 32>}, {transform_indices = @transform_6, window_bounds = array<i64: 1, 1, 256, 32>}]} {
    %c0 = arith.constant 0 : index
    %c0_0 = arith.constant 0 : index
    %c0_1 = arith.constant 0 : index
    %c0_2 = arith.constant 0 : index
    %0 = vector.load %arg2[%c0, %c0_0, %c0_1, %c0_2] : memref<1x1x256x32xf32, #tpu.memory_space<vmem>>, vector<1x1x256x32xf32>
    %1 = vector.shape_cast %0 : vector<1x1x256x32xf32> to vector<256x32xf32>
    %2 = arith.truncf %1 : vector<256x32xf32> to vector<256x32xbf16>
    %c0_3 = arith.constant 0 : index
    %c0_4 = arith.constant 0 : index
    %c0_5 = arith.constant 0 : index
    %c0_6 = arith.constant 0 : index
    %3 = vector.load %arg3[%c0_3, %c0_4, %c0_5, %c0_6] : memref<1x2x32x32xbf16, #tpu.memory_space<vmem>>, vector<1x1x32x32xbf16>
    %4 = vector.shape_cast %3 : vector<1x1x32x32xbf16> to vector<32x32xbf16>
    %cst = arith.constant dense<0.000000e+00> : vector<256x32xf32>
    %5 = tpu.matmul %2, %4, %cst {dimension_numbers = #tpu.dot_dimension_numbers<[1], [0], [0], [1], [0, 0, 1, 1], [], []>} : vector<256x32xbf16>, vector<32x32xbf16>, vector<256x32xf32> -> vector<256x32xf32>
    %c0_7 = arith.constant 0 : index
    %c0_8 = arith.constant 0 : index
    %c0_9 = arith.constant 0 : index
    %c0_10 = arith.constant 0 : index
    %6 = vector.load %arg5[%c0_7, %c0_8, %c0_9, %c0_10] : memref<1x2x1x32xf32, #tpu.memory_space<vmem>>, vector<1x1x1x32xf32>
    %7 = vector.shape_cast %6 : vector<1x1x1x32xf32> to vector<1x32xf32>
    %8 = vector.broadcast %7 : vector<1x32xf32> to vector<256x32xf32>
    %9 = arith.addf %5, %8 : vector<256x32xf32>
    %cst_11 = arith.constant 0.000000e+00 : f32
    %10 = vector.broadcast %cst_11 : f32 to vector<256x32xf32>
    %11 = arith.maximumf %9, %10 : vector<256x32xf32>
    %12 = vector.broadcast %cst_11 : f32 to vector<256x32xf32>
    %13 = arith.subf %9, %12 : vector<256x32xf32>
    %14 = arith.cmpf one, %13, %13 : vector<256x32xf32>
    %15 = vector.broadcast %cst_11 : f32 to vector<256x32xf32>
    %16 = arith.addf %9, %15 : vector<256x32xf32>
    %17 = math.absf %13 : vector<256x32xf32>
    %cst_12 = arith.constant 0.000000e+00 : f32
    %18 = vector.broadcast %cst_12 : f32 to vector<256x32xf32>
    %19 = arith.subf %18, %17 : vector<256x32xf32>
    %20 = math.exp %19 : vector<256x32xf32>
    %21 = math.log1p %20 : vector<256x32xf32>
    %22 = arith.addf %11, %21 : vector<256x32xf32>
    %23 = arith.select %14, %16, %22 : vector<256x32xi1>, vector<256x32xf32>
    %c0_13 = arith.constant 0 : index
    %c0_14 = arith.constant 0 : index
    %24 = vector.load %arg9[%c0_13, %c0_14] : memref<256x32xf32, #tpu.memory_space<vmem>>, vector<256x32xf32>
    tpu.vector_store %arg9[%c0_13, %c0_14], %23 {strides = array<i32>} : memref<256x32xf32, #tpu.memory_space<vmem>>, vector<256x32xf32>,
    %c0_15 = arith.constant 0 : index
    %c0_16 = arith.constant 0 : index
    %c0_17 = arith.constant 0 : index
    %c0_18 = arith.constant 0 : index
    %25 = vector.load %arg4[%c0_15, %c0_16, %c0_17, %c0_18] : memref<1x2x32x2xbf16, #tpu.memory_space<vmem>>, vector<1x1x32x2xbf16>
    %26 = vector.shape_cast %25 : vector<1x1x32x2xbf16> to vector<32x2xbf16>
    %cst_19 = arith.constant dense<0.000000e+00> : vector<256x2xf32>
    %27 = tpu.matmul %2, %26, %cst_19 {dimension_numbers = #tpu.dot_dimension_numbers<[1], [0], [0], [1], [0, 0, 1, 1], [], []>} : vector<256x32xbf16>, vector<32x2xbf16>, vector<256x2xf32> -> vector<256x2xf32>
    %c0_20 = arith.constant 0 : index
    %c0_21 = arith.constant 0 : index
    %28 = vector.load %arg11[%c0_20, %c0_21] : memref<256x2xf32, #tpu.memory_space<vmem>>, vector<256x2xf32>
    tpu.vector_store %arg11[%c0_20, %c0_21], %27 {strides = array<i32>} : memref<256x2xf32, #tpu.memory_space<vmem>>, vector<256x2xf32>,
    %c0_22 = arith.constant 0 : index
    %c1 = arith.constant 1 : index
    %c0_23 = arith.constant 0 : index
    %c0_24 = arith.constant 0 : index
    %29 = vector.load %arg3[%c0_22, %c1, %c0_23, %c0_24] : memref<1x2x32x32xbf16, #tpu.memory_space<vmem>>, vector<1x1x32x32xbf16>
    %30 = vector.shape_cast %29 : vector<1x1x32x32xbf16> to vector<32x32xbf16>
    %cst_25 = arith.constant dense<0.000000e+00> : vector<256x32xf32>
    %31 = tpu.matmul %2, %30, %cst_25 {dimension_numbers = #tpu.dot_dimension_numbers<[1], [0], [0], [1], [0, 0, 1, 1], [], []>} : vector<256x32xbf16>, vector<32x32xbf16>, vector<256x32xf32> -> vector<256x32xf32>
    %c0_26 = arith.constant 0 : index
    %c1_27 = arith.constant 1 : index
    %c0_28 = arith.constant 0 : index
    %c0_29 = arith.constant 0 : index
    %32 = vector.load %arg5[%c0_26, %c1_27, %c0_28, %c0_29] : memref<1x2x1x32xf32, #tpu.memory_space<vmem>>, vector<1x1x1x32xf32>
    %33 = vector.shape_cast %32 : vector<1x1x1x32xf32> to vector<1x32xf32>
    %34 = vector.broadcast %33 : vector<1x32xf32> to vector<256x32xf32>
    %35 = arith.addf %31, %34 : vector<256x32xf32>
    %cst_30 = arith.constant 0.000000e+00 : f32
    %36 = vector.broadcast %cst_30 : f32 to vector<256x32xf32>
    %37 = arith.maximumf %35, %36 : vector<256x32xf32>
    %38 = vector.broadcast %cst_30 : f32 to vector<256x32xf32>
    %39 = arith.subf %35, %38 : vector<256x32xf32>
    %40 = arith.cmpf one, %39, %39 : vector<256x32xf32>
    %41 = vector.broadcast %cst_30 : f32 to vector<256x32xf32>
    %42 = arith.addf %35, %41 : vector<256x32xf32>
    %43 = math.absf %39 : vector<256x32xf32>
    %cst_31 = arith.constant 0.000000e+00 : f32
    %44 = vector.broadcast %cst_31 : f32 to vector<256x32xf32>
    %45 = arith.subf %44, %43 : vector<256x32xf32>
    %46 = math.exp %45 : vector<256x32xf32>
    %47 = math.log1p %46 : vector<256x32xf32>
    %48 = arith.addf %37, %47 : vector<256x32xf32>
    %49 = arith.select %40, %42, %48 : vector<256x32xi1>, vector<256x32xf32>
    %c0_32 = arith.constant 0 : index
    %c0_33 = arith.constant 0 : index
    %50 = vector.load %arg10[%c0_32, %c0_33] : memref<256x32xf32, #tpu.memory_space<vmem>>, vector<256x32xf32>
    tpu.vector_store %arg10[%c0_32, %c0_33], %49 {strides = array<i32>} : memref<256x32xf32, #tpu.memory_space<vmem>>, vector<256x32xf32>,
    %c0_34 = arith.constant 0 : index
    %c1_35 = arith.constant 1 : index
    %c0_36 = arith.constant 0 : index
    %c0_37 = arith.constant 0 : index
    %51 = vector.load %arg4[%c0_34, %c1_35, %c0_36, %c0_37] : memref<1x2x32x2xbf16, #tpu.memory_space<vmem>>, vector<1x1x32x2xbf16>
    %52 = vector.shape_cast %51 : vector<1x1x32x2xbf16> to vector<32x2xbf16>
    %cst_38 = arith.constant dense<0.000000e+00> : vector<256x2xf32>
    %53 = tpu.matmul %2, %52, %cst_38 {dimension_numbers = #tpu.dot_dimension_numbers<[1], [0], [0], [1], [0, 0, 1, 1], [], []>} : vector<256x32xbf16>, vector<32x2xbf16>, vector<256x2xf32> -> vector<256x2xf32>
    %c0_39 = arith.constant 0 : index
    %c0_40 = arith.constant 0 : index
    %54 = vector.load %arg12[%c0_39, %c0_40] : memref<256x2xf32, #tpu.memory_space<vmem>>, vector<256x2xf32>
    tpu.vector_store %arg12[%c0_39, %c0_40], %53 {strides = array<i32>} : memref<256x2xf32, #tpu.memory_space<vmem>>, vector<256x2xf32>,
    %c0_41 = arith.constant 0 : index
    %c0_42 = arith.constant 0 : index
    %c0_43 = arith.constant 0 : index
    %c0_44 = arith.constant 0 : index
    %55 = vector.load %arg6[%c0_41, %c0_42, %c0_43, %c0_44] : memref<1x2x1x32xf32, #tpu.memory_space<vmem>>, vector<1x1x1x32xf32>
    %56 = vector.shape_cast %55 : vector<1x1x1x32xf32> to vector<1x32xf32>
    %c0_45 = arith.constant 0 : index
    %c1_46 = arith.constant 1 : index
    %c0_47 = arith.constant 0 : index
    %c0_48 = arith.constant 0 : index
    %57 = vector.load %arg6[%c0_45, %c1_46, %c0_47, %c0_48] : memref<1x2x1x32xf32, #tpu.memory_space<vmem>>, vector<1x1x1x32xf32>
    %58 = vector.shape_cast %57 : vector<1x1x1x32xf32> to vector<1x32xf32>
    %cst_49 = arith.constant 0.000000e+00 : f32
    %59 = vector.broadcast %cst_49 : f32 to vector<1x32xf32>
    %cst_50 = arith.constant 0.000000e+00 : f32
    %60 = vector.broadcast %cst_50 : f32 to vector<1x32xf32>
    %c0_i32 = arith.constant 0 : i32
    %c256_i32 = arith.constant 256 : i32
    %61 = arith.addi %c0_i32, %c256_i32 : i32
    %c1_i32 = arith.constant 1 : i32
    %62:2 = scf.for %arg15 = %c0_i32 to %61 step %c1_i32 iter_args(%arg16 = %59, %arg17 = %60) -> (vector<1x32xf32>, vector<1x32xf32>)  : i32 {
      %c0_68 = arith.constant 0 : index
      %c0_69 = arith.constant 0 : index
      %77 = arith.index_cast %arg15 : i32 to index
      %c0_70 = arith.constant 0 : index
      %78 = vector.load %arg2[%c0_68, %c0_69, %77, %c0_70] : memref<1x1x256x32xf32, #tpu.memory_space<vmem>>, vector<1x1x1x32xf32>
      %79 = vector.shape_cast %78 : vector<1x1x1x32xf32> to vector<1x32xf32>
      %80 = arith.index_cast %arg15 : i32 to index
      %c0_71 = arith.constant 0 : index
      %81 = vector.load %arg9[%80, %c0_71] : memref<256x32xf32, #tpu.memory_space<vmem>>, vector<1x32xf32>
      %82 = arith.index_cast %arg15 : i32 to index
      %c0_72 = arith.constant 0 : index
      %83 = vector.load %arg11[%82, %c0_72] : memref<256x2xf32, #tpu.memory_space<vmem>>, vector<1x2xf32>
      %84 = arith.mulf %81, %79 : vector<1x32xf32>
      %cst_73 = arith.constant 0.000000e+00 : f32
      %85 = vector.broadcast %cst_73 : f32 to vector<1x32xf32>
      %86 = arith.mulf %81, %56 : vector<1x32xf32>
      %87 = math.exp %86 : vector<1x32xf32>
      %88 = arith.mulf %87, %arg16 : vector<1x32xf32>
      %89 = vector.extract_strided_slice %83 {offsets = [0, 0], sizes = [1, 1], strides = [1, 1]} : vector<1x2xf32> to vector<1x1xf32>
      %90 = vector.broadcast %89 : vector<1x1xf32> to vector<1x32xf32>
      %91 = arith.mulf %84, %90 : vector<1x32xf32>
      %92 = arith.addf %88, %91 : vector<1x32xf32>
      %93 = vector.extract_strided_slice %83 {offsets = [0, 1], sizes = [1, 1], strides = [1, 1]} : vector<1x2xf32> to vector<1x1xf32>
      %94 = vector.broadcast %93 : vector<1x1xf32> to vector<1x32xf32>
      %95 = arith.mulf %94, %92 : vector<1x32xf32>
      %96 = arith.addf %85, %95 : vector<1x32xf32>
      %97 = arith.index_cast %arg15 : i32 to index
      %c0_74 = arith.constant 0 : index
      %98 = vector.load %arg13[%97, %c0_74] : memref<256x32xf32, #tpu.memory_space<vmem>>, vector<1x32xf32>
      tpu.vector_store %arg13[%97, %c0_74], %96 {strides = array<i32>} : memref<256x32xf32, #tpu.memory_space<vmem>>, vector<1x32xf32>,
      %c255_i32 = arith.constant 255 : i32
      %99 = arith.subi %c255_i32, %arg15 : i32
      %c0_75 = arith.constant 0 : index
      %c0_76 = arith.constant 0 : index
      %100 = arith.index_cast %99 : i32 to index
      %c0_77 = arith.constant 0 : index
      %101 = vector.load %arg2[%c0_75, %c0_76, %100, %c0_77] : memref<1x1x256x32xf32, #tpu.memory_space<vmem>>, vector<1x1x1x32xf32>
      %102 = vector.shape_cast %101 : vector<1x1x1x32xf32> to vector<1x32xf32>
      %103 = arith.index_cast %99 : i32 to index
      %c0_78 = arith.constant 0 : index
      %104 = vector.load %arg10[%103, %c0_78] : memref<256x32xf32, #tpu.memory_space<vmem>>, vector<1x32xf32>
      %105 = arith.index_cast %99 : i32 to index
      %c0_79 = arith.constant 0 : index
      %106 = vector.load %arg12[%105, %c0_79] : memref<256x2xf32, #tpu.memory_space<vmem>>, vector<1x2xf32>
      %107 = arith.mulf %104, %102 : vector<1x32xf32>
      %cst_80 = arith.constant 0.000000e+00 : f32
      %108 = vector.broadcast %cst_80 : f32 to vector<1x32xf32>
      %109 = arith.mulf %104, %58 : vector<1x32xf32>
      %110 = math.exp %109 : vector<1x32xf32>
      %111 = arith.mulf %110, %arg17 : vector<1x32xf32>
      %112 = vector.extract_strided_slice %106 {offsets = [0, 0], sizes = [1, 1], strides = [1, 1]} : vector<1x2xf32> to vector<1x1xf32>
      %113 = vector.broadcast %112 : vector<1x1xf32> to vector<1x32xf32>
      %114 = arith.mulf %107, %113 : vector<1x32xf32>
      %115 = arith.addf %111, %114 : vector<1x32xf32>
      %116 = vector.extract_strided_slice %106 {offsets = [0, 1], sizes = [1, 1], strides = [1, 1]} : vector<1x2xf32> to vector<1x1xf32>
      %117 = vector.broadcast %116 : vector<1x1xf32> to vector<1x32xf32>
      %118 = arith.mulf %117, %115 : vector<1x32xf32>
      %119 = arith.addf %108, %118 : vector<1x32xf32>
      %120 = arith.index_cast %99 : i32 to index
      %c0_81 = arith.constant 0 : index
      %121 = vector.load %arg14[%120, %c0_81] : memref<256x32xf32, #tpu.memory_space<vmem>>, vector<1x32xf32>
      tpu.vector_store %arg14[%120, %c0_81], %119 {strides = array<i32>} : memref<256x32xf32, #tpu.memory_space<vmem>>, vector<1x32xf32>,
      scf.yield %92, %115 : vector<1x32xf32>, vector<1x32xf32>
    }
    %c256_i32_51 = arith.constant 256 : i32
    %c0_52 = arith.constant 0 : index
    %c0_53 = arith.constant 0 : index
    %c0_54 = arith.constant 0 : index
    %c0_55 = arith.constant 0 : index
    %63 = vector.load %arg7[%c0_52, %c0_53, %c0_54, %c0_55] : memref<1x2x1x32xf32, #tpu.memory_space<vmem>>, vector<1x1x1x32xf32>
    %64 = vector.shape_cast %63 : vector<1x1x1x32xf32> to vector<1x32xf32>
    %c0_56 = arith.constant 0 : index
    %c1_57 = arith.constant 1 : index
    %c0_58 = arith.constant 0 : index
    %c0_59 = arith.constant 0 : index
    %65 = vector.load %arg7[%c0_56, %c1_57, %c0_58, %c0_59] : memref<1x2x1x32xf32, #tpu.memory_space<vmem>>, vector<1x1x1x32xf32>
    %66 = vector.shape_cast %65 : vector<1x1x1x32xf32> to vector<1x32xf32>
    %67 = arith.addf %64, %66 : vector<1x32xf32>
    %68 = vector.broadcast %67 : vector<1x32xf32> to vector<256x32xf32>
    %69 = arith.mulf %68, %1 : vector<256x32xf32>
    %c0_60 = arith.constant 0 : index
    %c0_61 = arith.constant 0 : index
    %70 = vector.load %arg13[%c0_60, %c0_61] : memref<256x32xf32, #tpu.memory_space<vmem>>, vector<256x32xf32>
    %c0_62 = arith.constant 0 : index
    %c0_63 = arith.constant 0 : index
    %71 = vector.load %arg14[%c0_62, %c0_63] : memref<256x32xf32, #tpu.memory_space<vmem>>, vector<256x32xf32>
    %72 = arith.addf %70, %71 : vector<256x32xf32>
    %73 = arith.addf %72, %69 : vector<256x32xf32>
    %c0_64 = arith.constant 0 : index
    %c0_65 = arith.constant 0 : index
    %c0_66 = arith.constant 0 : index
    %c0_67 = arith.constant 0 : index
    %74 = vector.load %arg8[%c0_64, %c0_65, %c0_66, %c0_67] : memref<1x1x256x32xf32, #tpu.memory_space<vmem>>, vector<1x1x256x32xf32>
    %75 = vector.shape_cast %74 : vector<1x1x256x32xf32> to vector<256x32xf32>
    %76 = vector.shape_cast %73 : vector<256x32xf32> to vector<1x1x256x32xf32>
    tpu.vector_store %arg8[%c0_64, %c0_65, %c0_66, %c0_67], %76 {strides = array<i32>} : memref<1x1x256x32xf32, #tpu.memory_space<vmem>>, vector<1x1x256x32xf32>,
    return
  }
  func.func @transform_0(%arg0: i32, %arg1: i32) -> (i32, i32, i32, i32) {
    %c0_i32 = arith.constant 0 : i32
    %c0_i32_0 = arith.constant 0 : i32
    %c0_i32_1 = arith.constant 0 : i32
    return %arg0, %arg1, %c0_i32, %c0_i32_0 : i32, i32, i32, i32
  }
  func.func @transform_1(%arg0: i32, %arg1: i32) -> (i32, i32, i32, i32) {
    %c0_i32 = arith.constant 0 : i32
    %c0_i32_0 = arith.constant 0 : i32
    %c0_i32_1 = arith.constant 0 : i32
    %c0_i32_2 = arith.constant 0 : i32
    return %arg1, %c0_i32, %c0_i32_0, %c0_i32_1 : i32, i32, i32, i32
  }
  func.func @transform_2(%arg0: i32, %arg1: i32) -> (i32, i32, i32, i32) {
    %c0_i32 = arith.constant 0 : i32
    %c0_i32_0 = arith.constant 0 : i32
    %c0_i32_1 = arith.constant 0 : i32
    %c0_i32_2 = arith.constant 0 : i32
    return %arg1, %c0_i32, %c0_i32_0, %c0_i32_1 : i32, i32, i32, i32
  }
  func.func @transform_3(%arg0: i32, %arg1: i32) -> (i32, i32, i32, i32) {
    %c0_i32 = arith.constant 0 : i32
    %c0_i32_0 = arith.constant 0 : i32
    %c0_i32_1 = arith.constant 0 : i32
    %c0_i32_2 = arith.constant 0 : i32
    return %arg1, %c0_i32, %c0_i32_0, %c0_i32_1 : i32, i32, i32, i32
  }
  func.func @transform_4(%arg0: i32, %arg1: i32) -> (i32, i32, i32, i32) {
    %c0_i32 = arith.constant 0 : i32
    %c0_i32_0 = arith.constant 0 : i32
    %c0_i32_1 = arith.constant 0 : i32
    %c0_i32_2 = arith.constant 0 : i32
    return %arg1, %c0_i32, %c0_i32_0, %c0_i32_1 : i32, i32, i32, i32
  }
  func.func @transform_5(%arg0: i32, %arg1: i32) -> (i32, i32, i32, i32) {
    %c0_i32 = arith.constant 0 : i32
    %c0_i32_0 = arith.constant 0 : i32
    %c0_i32_1 = arith.constant 0 : i32
    %c0_i32_2 = arith.constant 0 : i32
    return %arg1, %c0_i32, %c0_i32_0, %c0_i32_1 : i32, i32, i32, i32
  }
  func.func @transform_6(%arg0: i32, %arg1: i32) -> (i32, i32, i32, i32) {
    %c0_i32 = arith.constant 0 : i32
    %c0_i32_0 = arith.constant 0 : i32
    %c0_i32_1 = arith.constant 0 : i32
    return %arg0, %arg1, %c0_i32, %c0_i32_0 : i32, i32, i32, i32
  }
}

</mosaic_0001>

<bundles_post_ra>
// kernel: tpu_custom_call.1
= control target key start
LH: loop header
LB: loop body
LE: loop exit
PB: predicated region body
PF: predicated region fallthrough
CT: control target
= control target key end

     0   :  { %s3687_s21 = smov 0   ;;  %s3689_s22 = smov 0   ;;  %s5548_s0 = inlined_call_operand.vmem [shape: f32[2,2,256,32], index: 0, kind: input, shape index: {}]   ;;  %s5549_s1 = inlined_call_operand.vmem [shape: bf16[2,2,32,32], index: 1, kind: input, shape index: {}]   ;;  %s5550_s2 = inlined_call_operand.vmem [shape: bf16[2,2,32,2], index: 2, kind: input, shape index: {}]   ;;  %s5551_s3 = inlined_call_operand.vmem [shape: f32[2,2,1,32], index: 3, kind: input, shape index: {}]   ;;  %s5552_s4 = inlined_call_operand.vmem [shape: f32[2,2,1,32], index: 4, kind: input, shape index: {}]   ;;  %s5553_s5 = inlined_call_operand.vmem [shape: f32[2,2,1,32], index: 5, kind: input, shape index: {}]   ;;  %s5554_s6 = inlined_call_operand.vmem [shape: f32[2,2,256,32], index: 6, kind: output, shape index: {}]  }
   0x1   :  { %s3691_s23 = smov 0   ;;  %s3693_s24 = smov 0  }
   0x2   :  { %s3695_s25 = smov 0  }
   0x3 LB: > { %s25_s26 = sadd.s32 1, %s3628_s23  ;;  %s28_s27 = sadd.s32 1, %s3632_s24  ;;  %s3636_s25 = sphi %s3695_s25, %s16_s25   ;;  %s3632_s24 = sphi %s3693_s24, %s5670_s24   ;;  %s3628_s23 = sphi %s3691_s23, %s5669_s23   ;;  %s3624_s22 = sphi %s3689_s22, %s5668_s22   ;;  %s3620_s21 = sphi %s3687_s21, %s5667_s21  }
   0x4   : > { %p26_p0 = scmp.ge.s32.totalorder %s25_s26, 2  ;;  %p2928_p1 = scmp.ge.s32.totalorder %s3636_s25, 1 }
   0x5   : > { %p279_p2 = scmp.lt.s32.totalorder %s3636_s25, 5 }
   0x6   : > { %s5672_s26 = smov (%p26_p0, %s25_s26), 0  ;;  %s5674_s27 = smov (!%p26_p0, %s28_s27), %s3632_s24 }
   0x7   : > { %p280_p3 = pnand %p2928_p1, %p279_p2  ;;  %p30_p4 = scmp.ge.s32.totalorder %s5674_s27, 2 }
   0x9   : > { %s5676_s27 = smov (%p30_p4, %s5674_s27), 0  ;;  %283 = sbr.rel (%p280_p3) target bundleno = 710 (0x2c6), region = 44 }
   0xe   : > { %p339_p5 = scmp.lt.s32.totalorder %s3624_s22, 1  ;;  %p341_p6 = scmp.lt.s32.totalorder %s3620_s21, 1  ;;  %vm451_vm0 = vcmask 261120   ;;  %vm1446_vm1 = vcmask 15360  }
  0x10   : > { %s5678_s22 = smov (!%p339_p5, %s3624_s22), 1  ;;  %s5680_s21 = smov (!%p341_p6, %s3620_s21), 1 }
  0x11   : > { %s2930_s28 = sshll.u32 %s5678_s22, 6  ;;  %s2929_s29 = sshll.u32 %s5680_s21, 5 }
  0x12   : > { %s3717_s30 = sshll.u32 %s5680_s21, 1  ;;  %s345_s7 = sadd.s32 %s2930_s28, %s2929_s29 }
  0x13   : > { %s3722_s10 = scalar_lea.vmem %s5549_s1, %s2929_s29  ;;  %s2931_s11 = sshll.u32 %s345_s7, 3 }
  0x14   : > { %v3313_v0 = vld [vmem:[%s3722_s10 + $0x8] sm:$0xff]   ;;  %s3728_s14 = scalar_lea.vmem %s5548_s0, %s2931_s11  ;;  %s3733_s17 = scalar_lea.vmem %s5554_s6, %s2931_s11  ;;  %v3314_v1 = vld [vmem:[%s3722_s10] sm:$0xff]   ;;  %v3315_v7 = vld [vmem:[%s3722_s10 + $0x18] sm:$0xff]  }
  0x15   : > { %3103 = vmatprep.subr.bf16.mxu0 %v3313_v0  ;;  %v3737_v2 = vld [vmem:[%s3728_s14] sm:$0xff]  ;;  %v3740_v3 = vld [vmem:[%s3728_s14 + $0x8] sm:$0xff]  ;;  %v3743_v4 = vld [vmem:[%s3728_s14 + $0x10] sm:$0xff]  ;;  %s3749_s20 = scalar_lea.vmem %s5553_s5, %s3717_s30  ;;  %s3776_s28 = scalar_lea.vmem %s5550_s2, %s2929_s29 }
  0x16   : > { %3104 = vmatpush3.bf16.msra.mxu0 %v3313_v0  ;;  %v3753_v5 = vpack.c.bf16 %v3740_v3, %v3737_v2  ;;  %v3756_v6 = vld [vmem:[%s3728_s14 + $0x18] sm:$0xff]  ;;  %v3760_v8 = vld [vmem:[%s3728_s14 + $0x20] sm:$0xff]  ;;  %v3763_v9 = vld [vmem:[%s3728_s14 + $0x28] sm:$0xff]  ;;  %s365_s9 = scalar_lea.vmem %s5552_s4, %s3717_s30  ;;  %s3999_s11 = scalar_lea.vmem %s5551_s3, %s3717_s30 }
  0x17   : > { %3105 = vmatprep.subr.bf16.mxu0 %v3314_v1  ;;  %v3771_v10 = vpack.c.bf16 %v3756_v6, %v3743_v4  ;;  %v3780_v11 = vpack.c.bf16 %v3763_v9, %v3760_v8  ;;  %v3787_v12 = vld [vmem:[%s3728_s14 + $0x30] sm:$0xff]  ;;  %v3790_v13 = vld [vmem:[%s3728_s14 + $0x38] sm:$0xff]  ;;  %v3316_v14 = vld [vmem:[%s3776_s28 + $0x8] sm:$0xff]   ;;  %s5378_s30 = smov 0  }
  0x18   : > { %3107 = vmatprep.mubr.msk.bf16.mxu0 %vm451_vm0, %v3753_v5  ;;  %3143 = vmatprep.mubr.msk.bf16.mxu1 %vm451_vm0, %v3753_v5  ;;  %v3796_v15 = vld [vmem:[%s3728_s14 + $0x40] sm:$0xff]  ;;  %v3805_v18 = vld [vmem:[%s3728_s14 + $0x48] sm:$0xff]  ;;  %v3317_v19 = vld [vmem:[%s3722_s10 + $0x10] sm:$0xff]   ;;  %v3811_v21 = vpack.c.bf16 %v3790_v13, %v3787_v12 }
  0x19   : > { %v3798_v16 = vld [vmem:[%s365_s9] sm:$0x1]  ;;  %v3800_v17 = vld [vmem:[%s365_s9 + $0x1] sm:$0x1]  ;;  %3139 = vmatprep.subr.bf16.mxu1 %v3316_v14  ;;  %v3815_v22 = vpack.c.bf16 %v3805_v18, %v3796_v15  ;;  %v3319_v23 = vld [vmem:[%s3776_s28 + $0x18] sm:$0xff]  }
  0x1a   : > { %3106 = vmatpush3.bf16.msra.mxu0 %v3314_v1  ;;  %3140 = vmatpush3.bf16.msra.mxu1 %v3316_v14  ;;  %v3318_v20 = vld [vmem:[%s3776_s28] sm:$0xff]   ;;  %v3823_v24 = vld [vmem:[%s3728_s14 + $0x50] sm:$0xff]  ;;  %v3826_v25 = vld [vmem:[%s3728_s14 + $0x58] sm:$0xff] }
  0x1b   : > { %3175 = vmatprep.subr.bf16.mxu0 %v3315_v7  ;;  %3141 = vmatprep.subr.bf16.mxu1 %v3318_v20  ;;  %v3320_v26 = vld [vmem:[%s3776_s28 + $0x10] sm:$0xff]   ;;  %v3830_v27 = vld [vmem:[%s3728_s14 + $0x60] sm:$0xff]  ;;  %v3833_v28 = vld [vmem:[%s3728_s14 + $0x68] sm:$0xff]  ;;  %v3841_v29 = vpack.c.bf16 %v3826_v25, %v3823_v24 }
  0x1c   : > { %v3845_v30 = vpack.c.bf16 %v3833_v28, %v3830_v27  ;;  %v3852_v31 = vld [vmem:[%s3728_s14 + $0x70] sm:$0xff]  ;;  %v3855_v32 = vld [vmem:[%s3728_s14 + $0x78] sm:$0xff]  ;;  %v3858_v33 = vld [vmem:[%s3728_s14 + $0x80] sm:$0xff] }
  0x1d   : > { %3108 = vmatmul.mubr.msk.bf16.vlgmr.msra.gmra.mxu0 %vm451_vm0, %v3771_v10  ;;  %v3861_v34 = vld [vmem:[%s3728_s14 + $0x88] sm:$0xff]  ;;  %v419_v35 = vpack.c.bf16 %v3855_v32, %v3852_v31  ;;  %v3874_v37 = vld [vmem:[%s3728_s14 + $0x90] sm:$0xff]  ;;  %v3877_v38 = vld [vmem:[%s3728_s14 + $0x98] sm:$0xff] }
  0x1e   : > { %3176 = vmatpush3.bf16.msra.mxu0 %v3315_v7  ;;  %3111 = vmatprep.mubr.msk.bf16.mxu0 %vm451_vm0, %v3780_v11  ;;  %5570 = vst [vmem:[#allocation8_spill] sm:$0xff] %v3861_v34  ;;  %v420_v36 = vpack.c.bf16 %v3861_v34, %v3858_v33  ;;  %5571 = vst [vmem:[#allocation9_spill] sm:$0xff] %v3874_v37  ;;  %v3880_v39 = vld [vmem:[%s3728_s14 + $0xa0] sm:$0xff]  ;;  %v3883_v40 = vld [vmem:[%s3728_s14 + $0xa8] sm:$0xff]  ;;  %v421_v41 = vpack.c.bf16 %v3877_v38, %v3874_v37 }
  0x1f   : > { %3177 = vmatprep.subr.bf16.mxu0 %v3317_v19  ;;  %3142 = vmatpush3.bf16.msra.mxu1 %v3318_v20  ;;  %5572 = vst [vmem:[#allocation10_spill] sm:$0xff] %v3877_v38  ;;  %5573 = vst [vmem:[#allocation11_spill] sm:$0xff] %v3880_v39  ;;  %v422_v42 = vpack.c.bf16 %v3883_v40, %v3880_v39  ;;  %v3896_v43 = vld [vmem:[%s3728_s14 + $0xb0] sm:$0xff]  ;;  %v3899_v44 = vld [vmem:[%s3728_s14 + $0xb8] sm:$0xff] }
  0x20   : > { %3211 = vmatprep.subr.bf16.mxu1 %v3319_v23  ;;  %5574 = vst [vmem:[#allocation12_spill] sm:$0xff] %v3883_v40  ;;  %5575 = vst [vmem:[#allocation13_spill] sm:$0xff] %v3896_v43  ;;  %v3902_v45 = vld [vmem:[%s3728_s14 + $0xc0] sm:$0xff]  ;;  %v3905_v46 = vld [vmem:[%s3728_s14 + $0xc8] sm:$0xff]  ;;  %v423_v47 = vpack.c.bf16 %v3899_v44, %v3896_v43 }
  0x21   : > { %5576 = vst [vmem:[#allocation14_spill] sm:$0xff] %v3899_v44  ;;  %5577 = vst [vmem:[#allocation15_spill] sm:$0xff] %v3902_v45  ;;  %v424_v48 = vpack.c.bf16 %v3905_v46, %v3902_v45  ;;  %v3916_v49 = vld [vmem:[%s3728_s14 + $0xd0] sm:$0xff]  ;;  %v3919_v50 = vld [vmem:[%s3728_s14 + $0xd8] sm:$0xff] }
  0x22   : > { %3178 = vmatpush3.bf16.msra.mxu0 %v3317_v19  ;;  %3144 = vmatmul.mubr.msk.bf16.vlgmr.msra.gmra.mxu1 %vm451_vm0, %v3771_v10  ;;  %5578 = vst [vmem:[#allocation16_spill] sm:$0xff] %v3905_v46  ;;  %5579 = vst [vmem:[#allocation17_spill] sm:$0xff] %v3916_v49  ;;  %v3922_v51 = vld [vmem:[%s3728_s14 + $0xe0] sm:$0xff]  ;;  %v3925_v52 = vld [vmem:[%s3728_s14 + $0xe8] sm:$0xff]  ;;  %v425_v53 = vpack.c.bf16 %v3919_v50, %v3916_v49 }
  0x23   : > { %3212 = vmatpush3.bf16.msra.mxu1 %v3319_v23  ;;  %3147 = vmatprep.mubr.msk.bf16.mxu1 %vm451_vm0, %v3780_v11  ;;  %5580 = vst [vmem:[#allocation18_spill] sm:$0xff] %v3919_v50  ;;  %5581 = vst [vmem:[#allocation19_spill] sm:$0xff] %v3922_v51  ;;  %v426_v54 = vpack.c.bf16 %v3925_v52, %v3922_v51  ;;  %v3936_v55 = vld [vmem:[%s3728_s14 + $0xf0] sm:$0xff]  ;;  %v3939_v56 = vld [vmem:[%s3728_s14 + $0xf8] sm:$0xff] }
  0x24   : > { %3213 = vmatprep.subr.bf16.mxu1 %v3320_v26  ;;  %5582 = vst [vmem:[#allocation20_spill] sm:$0xff] %v3925_v52  ;;  %5583 = vst [vmem:[#allocation21_spill] sm:$0xff] %v3936_v55  ;;  %v427_v57 = vpack.c.bf16 %v3939_v56, %v3936_v55  ;;  %v4002_v58 = vld [vmem:[%s3999_s11] ss:$0 sm:$0xff] }
  0x25   : > { %3112 = vmatmul.mubr.msk.bf16.gmra.mxu0 %vm451_vm0, %v3811_v21  ;;  %5584 = vst [vmem:[#allocation22_spill] sm:$0xff] %v3939_v56 }
  0x26   : > { %3115 = vmatprep.mubr.msk.bf16.mxu0 %vm451_vm0, %v3815_v22 }
  0x27   : > { %3214 = vmatpush3.bf16.msra.mxu1 %v3320_v26 }
  0x2a   : > { %3148 = vmatmul.mubr.msk.bf16.gmra.mxu1 %vm451_vm0, %v3811_v21 }
  0x2b   : > { %3151 = vmatprep.mubr.msk.bf16.mxu1 %vm451_vm0, %v3815_v22 }
  0x2d   : > { %3116 = vmatmul.mubr.msk.bf16.gmra.mxu0 %vm451_vm0, %v3841_v29 }
  0x2e   : > { %3119 = vmatprep.mubr.msk.bf16.mxu0 %vm451_vm0, %v3845_v30 }
  0x32   : > { %3152 = vmatmul.mubr.msk.bf16.gmra.mxu1 %vm451_vm0, %v3841_v29 }
  0x33   : > { %3155 = vmatprep.mubr.msk.bf16.mxu1 %vm451_vm0, %v3845_v30 }
  0x35   : > { %3120 = vmatmul.mubr.msk.bf16.gmra.mxu0 %vm451_vm0, %v419_v35 }
  0x36   : > { %3123 = vmatprep.mubr.msk.bf16.mxu0 %vm451_vm0, %v420_v36 }
  0x3a   : > { %3156 = vmatmul.mubr.msk.bf16.gmra.mxu1 %vm451_vm0, %v419_v35 }
  0x3b   : > { %3159 = vmatprep.mubr.msk.bf16.mxu1 %vm451_vm0, %v420_v36 }
  0x3d   : > { %3124 = vmatmul.mubr.msk.bf16.gmra.mxu0 %vm451_vm0, %v421_v41 }
  0x3e   : > { %3127 = vmatprep.mubr.msk.bf16.mxu0 %vm451_vm0, %v422_v42 }
  0x42   : > { %3160 = vmatmul.mubr.msk.bf16.gmra.mxu1 %vm451_vm0, %v421_v41 }
  0x43   : > { %3163 = vmatprep.mubr.msk.bf16.mxu1 %vm451_vm0, %v422_v42 }
  0x45   : > { %3128 = vmatmul.mubr.msk.bf16.gmra.mxu0 %vm451_vm0, %v423_v47 }
  0x46   : > { %3131 = vmatprep.mubr.msk.bf16.mxu0 %vm451_vm0, %v424_v48 }
  0x4a   : > { %3164 = vmatmul.mubr.msk.bf16.gmra.mxu1 %vm451_vm0, %v423_v47 }
  0x4b   : > { %3167 = vmatprep.mubr.msk.bf16.mxu1 %vm451_vm0, %v424_v48 }
  0x4d   : > { %3132 = vmatmul.mubr.msk.bf16.gmra.mxu0 %vm451_vm0, %v425_v53 }
  0x4e   : > { %3135 = vmatprep.mubr.msk.bf16.mxu0 %vm451_vm0, %v426_v54 }
  0x52   : > { %3168 = vmatmul.mubr.msk.bf16.gmra.mxu1 %vm451_vm0, %v425_v53 }
  0x53   : > { %3171 = vmatprep.mubr.msk.bf16.mxu1 %vm451_vm0, %v426_v54 }
  0x55   : > { %3136 = vmatmul.mubr.msk.bf16.gmra.mxu0 %vm451_vm0, %v427_v57 }
  0x56   : > { %3179 = vmatprep.mubr.msk.bf16.mxu0 %vm451_vm0, %v3753_v5 }
  0x5a   : > { %3172 = vmatmul.mubr.msk.bf16.gmra.mxu1 %vm451_vm0, %v427_v57 }
  0x5b   : > { %3215 = vmatprep.mubr.msk.bf16.mxu1 %vm451_vm0, %v3753_v5 }
  0x5d   : > { %3180 = vmatmul.mubr.msk.bf16.vlgmr.msra.gmra.mxu0 %vm451_vm0, %v3771_v10 }
  0x5e   : > { %3183 = vmatprep.mubr.msk.bf16.mxu0 %vm451_vm0, %v3780_v11 }
  0x62   : > { %3216 = vmatmul.mubr.msk.bf16.vlgmr.msra.gmra.mxu1 %vm451_vm0, %v3771_v10 }
  0x63   : > { %3219 = vmatprep.mubr.msk.bf16.mxu1 %vm451_vm0, %v3780_v11 }
  0x65   : > { %3184 = vmatmul.mubr.msk.bf16.gmra.mxu0 %vm451_vm0, %v3811_v21 }
  0x66   : > { %3187 = vmatprep.mubr.msk.bf16.mxu0 %vm451_vm0, %v3815_v22 }
  0x6a   : > { %3220 = vmatmul.mubr.msk.bf16.gmra.mxu1 %vm451_vm0, %v3811_v21 }
  0x6b   : > { %3223 = vmatprep.mubr.msk.bf16.mxu1 %vm451_vm0, %v3815_v22 }
  0x6d   : > { %3188 = vmatmul.mubr.msk.bf16.gmra.mxu0 %vm451_vm0, %v3841_v29 }
  0x6e   : > { %3191 = vmatprep.mubr.msk.bf16.mxu0 %vm451_vm0, %v3845_v30 }
  0x72   : > { %3224 = vmatmul.mubr.msk.bf16.gmra.mxu1 %vm451_vm0, %v3841_v29 }
  0x73   : > { %3227 = vmatprep.mubr.msk.bf16.mxu1 %vm451_vm0, %v3845_v30 }
  0x75   : > { %3192 = vmatmul.mubr.msk.bf16.gmra.mxu0 %vm451_vm0, %v419_v35 }
  0x76   : > { %3195 = vmatprep.mubr.msk.bf16.mxu0 %vm451_vm0, %v420_v36 }
  0x7a   : > { %3228 = vmatmul.mubr.msk.bf16.gmra.mxu1 %vm451_vm0, %v419_v35 }
  0x7b   : > { %3231 = vmatprep.mubr.msk.bf16.mxu1 %vm451_vm0, %v420_v36 }
  0x7d   : > { %3196 = vmatmul.mubr.msk.bf16.gmra.mxu0 %vm451_vm0, %v421_v41 }
  0x7e   : > { %3199 = vmatprep.mubr.msk.bf16.mxu0 %vm451_vm0, %v422_v42 }
  0x82   : > { %3232 = vmatmul.mubr.msk.bf16.gmra.mxu1 %vm451_vm0, %v421_v41 }
  0x83   : > { %3235 = vmatprep.mubr.msk.bf16.mxu1 %vm451_vm0, %v422_v42 }
  0x85   : > { %3200 = vmatmul.mubr.msk.bf16.gmra.mxu0 %vm451_vm0, %v423_v47 }
  0x86   : > { %3203 = vmatprep.mubr.msk.bf16.mxu0 %vm451_vm0, %v424_v48 }
  0x8a   : > { %3236 = vmatmul.mubr.msk.bf16.gmra.mxu1 %vm451_vm0, %v423_v47 }
  0x8b   : > { %3239 = vmatprep.mubr.msk.bf16.mxu1 %vm451_vm0, %v424_v48 }
  0x8d   : > { %3204 = vmatmul.mubr.msk.bf16.gmra.mxu0 %vm451_vm0, %v425_v53 }
  0x8e   : > { %3207 = vmatprep.mubr.msk.bf16.mxu0 %vm451_vm0, %v426_v54 }
  0x92   : > { %3240 = vmatmul.mubr.msk.bf16.gmra.mxu1 %vm451_vm0, %v425_v53 }
  0x93   : > { %3243 = vmatprep.mubr.msk.bf16.mxu1 %vm451_vm0, %v426_v54 }
  0x95   : > { %3208 = vmatmul.mubr.msk.bf16.gmra.mxu0 %vm451_vm0, %v427_v57 }
  0x9a   : > { %3244 = vmatmul.mubr.msk.bf16.gmra.mxu1 %vm451_vm0, %v427_v57 }
  0xdd   : > { %v3109_v59 = vpop.f32.mrf.mxu0 }
  0xde   : > { %v4005_v60 = vadd.f32 %v3109_v59, %v4002_v58 }
  0xdf   : > { %v534_v61 = vpop.f32.mrf.mxu0 }
  0xe0   : > { %v759_v62 = vand.u32 2147483647, %v4005_v60  ;;  %v4009_v63 = vadd.f32 %v4002_v58, %v534_v61  ;;  %vm695_vm3 = vcmp.ne.f32.partialorder %v4005_v60, %v4005_v60  ;;  %v5593_v34 = vmax.f32 %v4005_v60, 0.0 }
  0xe1   : > { %v3110_v0 = vpop.f32.mrf.mxu0 }
  0xe2   : > { %v791_v1 = vsub.f32 0.0, %v759_v62  ;;  %v757_v5 = vand.u32 2147483647, %v4009_v63  ;;  %v4013_v7 = vadd.f32 %v3110_v0, %v4002_v58  ;;  %v3145_v35 = vpop.f32.mrf.mxu1  ;;  %vm693_vm5 = vcmp.ne.f32.partialorder %v4009_v63, %v4009_v63 }
  0xe3   : > { %v537_v10 = vpop.f32.mrf.mxu0  ;;  %1449 = vst.msk [vmem:[#allocation4 + $0x10] sm:$0xff] %vm1446_vm1, %v3145_v35 }
  0xe4   : > { %v825_v11 = vmul.f32 1.442695, %v791_v1  ;;  %v789_v14 = vsub.f32 0.0, %v757_v5  ;;  %v4016_v19 = vadd.f32 %v4002_v58, %v537_v10  ;;  %v760_v20 = vand.u32 2147483647, %v4013_v7  ;;  %v1319_v48 = vpop.f32.mrf.mxu1 }
  0xe5   : > { %v3113_v21 = vpop.f32.mrf.mxu0  ;;  %1447 = vst.msk [vmem:[#allocation4] sm:$0xff] %vm1446_vm1, %v1319_v48  ;;  %vm696_vm8 = vcmp.ne.f32.partialorder %v4013_v7, %v4013_v7 }
  0xe6   : > { %3321 = vpow2.f32 %v825_v11  ;;  %v821_v22 = vmul.f32 1.442695, %v789_v14  ;;  %v792_v23 = vsub.f32 0.0, %v760_v20  ;;  %v758_v26 = vand.u32 2147483647, %v4016_v19  ;;  %v3146_v62 = vpop.f32.mrf.mxu1 }
  0xe7   : > { %v4021_v29 = vadd.f32 %v3113_v21, %v4002_v58  ;;  %v550_v30 = vpop.f32.mrf.mxu0  ;;  %1450 = vst.msk [vmem:[#allocation4 + $0x18] sm:$0xff] %vm1446_vm1, %v3146_v62  ;;  %vm694_vm9 = vcmp.ne.f32.partialorder %v4016_v19, %v4016_v19  ;;  %v5602_v38 = vmax.f32 %v4016_v19, 0.0 }
  0xe8   : > { %3323 = vpow2.f32 %v821_v22  ;;  %v4024_v36 = vadd.f32 %v4002_v58, %v550_v30  ;;  %v827_v41 = vmul.f32 1.442695, %v792_v23  ;;  %v790_v42 = vsub.f32 0.0, %v758_v26  ;;  %v1322_v14 = vpop.f32.mrf.mxu1 }
  0xe9   : > { %v3114_v47 = vpop.f32.mrf.mxu0  ;;  %v763_v53 = vand.u32 2147483647, %v4021_v29  ;;  %1448 = vst.msk [vmem:[#allocation4 + $0x8] sm:$0xff] %vm1446_vm1, %v1322_v14  ;;  %vm699_vm11 = vcmp.ne.f32.partialorder %v4021_v29, %v4021_v29 }
  0xea   : > { %v761_v54 = vand.u32 2147483647, %v4024_v36  ;;  %3325 = vpow2.f32 %v827_v41  ;;  %v823_v57 = vmul.f32 1.442695, %v790_v42  ;;  %v4031_v59 = vadd.f32 %v3114_v47, %v4002_v58  ;;  %v3149_v35 = vpop.f32.mrf.mxu1 }
  0xeb   : > { %v553_v61 = vpop.f32.mrf.mxu0  ;;  %v795_v0 = vsub.f32 0.0, %v763_v53  ;;  %1453 = vst.msk [vmem:[#allocation4 + $0x30] sm:$0xff] %vm1446_vm1, %v3149_v35  ;;  %vm697_vm12 = vcmp.ne.f32.partialorder %v4024_v36, %v4024_v36 }
  0xec   : > { %v793_v1 = vsub.f32 0.0, %v761_v54  ;;  %v4034_v5 = vadd.f32 %v4002_v58, %v553_v61  ;;  %3327 = vpow2.f32 %v823_v57  ;;  %v764_v10 = vand.u32 2147483647, %v4031_v59  ;;  %v1335_v48 = vpop.f32.mrf.mxu1 }
  0xed   : > { %v3117_v11 = vpop.f32.mrf.mxu0  ;;  %v833_v20 = vmul.f32 1.442695, %v795_v0  ;;  %1451 = vst.msk [vmem:[#allocation4 + $0x20] sm:$0xff] %vm1446_vm1, %v1335_v48  ;;  %vm700_vm15 = vcmp.ne.f32.partialorder %v4031_v59, %v4031_v59 }
  0xee   : > { %v829_v21 = vmul.f32 1.442695, %v793_v1  ;;  %v796_v22 = vsub.f32 0.0, %v764_v10  ;;  %v762_v23 = vand.u32 2147483647, %v4034_v5  ;;  %v4041_v26 = vadd.f32 %v3117_v11, %v4002_v58  ;;  %v3150_v0 = vpop.f32.mrf.mxu1 }
  0xef   : > { %v566_v30 = vpop.f32.mrf.mxu0  ;;  %3329 = vpow2.f32 %v833_v20  ;;  %1454 = vst.msk [vmem:[#allocation4 + $0x38] sm:$0xff] %vm1446_vm1, %v3150_v0 }
  0xf0   : > { %v4044_v41 = vadd.f32 %v4002_v58, %v566_v30  ;;  %3331 = vpow2.f32 %v829_v21  ;;  %v835_v42 = vmul.f32 1.442695, %v796_v22  ;;  %v794_v47 = vsub.f32 0.0, %v762_v23  ;;  %v1338_v20 = vpop.f32.mrf.mxu1 }
  0xf1   : > { %v767_v53 = vand.u32 2147483647, %v4041_v26  ;;  %v3118_v62 = vpop.f32.mrf.mxu0  ;;  %1452 = vst.msk [vmem:[#allocation4 + $0x28] sm:$0xff] %vm1446_vm1, %v1338_v20 }
  0xf2   : > { %3333 = vpow2.f32 %v835_v42  ;;  %v831_v57 = vmul.f32 1.442695, %v794_v47  ;;  %v765_v61 = vand.u32 2147483647, %v4044_v41  ;;  %v4058_v22 = vadd.f32 %v3118_v62, %v4002_v58  ;;  %v3153_v30 = vpop.f32.mrf.mxu1 }
  0xf3   : > { %v4049_v54 = vpop.eup %3321  ;;  %v799_v10 = vsub.f32 0.0, %v767_v53  ;;  %1457 = vst.msk [vmem:[#allocation4 + $0x50] sm:$0xff] %vm1446_vm1, %v3153_v30 }
  0xf4   : > { %v903_v1 = vadd.f32 1.0, %v4049_v54  ;;  %3335 = vpow2.f32 %v831_v57  ;;  %v797_v14 = vsub.f32 0.0, %v765_v61  ;;  %v906_v47 = vmul.f32 -0.5, %v4049_v54  ;;  %v1351_v0 = vpop.f32.mrf.mxu1 }
  0xf5   : > { %v4054_v11 = vpop.eup %3323  ;;  %v841_v23 = vmul.f32 1.442695, %v799_v10  ;;  %1455 = vst.msk [vmem:[#allocation4 + $0x40] sm:$0xff] %vm1446_vm1, %v1351_v0  ;;  %v909_v30 = vand.u32 2147483647, %v4049_v54 }
  0xf6   : > { %3337 = vlog2.f32 %v903_v1  ;;  %v885_v21 = vadd.f32 1.0, %v4054_v11  ;;  %v837_v48 = vmul.f32 1.442695, %v797_v14  ;;  %v888_v10 = vmul.f32 -0.5, %v4054_v11  ;;  %v3154_v53 = vpop.f32.mrf.mxu1 }
  0xf7   : > { %v4061_v35 = vpop.eup %3325  ;;  %v768_v14 = vand.u32 2147483647, %v4058_v22  ;;  %v907_v42 = vadd.f32 1.0, %v906_v47  ;;  %1458 = vst.msk [vmem:[#allocation4 + $0x58] sm:$0xff] %vm1446_vm1, %v3154_v53  ;;  %v891_v0 = vand.u32 2147483647, %v4054_v11 }
  0xf8   : > { %3339 = vlog2.f32 %v885_v21  ;;  %v912_v61 = vadd.f32 1.0, %v4061_v35  ;;  %v569_v21 = vpop.f32.mrf.mxu0  ;;  %v915_v56 = vmul.f32 -0.5, %v4061_v35  ;;  %v1354_v62 = vpop.f32.mrf.mxu1  ;;  %v889_v47 = vadd.f32 1.0, %v888_v10 }
  0xf9   : > { %v4070_v1 = vpop.eup %3327  ;;  %3341 = vpow2.f32 %v841_v23  ;;  %v4087_v20 = vadd.f32 %v4002_v58, %v569_v21  ;;  %v800_v55 = vsub.f32 0.0, %v768_v14  ;;  %1456 = vst.msk [vmem:[#allocation4 + $0x48] sm:$0xff] %vm1446_vm1, %v1354_v62  ;;  %vm4094_vm2 = vcmp.lt.f32.partialorder %v909_v30, 0.0004427343 }
  0xfa   : > { %3343 = vlog2.f32 %v912_v61  ;;  %v894_v57 = vadd.f32 1.0, %v4070_v1  ;;  %v897_v61 = vmul.f32 -0.5, %v4070_v1  ;;  %v3157_v49 = vpop.f32.mrf.mxu1  ;;  %v908_v10 = vmul.f32 %v4049_v54, %v907_v42  ;;  %v4113_v45 = vpop.f32.mrf.mxu0 }
  0xfb   : > { %3345 = vpow2.f32 %v837_v48  ;;  %v916_v14 = vadd.f32 1.0, %v915_v56  ;;  %v900_v62 = vand.u32 2147483647, %v4070_v1  ;;  %1461 = vst.msk [vmem:[#allocation4 + $0x70] sm:$0xff] %vm1446_vm1, %v3157_v49  ;;  %vm4108_vm4 = vcmp.lt.f32.partialorder %v891_v0, 0.0004427343 }
  0xfc   : > { %v4082_v23 = vpop.eup %3329  ;;  %3347 = vlog2.f32 %v894_v57  ;;  %v918_v57 = vand.u32 2147483647, %v4061_v35  ;;  %v898_v48 = vadd.f32 1.0, %v897_v61  ;;  %v766_v50 = vand.u32 2147483647, %v4087_v20  ;;  %v1367_v44 = vpop.f32.mrf.mxu1 }
  0xfd   : > { %v4089_v52 = vpop.eup %3331  ;;  %v939_v51 = vadd.f32 1.0, %v4082_v23  ;;  %v942_v49 = vmul.f32 -0.5, %v4082_v23  ;;  %v843_v54 = vmul.f32 1.442695, %v800_v55  ;;  %1459 = vst.msk [vmem:[#allocation4 + $0x60] sm:$0xff] %vm1446_vm1, %v1367_v44 }
  0xfe   : > { %v921_v21 = vadd.f32 1.0, %v4089_v52  ;;  %vm4123_vm6 = vcmp.lt.f32.partialorder %v918_v57, 0.0004427343  ;;  %v945_v61 = vand.u32 2147483647, %v4082_v23  ;;  %v3158_v39 = vpop.f32.mrf.mxu1  ;;  %v899_v55 = vmul.f32 %v4070_v1, %v898_v48 }
  0xff   : > { %v4101_v46 = vpop.eup %3333  ;;  %3349 = vlog2.f32 %v939_v51  ;;  %v890_v51 = vmul.f32 %v4054_v11, %v889_v47  ;;  %v917_v47 = vmul.f32 %v4061_v35, %v916_v14  ;;  %vm4131_vm7 = vcmp.lt.f32.partialorder %v900_v62, 0.0004427343  ;;  %1462 = vst.msk [vmem:[#allocation4 + $0x78] sm:$0xff] %vm1446_vm1, %v3158_v39 }
 0x100   : > { %3351 = vlog2.f32 %v921_v21  ;;  %v948_v56 = vadd.f32 1.0, %v4101_v46  ;;  %v924_v21 = vmul.f32 -0.5, %v4089_v52  ;;  %v927_v57 = vand.u32 2147483647, %v4089_v52  ;;  %v1370_v35 = vpop.f32.mrf.mxu1 }
 0x101   : > { %v4115_v43 = vpop.eup %3335  ;;  %v798_v37 = vsub.f32 0.0, %v766_v50  ;;  %1460 = vst.msk [vmem:[#allocation4 + $0x68] sm:$0xff] %vm1446_vm1, %v1370_v35  ;;  %vm4151_vm10 = vcmp.lt.f32.partialorder %v945_v61, 0.0004427343  ;;  %v5596_v61 = vmax.f32 %v4009_v63, 0.0 }
 0x102   : > { %v930_v40 = vadd.f32 1.0, %v4115_v43  ;;  %3353 = vlog2.f32 %v948_v56  ;;  %v943_v56 = vadd.f32 1.0, %v942_v49  ;;  %v925_v50 = vadd.f32 1.0, %v924_v21  ;;  %v3161_v53 = vpop.f32.mrf.mxu1 }
 0x103   : > { %v3338_v42 = vpop.eup %3337  ;;  %v839_v48 = vmul.f32 1.442695, %v798_v37  ;;  %1465 = vst.msk [vmem:[#allocation4 + $0x90] sm:$0xff] %vm1446_vm1, %v3161_v53  ;;  %v936_v53 = vand.u32 2147483647, %v4115_v43 }
 0x104   : > { %v905_v11 = vmul.f32 0.6931472, %v3338_v42  ;;  %3355 = vlog2.f32 %v930_v40  ;;  %v4140_v42 = vpop.f32.mrf.mxu0  ;;  %v1383_v35 = vpop.f32.mrf.mxu1  ;;  %vm4193_vm13 = vcmp.lt.f32.partialorder %v927_v57, 0.0004427343 }
 0x105   : > { %v3340_v44 = vpop.eup %3339  ;;  %3357 = vpow2.f32 %v843_v54  ;;  %v951_v54 = vmul.f32 -0.5, %v4101_v46  ;;  %1463 = vst.msk [vmem:[#allocation4 + $0x80] sm:$0xff] %vm1446_vm1, %v1383_v35 }
 0x106   : > { %v911_v14 = vsel %vm4094_vm2, %v908_v10, %v905_v11  ;;  %v887_v62 = vmul.f32 0.6931472, %v3340_v44  ;;  %v4145_v39 = vpop.eup %3341  ;;  %v954_v11 = vand.u32 2147483647, %v4101_v46  ;;  %3359 = vpow2.f32 %v839_v48 }
 0x107   : > { %v1175_v1 = vadd.f32 %v911_v14, %v5593_v34  ;;  %v3344_v10 = vpop.eup %3343  ;;  %v975_v34 = vadd.f32 1.0, %v4145_v39  ;;  %vm698_vm2 = vcmp.ne.f32.partialorder %v4034_v5, %v4034_v5 }
 0x108   : > { %v893_v49 = vsel %vm4108_vm4, %v890_v51, %v887_v62  ;;  %v4161_v44 = vpop.eup %3345  ;;  %v914_v30 = vmul.f32 0.6931472, %v3344_v10  ;;  %v4169_v51 = vpop.f32.mrf.mxu0  ;;  %v933_v62 = vmul.f32 -0.5, %v4115_v43  ;;  %vm4202_vm14 = vcmp.lt.f32.partialorder %v954_v11, 0.0004427343 }
 0x109   : > { %v1207_v37 = vsel %vm695_vm3, %v4005_v60, %v1175_v1  ;;  %v1173_v21 = vadd.f32 %v893_v49, %v5596_v61  ;;  %v3348_v14 = vpop.eup %3347  ;;  %3361 = vlog2.f32 %v975_v34  ;;  %v957_v60 = vadd.f32 1.0, %v4161_v44  ;;  %v3162_v34 = vpop.f32.mrf.mxu1 }
 0x10a   : > { %1239 = vst.msk [vmem:[#allocation2 + $0x10] sm:$0xff] %vm451_vm0, %v1207_v37  ;;  %v920_v48 = vsel %vm4123_vm6, %v917_v47, %v914_v30  ;;  %v896_v10 = vmul.f32 0.6931472, %v3348_v14  ;;  %v4188_v49 = vadd.f32 %v4113_v45, %v4002_v58  ;;  %v5597_v37 = vmax.f32 %v4013_v7, 0.0  ;;  %v4206_v57 = vpop.f32.mrf.mxu0 }
 0x10b   : > { %v1205_v1 = vsel %vm693_vm5, %v4009_v63, %v1173_v21  ;;  %v952_v63 = vadd.f32 1.0, %v951_v54  ;;  %3363 = vlog2.f32 %v957_v60  ;;  %1466 = vst.msk [vmem:[#allocation4 + $0x98] sm:$0xff] %vm1446_vm1, %v3162_v34  ;;  %v944_v45 = vmul.f32 %v4082_v23, %v943_v56  ;;  %v1386_v14 = vpop.f32.mrf.mxu1 }
 0x10c   : > { %1237 = vst.msk [vmem:[#allocation2] sm:$0xff] %vm451_vm0, %v1205_v1  ;;  %v1176_v61 = vadd.f32 %v920_v48, %v5597_v37  ;;  %v3350_v0 = vpop.eup %3349  ;;  %v902_v47 = vsel %vm4131_vm7, %v899_v55, %v896_v10  ;;  %v926_v21 = vmul.f32 %v4089_v52, %v925_v50  ;;  %v934_v52 = vadd.f32 1.0, %v933_v62  ;;  %v4244_v40 = vpop.f32.mrf.mxu0 }
 0x10d   : > { %v3352_v1 = vpop.eup %3351  ;;  %v1174_v55 = vadd.f32 %v902_v47, %v5602_v38  ;;  %v941_v60 = vmul.f32 0.6931472, %v3350_v0  ;;  %1464 = vst.msk [vmem:[#allocation4 + $0x88] sm:$0xff] %vm1446_vm1, %v1386_v14  ;;  %vm4220_vm3 = vcmp.lt.f32.partialorder %v936_v53, 0.0004427343  ;;  %v4227_v50 = vadd.f32 %v4002_v58, %v4140_v42  ;;  %v3165_v11 = vpop.f32.mrf.mxu1 }
 0x10e   : > { %v1208_v54 = vsel %vm696_vm8, %v4013_v7, %v1176_v61  ;;  %v923_v23 = vmul.f32 0.6931472, %v3352_v1  ;;  %v771_v7 = vand.u32 2147483647, %v4188_v49  ;;  %v953_v53 = vmul.f32 %v4101_v46, %v952_v63  ;;  %1469 = vst.msk [vmem:[#allocation4 + $0xb0] sm:$0xff] %vm1446_vm1, %v3165_v11 }
 0x10f   : > { %1240 = vst.msk [vmem:[#allocation2 + $0x18] sm:$0xff] %vm451_vm0, %v1208_v54  ;;  %v1206_v62 = vsel %vm694_vm9, %v4016_v19, %v1174_v55  ;;  %v947_v48 = vsel %vm4151_vm10, %v944_v45, %v941_v60  ;;  %v978_v10 = vmul.f32 -0.5, %v4145_v39  ;;  %v3354_v34 = vpop.eup %3353  ;;  %v5605_v42 = vmax.f32 %v4021_v29, 0.0  ;;  %v1399_v47 = vpop.f32.mrf.mxu1 }
 0x110   : > { %1238 = vst.msk [vmem:[#allocation2 + $0x8] sm:$0xff] %vm451_vm0, %v1206_v62  ;;  %v929_v61 = vsel %vm4193_vm13, %v926_v21, %v923_v23  ;;  %v960_v19 = vmul.f32 -0.5, %v4161_v44  ;;  %v803_v0 = vsub.f32 0.0, %v771_v7  ;;  %v5606_v63 = vmax.f32 %v4024_v36, 0.0 }
 0x111   : > { %v1179_v37 = vadd.f32 %v947_v48, %v5605_v42  ;;  %v3356_v46 = vpop.eup %3355  ;;  %v950_v14 = vmul.f32 0.6931472, %v3354_v34  ;;  %v935_v1 = vmul.f32 %v4115_v43, %v934_v52  ;;  %v769_v54 = vand.u32 2147483647, %v4227_v50  ;;  %1467 = vst.msk [vmem:[#allocation4 + $0xa0] sm:$0xff] %vm1446_vm1, %v1399_v47  ;;  %v3166_v23 = vpop.f32.mrf.mxu1 }
 0x112   : > { %v1177_v45 = vadd.f32 %v929_v61, %v5606_v63  ;;  %v4251_v38 = vpop.eup %3357  ;;  %v932_v21 = vmul.f32 0.6931472, %v3356_v46  ;;  %v981_v55 = vand.u32 2147483647, %v4145_v39  ;;  %v849_v60 = vmul.f32 1.442695, %v803_v0  ;;  %v598_v42 = vpop.f32.mrf.mxu0 }
 0x113   : > { %v1211_v35 = vsel %vm699_vm11, %v4021_v29, %v1179_v37  ;;  %v956_v52 = vsel %vm4202_vm14, %v953_v53, %v950_v14  ;;  %v979_v7 = vadd.f32 1.0, %v978_v10  ;;  %v984_v11 = vadd.f32 1.0, %v4251_v38  ;;  %1470 = vst.msk [vmem:[#allocation4 + $0xb8] sm:$0xff] %vm1446_vm1, %v3166_v23  ;;  %v4272_v37 = vpop.eup %3359 }
 0x114   : > { %1243 = vst.msk [vmem:[#allocation2 + $0x30] sm:$0xff] %vm451_vm0, %v1211_v35  ;;  %v1209_v43 = vsel %vm697_vm12, %v4024_v36, %v1177_v45  ;;  %v5607_v29 = vmax.f32 %v4031_v59, 0.0  ;;  %v938_v48 = vsel %vm4220_vm3, %v935_v1, %v932_v21  ;;  %v961_v34 = vadd.f32 1.0, %v960_v19  ;;  %v1402_v36 = vpop.f32.mrf.mxu1  ;;  %v3126_v35 = vpop.f32.mrf.mxu0 }
 0x115   : > { %1241 = vst.msk [vmem:[#allocation2 + $0x20] sm:$0xff] %vm451_vm0, %v1209_v43  ;;  %3365 = vpow2.f32 %v849_v60  ;;  %v5608_v30 = vmax.f32 %v4034_v5, 0.0  ;;  %v801_v10 = vsub.f32 0.0, %v769_v54  ;;  %v4278_v61 = vadd.f32 %v4169_v51, %v4002_v58 }
 0x116   : > { %v1180_v62 = vadd.f32 %v956_v52, %v5607_v29  ;;  %3367 = vlog2.f32 %v984_v11  ;;  %1468 = vst.msk [vmem:[#allocation4 + $0xa8] sm:$0xff] %vm1446_vm1, %v1402_v36  ;;  %v3362_v0 = vpop.eup %3361  ;;  %vm703_vm4 = vcmp.ne.f32.partialorder %v4041_v26, %v4041_v26  ;;  %v963_v19 = vand.u32 2147483647, %v4161_v44  ;;  %v3169_v46 = vpop.f32.mrf.mxu1 }
 0x117   : > { %v1178_v53 = vadd.f32 %v938_v48, %v5608_v30  ;;  %v966_v47 = vadd.f32 1.0, %v4272_v37  ;;  %v977_v63 = vmul.f32 0.6931472, %v3362_v0  ;;  %v980_v45 = vmul.f32 %v4145_v39, %v979_v7  ;;  %1473 = vst.msk [vmem:[#allocation4 + $0xd0] sm:$0xff] %vm1446_vm1, %v3169_v46  ;;  %v601_v36 = vpop.f32.mrf.mxu0 }
 0x118   : > { %v1212_v56 = vsel %vm700_vm15, %v4031_v59, %v1180_v62  ;;  %v4297_v59 = vadd.f32 %v4002_v58, %v4206_v57  ;;  %v3364_v14 = vpop.eup %3363  ;;  %vm982_vm5 = vcmp.lt.f32.partialorder %v981_v55, 0.0004427343  ;;  %v962_v1 = vmul.f32 %v4161_v44, %v961_v34  ;;  %v1415_v21 = vpop.f32.mrf.mxu1 }
 0x119   : > { %1244 = vst.msk [vmem:[#allocation2 + $0x38] sm:$0xff] %vm451_vm0, %v1212_v56  ;;  %v1210_v51 = vsel %vm698_vm2, %v4034_v5, %v1178_v53  ;;  %3369 = vlog2.f32 %v966_v47  ;;  %v845_v54 = vmul.f32 1.442695, %v801_v10  ;;  %v983_v5 = vsel %vm982_vm5, %v980_v45, %v977_v63 }
 0x11a   : > { %1242 = vst.msk [vmem:[#allocation2 + $0x28] sm:$0xff] %vm451_vm0, %v1210_v51  ;;  %v959_v60 = vmul.f32 0.6931472, %v3364_v14  ;;  %v987_v39 = vmul.f32 -0.5, %v4251_v38  ;;  %v772_v23 = vand.u32 2147483647, %v4278_v61  ;;  %v3170_v44 = vpop.f32.mrf.mxu1  ;;  %vm701_vm7 = vcmp.ne.f32.partialorder %v4044_v41, %v4044_v41 }
 0x11b   : > { %1471 = vst.msk [vmem:[#allocation4 + $0xc0] sm:$0xff] %vm1446_vm1, %v1415_v21  ;;  %v5609_v57 = vmax.f32 %v4041_v26, 0.0  ;;  %v669_v52 = vmax.f32 %v4044_v41, 0.0  ;;  %vm964_vm6 = vcmp.lt.f32.partialorder %v963_v19, 0.0004427343  ;;  %3371 = vpow2.f32 %v845_v54  ;;  %1474 = vst.msk [vmem:[#allocation4 + $0xd8] sm:$0xff] %vm1446_vm1, %v3170_v44 }
 0x11c   : > { %v965_v55 = vsel %vm964_vm6, %v962_v1, %v959_v60  ;;  %v804_v7 = vsub.f32 0.0, %v772_v23  ;;  %v770_v11 = vand.u32 2147483647, %v4297_v59  ;;  %v4318_v48 = vadd.f32 %v4244_v40, %v4002_v58  ;;  %v3129_v1 = vpop.f32.mrf.mxu0  ;;  %v1418_v54 = vpop.f32.mrf.mxu1 }
 0x11d   : > { %v1183_v43 = vadd.f32 %v983_v5, %v5609_v57  ;;  %v1181_v62 = vadd.f32 %v965_v55, %v669_v52  ;;  %v4321_v34 = vadd.f32 %v4002_v58, %v598_v42  ;;  %v988_v30 = vadd.f32 1.0, %v987_v39  ;;  %1472 = vst.msk [vmem:[#allocation4 + $0xc8] sm:$0xff] %vm1446_vm1, %v1418_v54 }
 0x11e   : > { %v851_v53 = vmul.f32 1.442695, %v804_v7  ;;  %v802_v10 = vsub.f32 0.0, %v770_v11  ;;  %v4325_v0 = vadd.f32 %v3126_v35, %v4002_v58  ;;  %v775_v19 = vand.u32 2147483647, %v4318_v48 }
 0x11f   : > { %v1215_v29 = vsel %vm703_vm4, %v4041_v26, %v1183_v43  ;;  %v1213_v56 = vsel %vm701_vm7, %v4044_v41, %v1181_v62  ;;  %v969_v26 = vmul.f32 -0.5, %v4272_v37  ;;  %v4332_v42 = vadd.f32 %v4002_v58, %v601_v36 }
 0x120   : > { %1247 = vst.msk [vmem:[#allocation2 + $0x50] sm:$0xff] %vm451_vm0, %v1215_v29  ;;  %1245 = vst.msk [vmem:[#allocation2 + $0x40] sm:$0xff] %vm451_vm0, %v1213_v56  ;;  %3373 = vpow2.f32 %v851_v53  ;;  %v847_v40 = vmul.f32 1.442695, %v802_v10  ;;  %v990_v47 = vand.u32 2147483647, %v4251_v38  ;;  %v989_v45 = vmul.f32 %v4251_v38, %v988_v30  ;;  %v614_v53 = vpop.f32.mrf.mxu0 }
 0x121   : > { %v807_v46 = vsub.f32 0.0, %v775_v19  ;;  %v773_v51 = vand.u32 2147483647, %v4321_v34  ;;  %v672_v41 = vmax.f32 %v4058_v22, 0.0  ;;  %v776_v14 = vand.u32 2147483647, %v4325_v0  ;;  %v3173_v19 = vpop.f32.mrf.mxu1 }
 0x122   : > { %v4336_v63 = vpop.eup %3365  ;;  %3375 = vpow2.f32 %v847_v40  ;;  %v970_v21 = vadd.f32 1.0, %v969_v26  ;;  %v972_v5 = vand.u32 2147483647, %v4272_v37  ;;  %v774_v52 = vand.u32 2147483647, %v4332_v42  ;;  %1477 = vst.msk [vmem:[#allocation4 + $0xf0] sm:$0xff] %vm1446_vm1, %v3173_v19 }
 0x123   : > { %v3368_v35 = vpop.eup %3367  ;;  %v1011_v60 = vadd.f32 1.0, %v4336_v63  ;;  %v857_v39 = vmul.f32 1.442695, %v807_v46  ;;  %v805_v57 = vsub.f32 0.0, %v773_v51  ;;  %v808_v43 = vsub.f32 0.0, %v776_v14 }
 0x124   : > { %v986_v23 = vmul.f32 0.6931472, %v3368_v35  ;;  %vm704_vm8 = vcmp.ne.f32.partialorder %v4058_v22, %v4058_v22  ;;  %vm991_vm9 = vcmp.lt.f32.partialorder %v990_v47, 0.0004427343  ;;  %v4348_v38 = vadd.f32 %v3129_v1, %v4002_v58 }
 0x125   : > { %3377 = vlog2.f32 %v1011_v60  ;;  %v853_v7 = vmul.f32 1.442695, %v805_v57  ;;  %v859_v11 = vmul.f32 1.442695, %v808_v43  ;;  %v971_v36 = vmul.f32 %v4272_v37, %v970_v21 }
 0x126   : > { %v3370_v44 = vpop.eup %3369  ;;  %v992_v55 = vsel %vm991_vm9, %v989_v45, %v986_v23  ;;  %3379 = vpow2.f32 %v857_v39  ;;  %v806_v30 = vsub.f32 0.0, %v774_v52  ;;  %v670_v56 = vmax.f32 %v4087_v20, 0.0 }
 0x127   : > { %v1184_v29 = vadd.f32 %v992_v55, %v672_v41  ;;  %v968_v62 = vmul.f32 0.6931472, %v3370_v44  ;;  %vm973_vm10 = vcmp.lt.f32.partialorder %v972_v5, 0.0004427343  ;;  %3381 = vpow2.f32 %v853_v7  ;;  %v1431_v5 = vpop.f32.mrf.mxu1 }
 0x128   : > { %v4351_v10 = vpop.eup %3371  ;;  %v779_v26 = vand.u32 2147483647, %v4348_v38  ;;  %vm702_vm11 = vcmp.ne.f32.partialorder %v4087_v20, %v4087_v20  ;;  %3383 = vpow2.f32 %v859_v11  ;;  %v855_v51 = vmul.f32 1.442695, %v806_v30  ;;  %1475 = vst.msk [vmem:[#allocation4 + $0xe0] sm:$0xff] %vm1446_vm1, %v1431_v5 }
 0x129   : > { %v1216_v40 = vsel %vm704_vm8, %v4058_v22, %v1184_v29  ;;  %v974_v47 = vsel %vm973_vm10, %v971_v36, %v968_v62  ;;  %v993_v46 = vadd.f32 1.0, %v4351_v10  ;;  %v1014_v41 = vmul.f32 -0.5, %v4336_v63  ;;  %v3130_v22 = vpop.f32.mrf.mxu0  ;;  %v3174_v11 = vpop.f32.mrf.mxu1 }
 0x12a   : > { %1248 = vst.msk [vmem:[#allocation2 + $0x58] sm:$0xff] %vm451_vm0, %v1216_v40  ;;  %v1182_v37 = vadd.f32 %v974_v47, %v670_v56  ;;  %v811_v45 = vsub.f32 0.0, %v779_v26  ;;  %v4366_v14 = vadd.f32 %v4002_v58, %v614_v53  ;;  %v675_v35 = vmax.f32 %v4188_v49, 0.0 }
 0x12b   : > { %3385 = vlog2.f32 %v993_v46  ;;  %v996_v60 = vmul.f32 -0.5, %v4351_v10  ;;  %v4377_v57 = vadd.f32 %v3130_v22, %v4002_v58  ;;  %vm707_vm12 = vcmp.ne.f32.partialorder %v4188_v49, %v4188_v49  ;;  %1478 = vst.msk [vmem:[#allocation4 + $0xf8] sm:$0xff] %vm1446_vm1, %v3174_v11  ;;  %v617_v40 = vpop.f32.mrf.mxu0 }
 0x12c   : > { %v1214_v1 = vsel %vm702_vm11, %v4087_v20, %v1182_v37  ;;  %3387 = vpow2.f32 %v855_v51  ;;  %v865_v21 = vmul.f32 1.442695, %v811_v45  ;;  %v777_v23 = vand.u32 2147483647, %v4366_v14 }
 0x12d   : > { %v4369_v54 = vpop.eup %3373  ;;  %1246 = vst.msk [vmem:[#allocation2 + $0x48] sm:$0xff] %vm451_vm0, %v1214_v1  ;;  %v1015_v43 = vadd.f32 1.0, %v1014_v41  ;;  %v1017_v52 = vand.u32 2147483647, %v4336_v63  ;;  %v673_v44 = vmax.f32 %v4227_v50, 0.0  ;;  %v676_v55 = vmax.f32 %v4278_v61, 0.0  ;;  %v1434_v41 = vpop.f32.mrf.mxu1 }
 0x12e   : > { %v1020_v39 = vadd.f32 1.0, %v4369_v54  ;;  %3389 = vpow2.f32 %v865_v21  ;;  %v999_v29 = vand.u32 2147483647, %v4351_v10  ;;  %v1023_v62 = vmul.f32 -0.5, %v4369_v54  ;;  %1476 = vst.msk [vmem:[#allocation4 + $0xe8] sm:$0xff] %vm1446_vm1, %v1434_v41  ;;  %v3133_v11 = vpop.f32.mrf.mxu0 }
 0x12f   : > { %v4380_v20 = vpop.eup %3375  ;;  %v674_v36 = vmax.f32 %v4297_v59, 0.0  ;;  %v809_v30 = vsub.f32 0.0, %v777_v23  ;;  %v997_v56 = vadd.f32 1.0, %v996_v60  ;;  %v679_v26 = vmax.f32 %v4318_v48, 0.0 }
 0x130   : > { %3391 = vlog2.f32 %v1020_v39  ;;  %v1002_v7 = vadd.f32 1.0, %v4380_v20  ;;  %v780_v19 = vand.u32 2147483647, %v4377_v57  ;;  %v1016_v37 = vmul.f32 %v4336_v63, %v1015_v43 }
 0x131   : > { %vm1018_vm13 = vcmp.lt.f32.partialorder %v1017_v52, 0.0004427343  ;;  %v677_v51 = vmax.f32 %v4321_v34, 0.0  ;;  %v1026_v45 = vand.u32 2147483647, %v4369_v54  ;;  %vm705_vm14 = vcmp.ne.f32.partialorder %v4227_v50, %v4227_v50 }
 0x132   : > { %v3378_v53 = vpop.eup %3377  ;;  %3393 = vlog2.f32 %v1002_v7  ;;  %v861_v21 = vmul.f32 1.442695, %v809_v30  ;;  %vm4406_vm15 = vcmp.lt.f32.partialorder %v999_v29, 0.0004427343  ;;  %v1024_v39 = vadd.f32 1.0, %v1023_v62  ;;  %v3217_v30 = vpop.f32.mrf.mxu1 }
 0x133   : > { %v4394_v47 = vpop.eup %3379  ;;  %v1013_v46 = vmul.f32 0.6931472, %v3378_v53  ;;  %v998_v52 = vmul.f32 %v4351_v10, %v997_v56  ;;  %v812_v7 = vsub.f32 0.0, %v780_v19  ;;  %2453 = vst.msk [vmem:[#allocation5 + $0x10] sm:$0xff] %vm1446_vm1, %v3217_v30  ;;  %vm4422_vm2 = vcmp.lt.f32.partialorder %v1026_v45, 0.0004427343  ;;  %v630_v30 = vpop.f32.mrf.mxu0 }
 0x134   : > { %v1047_v22 = vadd.f32 1.0, %v4394_v47  ;;  %v4402_v5 = vpop.eup %3381  ;;  %v1008_v56 = vand.u32 2147483647, %v4380_v20  ;;  %vm708_vm3 = vcmp.ne.f32.partialorder %v4278_v61, %v4278_v61  ;;  %vm706_vm4 = vcmp.ne.f32.partialorder %v4297_v59, %v4297_v59 }
 0x135   : > { %v1019_v60 = vsel %vm1018_vm13, %v1016_v37, %v1013_v46  ;;  %v4412_v53 = vpop.eup %3383  ;;  %v1005_v46 = vmul.f32 -0.5, %v4380_v20  ;;  %v1050_v37 = vmul.f32 -0.5, %v4394_v47  ;;  %v1029_v29 = vadd.f32 1.0, %v4402_v5 }
 0x136   : > { %v1187_v43 = vadd.f32 %v1019_v60, %v675_v35  ;;  %3395 = vlog2.f32 %v1047_v22  ;;  %v1056_v19 = vadd.f32 1.0, %v4412_v53  ;;  %v4433_v60 = vadd.f32 %v4002_v58, %v617_v40 }
 0x137   : > { %3397 = vpow2.f32 %v861_v21  ;;  %v1025_v21 = vmul.f32 %v4369_v54, %v1024_v39  ;;  %v1051_v23 = vadd.f32 1.0, %v1050_v37  ;;  %v1053_v54 = vand.u32 2147483647, %v4394_v47  ;;  %v2324_v37 = vpop.f32.mrf.mxu1 }
 0x138   : > { %v3386_v62 = vpop.eup %3385  ;;  %v1219_v10 = vsel %vm707_vm12, %v4188_v49, %v1187_v43  ;;  %3399 = vlog2.f32 %v1029_v29  ;;  %v1032_v49 = vmul.f32 -0.5, %v4402_v5  ;;  %v867_v43 = vmul.f32 1.442695, %v812_v7  ;;  %2451 = vst.msk [vmem:[#allocation5] sm:$0xff] %vm1446_vm1, %v2324_v37 }
 0x139   : > { %v4428_v41 = vpop.eup %3387  ;;  %1251 = vst.msk [vmem:[#allocation2 + $0x70] sm:$0xff] %vm451_vm0, %v1219_v10  ;;  %v995_v22 = vmul.f32 0.6931472, %v3386_v62  ;;  %3401 = vlog2.f32 %v1056_v19  ;;  %v1006_v62 = vadd.f32 1.0, %v1005_v46  ;;  %v1035_v29 = vand.u32 2147483647, %v4402_v5 }
 0x13a   : > { %v1038_v45 = vadd.f32 1.0, %v4428_v41  ;;  %v1059_v7 = vmul.f32 -0.5, %v4412_v53  ;;  %vm4450_vm5 = vcmp.lt.f32.partialorder %v1008_v56, 0.0004427343  ;;  %v4456_v46 = vadd.f32 %v3133_v11, %v4002_v58 }
 0x13b   : > { %v1001_v10 = vsel %vm4406_vm15, %v998_v52, %v995_v22  ;;  %v4442_v39 = vpop.eup %3389  ;;  %v1007_v11 = vmul.f32 %v4380_v20, %v1006_v62  ;;  %v1052_v1 = vmul.f32 %v4394_v47, %v1051_v23  ;;  %vm4469_vm6 = vcmp.lt.f32.partialorder %v1053_v54, 0.0004427343  ;;  %v3134_v47 = vpop.f32.mrf.mxu0 }
 0x13c   : > { %v1185_v40 = vadd.f32 %v1001_v10, %v673_v44  ;;  %3403 = vlog2.f32 %v1038_v45  ;;  %v1083_v52 = vadd.f32 1.0, %v4442_v39  ;;  %v4459_v44 = vadd.f32 %v4002_v58, %v630_v30  ;;  %v3218_v23 = vpop.f32.mrf.mxu1 }
 0x13d   : > { %v3392_v19 = vpop.eup %3391  ;;  %v1033_v10 = vadd.f32 1.0, %v1032_v49  ;;  %3405 = vpow2.f32 %v867_v43  ;;  %vm711_vm7 = vcmp.ne.f32.partialorder %v4318_v48, %v4318_v48  ;;  %vm4477_vm8 = vcmp.lt.f32.partialorder %v1035_v29, 0.0004427343  ;;  %2454 = vst.msk [vmem:[#allocation5 + $0x18] sm:$0xff] %vm1446_vm1, %v3218_v23 }
 0x13e   : > { %v1217_v22 = vsel %vm705_vm14, %v4227_v50, %v1185_v40  ;;  %v1022_v45 = vmul.f32 0.6931472, %v3392_v19  ;;  %3407 = vlog2.f32 %v1083_v52  ;;  %v1060_v43 = vadd.f32 1.0, %v1059_v7  ;;  %v2327_v23 = vpop.f32.mrf.mxu1 }
 0x13f   : > { %v3394_v56 = vpop.eup %3393  ;;  %1249 = vst.msk [vmem:[#allocation2 + $0x60] sm:$0xff] %vm451_vm0, %v1217_v22  ;;  %v778_v20 = vand.u32 2147483647, %v4433_v60  ;;  %v1062_v54 = vand.u32 2147483647, %v4412_v53  ;;  %v1041_v35 = vmul.f32 -0.5, %v4428_v41  ;;  %v1034_v29 = vmul.f32 %v4402_v5, %v1033_v10 }
 0x140   : > { %v1028_v50 = vsel %vm4422_vm2, %v1025_v21, %v1022_v45  ;;  %v1004_v30 = vmul.f32 0.6931472, %v3394_v56  ;;  %v1086_v21 = vmul.f32 -0.5, %v4442_v39  ;;  %v783_v19 = vand.u32 2147483647, %v4456_v46  ;;  %2452 = vst.msk [vmem:[#allocation5 + $0x8] sm:$0xff] %vm1446_vm1, %v2327_v23 }
 0x141   : > { %v1188_v62 = vadd.f32 %v1028_v50, %v676_v55  ;;  %v810_v7 = vsub.f32 0.0, %v778_v20  ;;  %vm709_vm9 = vcmp.ne.f32.partialorder %v4321_v34, %v4321_v34  ;;  %v1044_v63 = vand.u32 2147483647, %v4428_v41 }
 0x142   : > { %v1010_v40 = vsel %vm4450_vm5, %v1007_v11, %v1004_v30  ;;  %v781_v22 = vand.u32 2147483647, %v4459_v44  ;;  %vm712_vm10 = vcmp.ne.f32.partialorder %v4325_v0, %v4325_v0  ;;  %v815_v56 = vsub.f32 0.0, %v783_v19 }
 0x143   : > { %v3396_v52 = vpop.eup %3395  ;;  %v1220_v55 = vsel %vm708_vm3, %v4278_v61, %v1188_v62  ;;  %v1186_v37 = vadd.f32 %v1010_v40, %v674_v36  ;;  %v1061_v61 = vmul.f32 %v4412_v53, %v1060_v43  ;;  %v863_v10 = vmul.f32 1.442695, %v810_v7  ;;  %v633_v36 = vpop.f32.mrf.mxu0  ;;  %v4522_v7 = vld [vmem:[%s3999_s11] ss:$0 sm:$0xff] }
 0x144   : > { %v4502_v5 = vpop.eup %3397  ;;  %1252 = vst.msk [vmem:[#allocation2 + $0x78] sm:$0xff] %vm451_vm0, %v1220_v55  ;;  %v1049_v45 = vmul.f32 0.6931472, %v3396_v52  ;;  %v1042_v50 = vadd.f32 1.0, %v1041_v35  ;;  %v1087_v30 = vadd.f32 1.0, %v1086_v21  ;;  %vm710_vm11 = vcmp.ne.f32.partialorder %v4332_v42, %v4332_v42 }
 0x145   : > { %v1218_v11 = vsel %vm706_vm4, %v4297_v59, %v1186_v37  ;;  %v1065_v20 = vadd.f32 1.0, %v4502_v5  ;;  %v3400_v62 = vpop.eup %3399  ;;  %3409 = vpow2.f32 %v863_v10  ;;  %v873_v43 = vmul.f32 1.442695, %v815_v56  ;;  %v3137_v55 = vpop.f32.mrf.mxu0 }
 0x146   : > { %1250 = vst.msk [vmem:[#allocation2 + $0x68] sm:$0xff] %vm451_vm0, %v1218_v11  ;;  %v1055_v53 = vsel %vm4469_vm6, %v1052_v1, %v1049_v45  ;;  %v813_v40 = vsub.f32 0.0, %v781_v22  ;;  %v3402_v59 = vpop.eup %3401  ;;  %v1031_v21 = vmul.f32 0.6931472, %v3400_v62  ;;  %v4525_v19 = vadd.f32 %v4522_v7, %v3134_v47 }
 0x147   : > { %v1191_v35 = vadd.f32 %v1055_v53, %v679_v26  ;;  %3411 = vlog2.f32 %v1065_v20  ;;  %v1058_v1 = vmul.f32 0.6931472, %v3402_v59  ;;  %vm4527_vm12 = vcmp.lt.f32.partialorder %v1062_v54, 0.0004427343  ;;  %v3221_v54 = vpop.f32.mrf.mxu1  ;;  %v646_v53 = vpop.f32.mrf.mxu0 }
 0x148   : > { %3413 = vpow2.f32 %v873_v43  ;;  %v869_v52 = vmul.f32 1.442695, %v813_v40  ;;  %v1037_v22 = vsel %vm4477_vm8, %v1034_v29, %v1031_v21  ;;  %v1043_v47 = vmul.f32 %v4428_v41, %v1042_v50  ;;  %2457 = vst.msk [vmem:[#allocation5 + $0x30] sm:$0xff] %vm1446_vm1, %v3221_v54 }
 0x149   : > { %v3404_v37 = vpop.eup %3403  ;;  %v1223_v26 = vsel %vm711_vm7, %v4318_v48, %v1191_v35  ;;  %v1089_v45 = vand.u32 2147483647, %v4442_v39  ;;  %v1189_v10 = vadd.f32 %v1037_v22, %v677_v51  ;;  %v1064_v56 = vsel %vm4527_vm12, %v1061_v61, %v1058_v1 }
 0x14a   : > { %1255 = vst.msk [vmem:[#allocation2 + $0x90] sm:$0xff] %vm451_vm0, %v1223_v26  ;;  %v1040_v11 = vmul.f32 0.6931472, %v3404_v37  ;;  %3415 = vpow2.f32 %v869_v52  ;;  %v4545_v48 = vpop.eup %3405  ;;  %v5622_v49 = vmax.f32 %v4325_v0, 0.0  ;;  %vm1045_vm13 = vcmp.lt.f32.partialorder %v1044_v63, 0.0004427343  ;;  %v3138_v52 = vpop.f32.mrf.mxu0 }
 0x14b   : > { %v1088_v29 = vmul.f32 %v4442_v39, %v1087_v30  ;;  %v784_v50 = vand.u32 2147483647, %v4525_v19  ;;  %v3408_v20 = vpop.eup %3407  ;;  %v1221_v51 = vsel %vm709_vm9, %v4321_v34, %v1189_v10  ;;  %v1092_v23 = vadd.f32 1.0, %v4545_v48 }
 0x14c   : > { %v1192_v41 = vadd.f32 %v1064_v56, %v5622_v49  ;;  %v1046_v61 = vsel %vm1045_vm13, %v1043_v47, %v1040_v11  ;;  %v4557_v62 = vadd.f32 %v4522_v7, %v633_v36  ;;  %1253 = vst.msk [vmem:[#allocation2 + $0x80] sm:$0xff] %vm451_vm0, %v1221_v51  ;;  %v5623_v63 = vmax.f32 %v4332_v42, 0.0 }
 0x14d   : > { %v1085_v43 = vmul.f32 0.6931472, %v3408_v20  ;;  %v1068_v34 = vmul.f32 -0.5, %v4502_v5  ;;  %v683_v40 = vmax.f32 %v4348_v38, 0.0  ;;  %vm1090_vm14 = vcmp.lt.f32.partialorder %v1089_v45, 0.0004427343 }
 0x14e   : > { %v1224_v39 = vsel %vm712_vm10, %v4325_v0, %v1192_v41  ;;  %v1190_v30 = vadd.f32 %v1046_v61, %v5623_v63  ;;  %3417 = vlog2.f32 %v1092_v23  ;;  %v816_v36 = vsub.f32 0.0, %v784_v50  ;;  %v2340_v0 = vpop.f32.mrf.mxu1  ;;  %v649_v41 = vpop.f32.mrf.mxu0 }
 0x14f   : > { %1256 = vst.msk [vmem:[#allocation2 + $0x98] sm:$0xff] %vm451_vm0, %v1224_v39  ;;  %v1091_v35 = vsel %vm1090_vm14, %v1088_v29, %v1085_v43  ;;  %v782_v58 = vand.u32 2147483647, %v4557_v62  ;;  %vm715_vm15 = vcmp.ne.f32.partialorder %v4348_v38, %v4348_v38  ;;  %v1069_v37 = vadd.f32 1.0, %v1068_v34 }
 0x150   : > { %v1222_v59 = vsel %vm710_vm11, %v4332_v42, %v1190_v30  ;;  %v1195_v21 = vadd.f32 %v1091_v35, %v683_v40  ;;  %v875_v1 = vmul.f32 1.442695, %v816_v36  ;;  %2455 = vst.msk [vmem:[#allocation5 + $0x20] sm:$0xff] %vm1446_vm1, %v2340_v0  ;;  %v1071_v26 = vand.u32 2147483647, %v4502_v5  ;;  %v3222_v54 = vpop.f32.mrf.mxu1 }
 0x151   : > { %1254 = vst.msk [vmem:[#allocation2 + $0x88] sm:$0xff] %vm451_vm0, %v1222_v59  ;;  %v4580_v22 = vadd.f32 %v4522_v7, %v3137_v55  ;;  %v814_v47 = vsub.f32 0.0, %v782_v58  ;;  %v4584_v45 = vadd.f32 %v4522_v7, %v646_v53  ;;  %v1095_v56 = vmul.f32 -0.5, %v4545_v48  ;;  %v4605_v40 = vld [vmem:[%s3999_s11 + $0x1] ss:$0 sm:$0xff] }
 0x152   : > { %v1227_v42 = vsel %vm715_vm15, %v4348_v38, %v1195_v21  ;;  %3419 = vpow2.f32 %v875_v1  ;;  %v4586_v10 = vpop.eup %3409  ;;  %2458 = vst.msk [vmem:[#allocation5 + $0x38] sm:$0xff] %vm1446_vm1, %v3222_v54  ;;  %v681_v50 = vmax.f32 %v4366_v14, 0.0  ;;  %v1070_v51 = vmul.f32 %v4502_v5, %v1069_v37  ;;  %v3181_v5 = vpop.f32.mrf.mxu0 }
 0x153   : > { %1259 = vst.msk [vmem:[#allocation2 + $0xb0] sm:$0xff] %vm451_vm0, %v1227_v42  ;;  %v787_v11 = vand.u32 2147483647, %v4580_v22  ;;  %v1074_v49 = vadd.f32 1.0, %v4586_v10  ;;  %v871_v38 = vmul.f32 1.442695, %v814_v47  ;;  %vm713_vm3 = vcmp.ne.f32.partialorder %v4366_v14, %v4366_v14  ;;  %v2343_v36 = vpop.f32.mrf.mxu1 }
 0x154   : > { %v3412_v55 = vpop.eup %3411  ;;  %vm1072_vm2 = vcmp.lt.f32.partialorder %v1071_v26, 0.0004427343  ;;  %v785_v53 = vand.u32 2147483647, %v4584_v45  ;;  %v1096_v30 = vadd.f32 1.0, %v1095_v56  ;;  %v684_v59 = vmax.f32 %v4377_v57, 0.0 }
 0x155   : > { %v4593_v29 = vpop.eup %3413  ;;  %v1067_v20 = vmul.f32 0.6931472, %v3412_v55  ;;  %3421 = vlog2.f32 %v1074_v49  ;;  %v819_v23 = vsub.f32 0.0, %v787_v11  ;;  %v1098_v35 = vand.u32 2147483647, %v4545_v48  ;;  %2456 = vst.msk [vmem:[#allocation5 + $0x28] sm:$0xff] %vm1446_vm1, %v2343_v36  ;;  %v3225_v55 = vpop.f32.mrf.mxu1 }
 0x156   : > { %v1119_v61 = vadd.f32 1.0, %v4593_v29  ;;  %3423 = vpow2.f32 %v871_v38  ;;  %v4610_v0 = vadd.f32 %v4522_v7, %v3138_v52  ;;  %v4613_v21 = vadd.f32 %v4522_v7, %v649_v41  ;;  %2461 = vst.msk [vmem:[#allocation5 + $0x50] sm:$0xff] %vm1446_vm1, %v3225_v55 }
 0x157   : > { %v4599_v39 = vpop.eup %3415  ;;  %v1073_v63 = vsel %vm1072_vm2, %v1070_v51, %v1067_v20  ;;  %v881_v58 = vmul.f32 1.442695, %v819_v23  ;;  %v817_v37 = vsub.f32 0.0, %v785_v53  ;;  %v1097_v42 = vmul.f32 %v4545_v48, %v1096_v30 }
 0x158   : > { %v1193_v43 = vadd.f32 %v1073_v63, %v681_v50  ;;  %3425 = vlog2.f32 %v1119_v61  ;;  %v1101_v34 = vadd.f32 1.0, %v4599_v39  ;;  %v682_v47 = vmax.f32 %v4433_v60, 0.0  ;;  %v1538_v50 = vpop.f32.mrf.mxu0 }
 0x159   : > { %v687_v52 = vmax.f32 %v4456_v46, 0.0  ;;  %v4622_v54 = vadd.f32 %v3181_v5, %v4605_v40  ;;  %v1077_v56 = vmul.f32 -0.5, %v4586_v10  ;;  %vm716_vm4 = vcmp.ne.f32.partialorder %v4377_v57, %v4377_v57 }
 0x15a   : > { %v1225_v1 = vsel %vm713_vm3, %v4366_v14, %v1193_v43  ;;  %3427 = vlog2.f32 %v1101_v34  ;;  %v877_v14 = vmul.f32 1.442695, %v817_v37  ;;  %vm1099_vm5 = vcmp.lt.f32.partialorder %v1098_v35, 0.0004427343 }
 0x15b   : > { %v3418_v26 = vpop.eup %3417  ;;  %1257 = vst.msk [vmem:[#allocation2 + $0xa0] sm:$0xff] %vm451_vm0, %v1225_v1  ;;  %3429 = vpow2.f32 %v881_v58  ;;  %v1080_v11 = vand.u32 2147483647, %v4586_v10  ;;  %v788_v48 = vand.u32 2147483647, %v4610_v0  ;;  %v1122_v38 = vmul.f32 -0.5, %v4593_v29 }
 0x15c   : > { %v1094_v7 = vmul.f32 0.6931472, %v3418_v26  ;;  %3431 = vpow2.f32 %v877_v14  ;;  %v786_v41 = vand.u32 2147483647, %v4613_v21  ;;  %v1104_v61 = vmul.f32 -0.5, %v4599_v39 }
 0x15d   : > { %v820_v23 = vsub.f32 0.0, %v788_v48  ;;  %v1763_v53 = vand.u32 2147483647, %v4622_v54  ;;  %vm714_vm6 = vcmp.ne.f32.partialorder %v4433_v60, %v4433_v60  ;;  %v1078_v63 = vadd.f32 1.0, %v1077_v56  ;;  %v2356_v56 = vpop.f32.mrf.mxu1 }
 0x15e   : > { %v1100_v49 = vsel %vm1099_vm5, %v1097_v42, %v1094_v7  ;;  %v1125_v30 = vand.u32 2147483647, %v4593_v29  ;;  %v818_v34 = vsub.f32 0.0, %v786_v41  ;;  %v4645_v35 = vadd.f32 %v4605_v40, %v1538_v50  ;;  %2459 = vst.msk [vmem:[#allocation5 + $0x40] sm:$0xff] %vm1446_vm1, %v2356_v56 }
 0x15f   : > { %v4632_v20 = vpop.eup %3419  ;;  %v1196_v51 = vadd.f32 %v1100_v49, %v684_v59  ;;  %v883_v36 = vmul.f32 1.442695, %v820_v23  ;;  %v1795_v59 = vsub.f32 0.0, %v1763_v53  ;;  %vm719_vm7 = vcmp.ne.f32.partialorder %v4456_v46, %v4456_v46 }
 0x160   : > { %v1128_v43 = vadd.f32 1.0, %v4632_v20  ;;  %v1123_v1 = vadd.f32 1.0, %v1122_v38  ;;  %v685_v58 = vmax.f32 %v4459_v44, 0.0  ;;  %v879_v37 = vmul.f32 1.442695, %v818_v34  ;;  %v3182_v38 = vpop.f32.mrf.mxu0 }
 0x161   : > { %v1228_v5 = vsel %vm716_vm4, %v4377_v57, %v1196_v51  ;;  %vm4651_vm8 = vcmp.lt.f32.partialorder %v1080_v11, 0.0004427343  ;;  %v1105_v57 = vadd.f32 1.0, %v1104_v61  ;;  %v1829_v7 = vmul.f32 1.442695, %v1795_v59  ;;  %v3226_v61 = vpop.f32.mrf.mxu1 }
 0x162   : > { %1260 = vst.msk [vmem:[#allocation2 + $0xb8] sm:$0xff] %vm451_vm0, %v1228_v5  ;;  %3433 = vlog2.f32 %v1128_v43  ;;  %v3422_v26 = vpop.eup %3421  ;;  %v1079_v55 = vmul.f32 %v4586_v10, %v1078_v63  ;;  %v1761_v49 = vand.u32 2147483647, %v4645_v35  ;;  %vm4660_vm9 = vcmp.lt.f32.partialorder %v1125_v30, 0.0004427343  ;;  %v1541_v56 = vpop.f32.mrf.mxu0 }
 0x163   : > { %3435 = vpow2.f32 %v883_v36  ;;  %v4655_v14 = vpop.eup %3423  ;;  %v1076_v48 = vmul.f32 0.6931472, %v3422_v26  ;;  %v1107_v50 = vand.u32 2147483647, %v4599_v39  ;;  %v1124_v53 = vmul.f32 %v4593_v29, %v1123_v1  ;;  %2462 = vst.msk [vmem:[#allocation5 + $0x58] sm:$0xff] %vm1446_vm1, %v3226_v61 }
 0x164   : > { %3437 = vpow2.f32 %v879_v37  ;;  %v1110_v51 = vadd.f32 1.0, %v4655_v14  ;;  %v1793_v63 = vsub.f32 0.0, %v1761_v49  ;;  %v1106_v34 = vmul.f32 %v4599_v39, %v1105_v57  ;;  %v2359_v49 = vpop.f32.mrf.mxu1 }
 0x165   : > { %v3426_v41 = vpop.eup %3425  ;;  %3439 = vpow2.f32 %v1829_v7  ;;  %v1082_v10 = vsel %vm4651_vm8, %v1079_v55, %v1076_v48  ;;  %v4674_v5 = vadd.f32 %v3182_v38, %v4605_v40  ;;  %v1131_v37 = vmul.f32 -0.5, %v4632_v20  ;;  %2460 = vst.msk [vmem:[#allocation5 + $0x48] sm:$0xff] %vm1446_vm1, %v2359_v49 }
 0x166   : > { %v1121_v23 = vmul.f32 0.6931472, %v3426_v41  ;;  %v1194_v30 = vadd.f32 %v1082_v10, %v682_v47  ;;  %3441 = vlog2.f32 %v1110_v51  ;;  %v1825_v29 = vmul.f32 1.442695, %v1793_v63  ;;  %v3229_v63 = vpop.f32.mrf.mxu1 }
 0x167   : > { %v3428_v43 = vpop.eup %3427  ;;  %vm717_vm10 = vcmp.ne.f32.partialorder %v4459_v44, %v4459_v44  ;;  %vm1108_vm11 = vcmp.lt.f32.partialorder %v1107_v50, 0.0004427343  ;;  %v688_v42 = vmax.f32 %v4525_v19, 0.0  ;;  %v1113_v57 = vmul.f32 -0.5, %v4655_v14  ;;  %2465 = vst.msk [vmem:[#allocation5 + $0x70] sm:$0xff] %vm1446_vm1, %v3229_v63 }
 0x168   : > { %v1127_v36 = vsel %vm4660_vm9, %v1124_v53, %v1121_v23  ;;  %v1103_v59 = vmul.f32 0.6931472, %v3428_v43  ;;  %v4679_v1 = vpop.eup %3429  ;;  %v1226_v47 = vsel %vm714_vm6, %v4433_v60, %v1194_v30  ;;  %3443 = vpow2.f32 %v1825_v29  ;;  %v3185_v53 = vpop.f32.mrf.mxu0 }
 0x169   : > { %v1199_v39 = vadd.f32 %v1127_v36, %v687_v52  ;;  %1258 = vst.msk [vmem:[#allocation2 + $0xa8] sm:$0xff] %vm451_vm0, %v1226_v47  ;;  %v1155_v7 = vadd.f32 1.0, %v4679_v1  ;;  %v4693_v48 = vpop.eup %3431  ;;  %v1764_v55 = vand.u32 2147483647, %v4674_v5  ;;  %vm720_vm12 = vcmp.ne.f32.partialorder %v4525_v19, %v4525_v19 }
 0x16a   : > { %v1109_v26 = vsel %vm1108_vm11, %v1106_v34, %v1103_v59  ;;  %v1132_v38 = vadd.f32 1.0, %v1131_v37  ;;  %v686_v41 = vmax.f32 %v4557_v62, 0.0  ;;  %v1137_v11 = vadd.f32 1.0, %v4693_v48 }
 0x16b   : > { %v1231_v60 = vsel %vm719_vm7, %v4456_v46, %v1199_v39  ;;  %v1197_v52 = vadd.f32 %v1109_v26, %v685_v58  ;;  %3445 = vlog2.f32 %v1155_v7  ;;  %v1134_v58 = vand.u32 2147483647, %v4632_v20  ;;  %v2372_v26 = vpop.f32.mrf.mxu1 }
 0x16c   : > { %1263 = vst.msk [vmem:[#allocation2 + $0xd0] sm:$0xff] %vm451_vm0, %v1231_v60  ;;  %v1116_v50 = vand.u32 2147483647, %v4655_v14  ;;  %v691_v51 = vmax.f32 %v4580_v22, 0.0  ;;  %v1158_v61 = vmul.f32 -0.5, %v4679_v1  ;;  %v689_v10 = vmax.f32 %v4584_v45, 0.0 }
 0x16d   : > { %v1229_v46 = vsel %vm717_vm10, %v4459_v44, %v1197_v52  ;;  %3447 = vlog2.f32 %v1137_v11  ;;  %v4717_v23 = vadd.f32 %v4605_v40, %v1541_v56  ;;  %v1114_v44 = vadd.f32 1.0, %v1113_v57  ;;  %2463 = vst.msk [vmem:[#allocation5 + $0x60] sm:$0xff] %vm1446_vm1, %v2372_v26  ;;  %v1554_v11 = vpop.f32.mrf.mxu0 }
 0x16e   : > { %1261 = vst.msk [vmem:[#allocation2 + $0xc0] sm:$0xff] %vm451_vm0, %v1229_v46  ;;  %v692_v30 = vmax.f32 %v4610_v0, 0.0  ;;  %v690_v34 = vmax.f32 %v4613_v21, 0.0  ;;  %v1796_v36 = vsub.f32 0.0, %v1764_v55  ;;  %v1133_v29 = vmul.f32 %v4632_v20, %v1132_v38  ;;  %v3230_v46 = vpop.f32.mrf.mxu1 }
 0x16f   : > { %v3434_v43 = vpop.eup %3433  ;;  %v1161_v47 = vand.u32 2147483647, %v4679_v1  ;;  %v1667_v39 = vmax.f32 %v4622_v54, 0.0  ;;  %vm1135_vm13 = vcmp.lt.f32.partialorder %v1134_v58, 0.0004427343  ;;  %vm718_vm14 = vcmp.ne.f32.partialorder %v4557_v62, %v4557_v62  ;;  %2466 = vst.msk [vmem:[#allocation5 + $0x78] sm:$0xff] %vm1446_vm1, %v3230_v46 }
 0x170   : > { %v4722_v59 = vpop.eup %3435  ;;  %v1130_v37 = vmul.f32 0.6931472, %v3434_v43  ;;  %vm4731_vm15 = vcmp.lt.f32.partialorder %v1116_v50, 0.0004427343  ;;  %v1140_v56 = vmul.f32 -0.5, %v4693_v48  ;;  %v1159_v55 = vadd.f32 1.0, %v1158_v61 }
 0x171   : > { %v4727_v7 = vpop.eup %3437  ;;  %v1164_v60 = vadd.f32 1.0, %v4722_v59  ;;  %v1762_v38 = vand.u32 2147483647, %v4717_v23  ;;  %v1115_v50 = vmul.f32 %v4655_v14, %v1114_v44  ;;  %v1831_v63 = vmul.f32 1.442695, %v1796_v36 }
 0x172   : > { %v4738_v20 = vpop.eup %3439  ;;  %v1136_v52 = vsel %vm1135_vm13, %v1133_v29, %v1130_v37  ;;  %v1146_v49 = vadd.f32 1.0, %v4727_v7  ;;  %vm4744_vm2 = vcmp.lt.f32.partialorder %v1161_v47, 0.0004427343  ;;  %v1143_v61 = vand.u32 2147483647, %v4693_v48  ;;  %v2375_v29 = vpop.f32.mrf.mxu1 }
 0x173   : > { %v1200_v58 = vadd.f32 %v1136_v52, %v688_v42  ;;  %3449 = vlog2.f32 %v1164_v60  ;;  %v3442_v43 = vpop.eup %3441  ;;  %v1907_v37 = vadd.f32 1.0, %v4738_v20  ;;  %v1141_v44 = vadd.f32 1.0, %v1140_v56  ;;  %2464 = vst.msk [vmem:[#allocation5 + $0x68] sm:$0xff] %vm1446_vm1, %v2375_v29 }
 0x174   : > { %3451 = vlog2.f32 %v1146_v49  ;;  %v1112_v42 = vmul.f32 0.6931472, %v3442_v43  ;;  %v1167_v36 = vmul.f32 -0.5, %v4722_v59  ;;  %vm723_vm3 = vcmp.ne.f32.partialorder %v4580_v22, %v4580_v22  ;;  %v3186_v49 = vpop.f32.mrf.mxu0 }
 0x175   : > { %v1232_v14 = vsel %vm720_vm12, %v4525_v19, %v1200_v58  ;;  %v1160_v47 = vmul.f32 %v4679_v1, %v1159_v55  ;;  %3453 = vlog2.f32 %v1907_v37  ;;  %v1794_v60 = vsub.f32 0.0, %v1762_v38  ;;  %v3233_v19 = vpop.f32.mrf.mxu1  ;;  %v4768_v43 = vpop.eup %3443 }
 0x176   : > { %1264 = vst.msk [vmem:[#allocation2 + $0xd8] sm:$0xff] %vm451_vm0, %v1232_v14  ;;  %v4761_v52 = vadd.f32 %v3185_v53, %v4605_v40  ;;  %v1118_v56 = vsel %vm4731_vm15, %v1115_v50, %v1112_v42  ;;  %v1170_v46 = vand.u32 2147483647, %v4722_v59  ;;  %v1149_v58 = vmul.f32 -0.5, %v4727_v7  ;;  %v1557_v42 = vpop.f32.mrf.mxu0 }
 0x177   : > { %3455 = vpow2.f32 %v1831_v63  ;;  %2469 = vst.msk [vmem:[#allocation5 + $0x90] sm:$0xff] %vm1446_vm1, %v3233_v19  ;;  %v1198_v1 = vadd.f32 %v1118_v56, %v686_v41  ;;  %vm721_vm4 = vcmp.ne.f32.partialorder %v4584_v45, %v4584_v45  ;;  %vm4774_vm5 = vcmp.lt.f32.partialorder %v1143_v61, 0.0004427343  ;;  %v2388_v38 = vpop.f32.mrf.mxu1 }
 0x178   : > { %v1827_v57 = vmul.f32 1.442695, %v1794_v60  ;;  %v4779_v55 = vadd.f32 %v4605_v40, %v1554_v11  ;;  %v3446_v50 = vpop.eup %3445  ;;  %v1142_v63 = vmul.f32 %v4693_v48, %v1141_v44  ;;  %v1168_v37 = vadd.f32 1.0, %v1167_v36  ;;  %2467 = vst.msk [vmem:[#allocation5 + $0x80] sm:$0xff] %vm1446_vm1, %v2388_v38 }
 0x179   : > { %v1152_v29 = vand.u32 2147483647, %v4727_v7  ;;  %v1889_v41 = vadd.f32 1.0, %v4768_v43  ;;  %v1230_v61 = vsel %vm718_vm14, %v4557_v62, %v1198_v1  ;;  %v1157_v14 = vmul.f32 0.6931472, %v3446_v50  ;;  %v3234_v60 = vpop.f32.mrf.mxu1 }
 0x17a   : > { %3457 = vpow2.f32 %v1827_v57  ;;  %v1767_v11 = vand.u32 2147483647, %v4761_v52  ;;  %v3448_v19 = vpop.eup %3447  ;;  %1262 = vst.msk [vmem:[#allocation2 + $0xc8] sm:$0xff] %vm451_vm0, %v1230_v61  ;;  %vm4791_vm6 = vcmp.lt.f32.partialorder %v1170_v46, 0.0004427343  ;;  %v1150_v44 = vadd.f32 1.0, %v1149_v58  ;;  %v3189_v61 = vpop.f32.mrf.mxu0 }
 0x17b   : > { %v1910_v36 = vmul.f32 -0.5, %v4738_v20  ;;  %3459 = vlog2.f32 %v1889_v41  ;;  %2470 = vst.msk [vmem:[#allocation5 + $0x98] sm:$0xff] %vm1446_vm1, %v3234_v60  ;;  %v1163_v62 = vsel %vm4744_vm2, %v1160_v47, %v1157_v14  ;;  %v1139_v56 = vmul.f32 0.6931472, %v3448_v19  ;;  %v2391_v38 = vpop.f32.mrf.mxu1 }
 0x17c   : > { %v1913_v1 = vand.u32 2147483647, %v4738_v20  ;;  %v1799_v57 = vsub.f32 0.0, %v1767_v11  ;;  %v1203_v46 = vadd.f32 %v1163_v62, %v691_v51  ;;  %vm724_vm7 = vcmp.ne.f32.partialorder %v4610_v0, %v4610_v0  ;;  %2468 = vst.msk [vmem:[#allocation5 + $0x88] sm:$0xff] %vm1446_vm1, %v2391_v38 }
 0x17d   : > { %vm4804_vm8 = vcmp.lt.f32.partialorder %v1152_v29, 0.0004427343  ;;  %v1765_v50 = vand.u32 2147483647, %v4779_v55  ;;  %v4810_v26 = vadd.f32 %v3186_v49, %v4605_v40  ;;  %v1145_v47 = vsel %vm4774_vm5, %v1142_v63, %v1139_v56  ;;  %v3237_v14 = vpop.f32.mrf.mxu1 }
 0x17e   : > { %v1169_v41 = vmul.f32 %v4722_v59, %v1168_v37  ;;  %vm722_vm9 = vcmp.ne.f32.partialorder %v4613_v21, %v4613_v21  ;;  %v1837_v51 = vmul.f32 1.442695, %v1799_v57  ;;  %v4819_v29 = vadd.f32 %v4605_v40, %v1557_v42  ;;  %2473 = vst.msk [vmem:[#allocation5 + $0xb0] sm:$0xff] %vm1446_vm1, %v3237_v14  ;;  %v1570_v14 = vpop.f32.mrf.mxu0 }
 0x17f   : > { %v1235_v49 = vsel %vm723_vm3, %v4580_v22, %v1203_v46  ;;  %v1201_v53 = vadd.f32 %v1145_v47, %v689_v10  ;;  %v1911_v63 = vadd.f32 1.0, %v1910_v36  ;;  %v1797_v11 = vsub.f32 0.0, %v1765_v50  ;;  %v2404_v22 = vpop.f32.mrf.mxu1 }
 0x180   : > { %v3450_v59 = vpop.eup %3449  ;;  %1267 = vst.msk [vmem:[#allocation2 + $0xf0] sm:$0xff] %vm451_vm0, %v1235_v49  ;;  %vm4829_vm10 = vcmp.lt.f32.partialorder %v1913_v1, 0.0004427343  ;;  %v1892_v42 = vmul.f32 -0.5, %v4768_v43  ;;  %3461 = vpow2.f32 %v1837_v51  ;;  %v1768_v60 = vand.u32 2147483647, %v4810_v26 }
 0x181   : > { %v3452_v19 = vpop.eup %3451  ;;  %v1233_v10 = vsel %vm721_vm4, %v4584_v45, %v1201_v53  ;;  %v1166_v36 = vmul.f32 0.6931472, %v3450_v59  ;;  %v1833_v62 = vmul.f32 1.442695, %v1797_v11  ;;  %v4840_v56 = vadd.f32 %v3189_v61, %v4605_v40  ;;  %2471 = vst.msk [vmem:[#allocation5 + $0xa0] sm:$0xff] %vm1446_vm1, %v2404_v22  ;;  %v3238_v50 = vpop.f32.mrf.mxu1 }
 0x182   : > { %1265 = vst.msk [vmem:[#allocation2 + $0xe0] sm:$0xff] %vm451_vm0, %v1233_v10  ;;  %v1148_v1 = vmul.f32 0.6931472, %v3452_v19  ;;  %v1151_v57 = vmul.f32 %v4727_v7, %v1150_v44  ;;  %v1800_v38 = vsub.f32 0.0, %v1768_v60  ;;  %v1766_v46 = vand.u32 2147483647, %v4819_v29  ;;  %v3454_v47 = vpop.eup %3453 }
 0x183   : > { %v1172_v45 = vsel %vm4791_vm6, %v1169_v41, %v1166_v36  ;;  %v1912_v51 = vmul.f32 %v4738_v20, %v1911_v63  ;;  %v1895_v61 = vand.u32 2147483647, %v4768_v43  ;;  %3463 = vpow2.f32 %v1833_v62  ;;  %2474 = vst.msk [vmem:[#allocation5 + $0xb8] sm:$0xff] %vm1446_vm1, %v3238_v50  ;;  %v2407_v48 = vpop.f32.mrf.mxu1 }
 0x184   : > { %v4851_v49 = vpop.eup %3455  ;;  %v1204_v7 = vadd.f32 %v1172_v45, %v692_v30  ;;  %v1154_v44 = vsel %vm4804_vm8, %v1151_v57, %v1148_v1  ;;  %v1909_v53 = vmul.f32 0.6931472, %v3454_v47  ;;  %v1839_v11 = vmul.f32 1.442695, %v1800_v38  ;;  %2472 = vst.msk [vmem:[#allocation5 + $0xa8] sm:$0xff] %vm1446_vm1, %v2407_v48 }
 0x185   : > { %v1202_v20 = vadd.f32 %v1154_v44, %v690_v34  ;;  %v1893_v41 = vadd.f32 1.0, %v1892_v42  ;;  %v1916_v63 = vadd.f32 1.0, %v4851_v49  ;;  %v1771_v59 = vand.u32 2147483647, %v4840_v56  ;;  %v3241_v22 = vpop.f32.mrf.mxu1 }
 0x186   : > { %v1236_v30 = vsel %vm724_vm7, %v4610_v0, %v1204_v7  ;;  %v1915_v58 = vsel %vm4829_vm10, %v1912_v51, %v1909_v53  ;;  %3465 = vpow2.f32 %v1839_v11  ;;  %v1798_v60 = vsub.f32 0.0, %v1766_v46  ;;  %v3190_v0 = vpop.f32.mrf.mxu0  ;;  %2477 = vst.msk [vmem:[#allocation5 + $0xd0] sm:$0xff] %vm1446_vm1, %v3241_v22 }
 0x187   : > { %v4868_v19 = vpop.eup %3457  ;;  %1268 = vst.msk [vmem:[#allocation2 + $0xf8] sm:$0xff] %vm451_vm0, %v1236_v30  ;;  %v1234_v34 = vsel %vm722_vm9, %v4613_v21, %v1202_v20  ;;  %v2179_v42 = vadd.f32 %v1915_v58, %v1667_v39  ;;  %3467 = vlog2.f32 %v1916_v63  ;;  %vm1699_vm11 = vcmp.ne.f32.partialorder %v4622_v54, %v4622_v54  ;;  %v2420_v62 = vpop.f32.mrf.mxu1 }
 0x188   : > { %v3460_v37 = vpop.eup %3459  ;;  %1266 = vst.msk [vmem:[#allocation2 + $0xe8] sm:$0xff] %vm451_vm0, %v1234_v34  ;;  %v1665_v10 = vmax.f32 %v4645_v35, 0.0  ;;  %v1898_v36 = vadd.f32 1.0, %v4868_v19  ;;  %v1894_v39 = vmul.f32 %v4768_v43, %v1893_v41  ;;  %v1835_v57 = vmul.f32 1.442695, %v1798_v60  ;;  %v1573_v43 = vpop.f32.mrf.mxu0 }
 0x189   : > { %v2211_v21 = vsel %vm1699_vm11, %v4622_v54, %v2179_v42  ;;  %v1891_v1 = vmul.f32 0.6931472, %v3460_v37  ;;  %2475 = vst.msk [vmem:[#allocation5 + $0xc0] sm:$0xff] %vm1446_vm1, %v2420_v62  ;;  %vm1896_vm12 = vcmp.lt.f32.partialorder %v1895_v61, 0.0004427343  ;;  %v1919_v38 = vmul.f32 -0.5, %v4851_v49  ;;  %v3242_v50 = vpop.f32.mrf.mxu1 }
 0x18a   : > { %2243 = vst.msk [vmem:[#allocation3 + $0x10] sm:$0xff] %vm451_vm0, %v2211_v21  ;;  %3469 = vlog2.f32 %v1898_v36  ;;  %v1803_v46 = vsub.f32 0.0, %v1771_v59  ;;  %v4889_v45 = vadd.f32 %v4605_v40, %v1570_v14  ;;  %v4892_v54 = vadd.f32 %v3190_v0, %v4605_v40  ;;  %v3193_v42 = vpop.f32.mrf.mxu0 }
 0x18b   : > { %v1897_v47 = vsel %vm1896_vm12, %v1894_v39, %v1891_v1  ;;  %3471 = vpow2.f32 %v1835_v57  ;;  %2478 = vst.msk [vmem:[#allocation5 + $0xd8] sm:$0xff] %vm1446_vm1, %v3242_v50  ;;  %v2423_v44 = vpop.f32.mrf.mxu1  ;;  %vm1697_vm13 = vcmp.ne.f32.partialorder %v4645_v35, %v4645_v35  ;;  %v4904_v48 = vadd.f32 %v4605_v40, %v1573_v43 }
 0x18c   : > { %v2177_v51 = vadd.f32 %v1897_v47, %v1665_v10  ;;  %v1845_v7 = vmul.f32 1.442695, %v1803_v46  ;;  %v1769_v53 = vand.u32 2147483647, %v4889_v45  ;;  %2476 = vst.msk [vmem:[#allocation5 + $0xc8] sm:$0xff] %vm1446_vm1, %v2423_v44  ;;  %v1920_v41 = vadd.f32 1.0, %v1919_v38 }
 0x18d   : > { %v4895_v61 = vpop.eup %3461  ;;  %v3245_v20 = vpop.f32.mrf.mxu1  ;;  %v1772_v59 = vand.u32 2147483647, %v4892_v54  ;;  %v1901_v58 = vmul.f32 -0.5, %v4868_v19  ;;  %v1668_v60 = vmax.f32 %v4674_v5, 0.0  ;;  %vm1700_vm14 = vcmp.ne.f32.partialorder %v4674_v5, %v4674_v5 }
 0x18e   : > { %v2209_v14 = vsel %vm1697_vm13, %v4645_v35, %v2177_v51  ;;  %v1943_v11 = vadd.f32 1.0, %v4895_v61  ;;  %3473 = vpow2.f32 %v1845_v7  ;;  %v1801_v63 = vsub.f32 0.0, %v1769_v53  ;;  %2481 = vst.msk [vmem:[#allocation5 + $0xf0] sm:$0xff] %vm1446_vm1, %v3245_v20 }
 0x18f   : > { %2241 = vst.msk [vmem:[#allocation3] sm:$0xff] %vm451_vm0, %v2209_v14  ;;  %v2436_v35 = vpop.f32.mrf.mxu1  ;;  %v1922_v0 = vand.u32 2147483647, %v4851_v49  ;;  %v1804_v37 = vsub.f32 0.0, %v1772_v59  ;;  %v1770_v10 = vand.u32 2147483647, %v4904_v48  ;;  %v1921_v21 = vmul.f32 %v4851_v49, %v1920_v41  ;;  %v1586_v41 = vpop.f32.mrf.mxu0 }
 0x190   : > { %v4909_v30 = vpop.eup %3463  ;;  %3475 = vlog2.f32 %v1943_v11  ;;  %v1841_v34 = vmul.f32 1.442695, %v1801_v63  ;;  %2479 = vst.msk [vmem:[#allocation5 + $0xe0] sm:$0xff] %vm1446_vm1, %v2436_v35  ;;  %v1666_v1 = vmax.f32 %v4717_v23, 0.0  ;;  %v1904_v39 = vand.u32 2147483647, %v4868_v19 }
 0x191   : > { %v1925_v22 = vadd.f32 1.0, %v4909_v30  ;;  %v3246_v36 = vpop.f32.mrf.mxu1  ;;  %v1902_v38 = vadd.f32 1.0, %v1901_v58  ;;  %v4927_v50 = vadd.f32 %v3193_v42, %v4605_v40  ;;  %v1946_v51 = vmul.f32 -0.5, %v4895_v61 }
 0x192   : > { %2482 = vst.msk [vmem:[#allocation5 + $0xf8] sm:$0xff] %vm1446_vm1, %v3246_v36  ;;  %v1847_v49 = vmul.f32 1.442695, %v1804_v37  ;;  %v1802_v7 = vsub.f32 0.0, %v1770_v10  ;;  %vm1923_vm15 = vcmp.lt.f32.partialorder %v1922_v0, 0.0004427343  ;;  %vm1698_vm2 = vcmp.ne.f32.partialorder %v4717_v23, %v4717_v23 }
 0x193   : > { %v4919_v62 = vpop.eup %3465  ;;  %3477 = vlog2.f32 %v1925_v22  ;;  %v2439_v47 = vpop.f32.mrf.mxu1  ;;  %v1671_v44 = vmax.f32 %v4761_v52, 0.0  ;;  %vm4934_vm3 = vcmp.lt.f32.partialorder %v1904_v39, 0.0004427343  ;;  %v1903_v35 = vmul.f32 %v4868_v19, %v1902_v38 }
 0x194   : > { %v3468_v57 = vpop.eup %3467  ;;  %v1952_v46 = vadd.f32 1.0, %v4919_v62  ;;  %3479 = vpow2.f32 %v1841_v34  ;;  %2480 = vst.msk [vmem:[#allocation5 + $0xe8] sm:$0xff] %vm1446_vm1, %v2439_v47  ;;  %v1843_v20 = vmul.f32 1.442695, %v1802_v7  ;;  %v1775_v22 = vand.u32 2147483647, %v4927_v50 }
 0x195   : > { %v1918_v43 = vmul.f32 0.6931472, %v3468_v57  ;;  %v1947_v34 = vadd.f32 1.0, %v1946_v51  ;;  %v1928_v42 = vmul.f32 -0.5, %v4909_v30  ;;  %vm1703_vm1 = vcmp.ne.f32.partialorder %v4761_v52, %v4761_v52 }
 0x196   : > { %3481 = vlog2.f32 %v1952_v46  ;;  %v1807_v19 = vsub.f32 0.0, %v1775_v22  ;;  %v1955_v39 = vmul.f32 -0.5, %v4919_v62  ;;  %v1672_v38 = vmax.f32 %v4810_v26, 0.0 }
 0x197   : > { %v3470_v53 = vpop.eup %3469  ;;  %v1924_v14 = vsel %vm1923_vm15, %v1921_v21, %v1918_v43  ;;  %3483 = vpow2.f32 %v1847_v49  ;;  %v1949_v21 = vand.u32 2147483647, %v4895_v61  ;;  %v3194_v43 = vpop.f32.mrf.mxu0  ;;  %vm1701_vm4 = vcmp.ne.f32.partialorder %v4779_v55, %v4779_v55 }
 0x198   : > { %v4938_v63 = vpop.eup %3471  ;;  %v2180_v59 = vadd.f32 %v1924_v14, %v1668_v60  ;;  %v1900_v58 = vmul.f32 0.6931472, %v3470_v53  ;;  %3485 = vpow2.f32 %v1843_v20  ;;  %v4953_v60 = vadd.f32 %v4605_v40, %v1586_v41 }
 0x199   : > { %v1934_v0 = vadd.f32 1.0, %v4938_v63  ;;  %v1853_v46 = vmul.f32 1.442695, %v1807_v19  ;;  %v1929_v49 = vadd.f32 1.0, %v1928_v42  ;;  %v1931_v7 = vand.u32 2147483647, %v4909_v30  ;;  %v1589_v19 = vpop.f32.mrf.mxu0 }
 0x19a   : > { %v2212_v37 = vsel %vm1700_vm14, %v4674_v5, %v2180_v59  ;;  %v1906_v10 = vsel %vm4934_vm3, %v1903_v35, %v1900_v58  ;;  %v1669_v5 = vmax.f32 %v4779_v55, 0.0  ;;  %v1773_v47 = vand.u32 2147483647, %v4953_v60 }
 0x19b   : > { %2244 = vst.msk [vmem:[#allocation3 + $0x18] sm:$0xff] %vm451_vm0, %v2212_v37  ;;  %v2178_v36 = vadd.f32 %v1906_v10, %v1666_v1  ;;  %3487 = vlog2.f32 %v1934_v0  ;;  %v4958_v57 = vpop.eup %3473  ;;  %v1948_v11 = vmul.f32 %v4895_v61, %v1947_v34  ;;  %vm1950_vm5 = vcmp.lt.f32.partialorder %v1949_v21, 0.0004427343 }
 0x19c   : > { %v1979_v53 = vadd.f32 1.0, %v4958_v57  ;;  %3489 = vpow2.f32 %v1853_v46  ;;  %v1805_v20 = vsub.f32 0.0, %v1773_v47  ;;  %v1956_v41 = vadd.f32 1.0, %v1955_v39 }
 0x19d   : > { %v3476_v51 = vpop.eup %3475  ;;  %v2210_v1 = vsel %vm1698_vm2, %v4717_v23, %v2178_v36  ;;  %v4974_v23 = vadd.f32 %v3194_v43, %v4605_v40  ;;  %vm1704_vm6 = vcmp.ne.f32.partialorder %v4810_v26, %v4810_v26  ;;  %v1958_v35 = vand.u32 2147483647, %v4919_v62 }
 0x19e   : > { %2242 = vst.msk [vmem:[#allocation3 + $0x8] sm:$0xff] %vm451_vm0, %v2210_v1  ;;  %v1945_v14 = vmul.f32 0.6931472, %v3476_v51  ;;  %3491 = vlog2.f32 %v1979_v53  ;;  %v1670_v22 = vmax.f32 %v4819_v29, 0.0  ;;  %v1849_v42 = vmul.f32 1.442695, %v1805_v20  ;;  %v3197_v53 = vpop.f32.mrf.mxu0 }
 0x19f   : > { %v1930_v37 = vmul.f32 %v4909_v30, %v1929_v49  ;;  %v1937_v10 = vmul.f32 -0.5, %v4938_v63  ;;  %vm1932_vm7 = vcmp.lt.f32.partialorder %v1931_v7, 0.0004427343  ;;  %v1675_v36 = vmax.f32 %v4840_v56, 0.0 }
 0x1a0   : > { %v3478_v59 = vpop.eup %3477  ;;  %v1951_v58 = vsel %vm1950_vm5, %v1948_v11, %v1945_v14  ;;  %3493 = vpow2.f32 %v1849_v42  ;;  %v1776_v30 = vand.u32 2147483647, %v4974_v23  ;;  %v1982_v49 = vmul.f32 -0.5, %v4958_v57 }
 0x1a1   : > { %v4980_v0 = vpop.eup %3479  ;;  %v2183_v61 = vadd.f32 %v1951_v58, %v1671_v44  ;;  %v1927_v34 = vmul.f32 0.6931472, %v3478_v59  ;;  %v1957_v44 = vmul.f32 %v4919_v62, %v1956_v41  ;;  %vm1959_vm8 = vcmp.lt.f32.partialorder %v1958_v35, 0.0004427343 }
 0x1a2   : > { %v1961_v21 = vadd.f32 1.0, %v4980_v0  ;;  %vm1702_vm9 = vcmp.ne.f32.partialorder %v4819_v29, %v4819_v29  ;;  %v1938_v7 = vadd.f32 1.0, %v1937_v10  ;;  %v1940_v20 = vand.u32 2147483647, %v4938_v63 }
 0x1a3   : > { %v3482_v39 = vpop.eup %3481  ;;  %v2215_v46 = vsel %vm1703_vm1, %v4761_v52, %v2183_v61  ;;  %v1933_v47 = vsel %vm1932_vm7, %v1930_v37, %v1927_v34  ;;  %v1673_v52 = vmax.f32 %v4889_v45, 0.0  ;;  %v1808_v41 = vsub.f32 0.0, %v1776_v30 }
 0x1a4   : > { %v4992_v43 = vpop.eup %3483  ;;  %2247 = vst.msk [vmem:[#allocation3 + $0x30] sm:$0xff] %vm451_vm0, %v2215_v46  ;;  %v2181_v51 = vadd.f32 %v1933_v47, %v1669_v5  ;;  %v1954_v1 = vmul.f32 0.6931472, %v3482_v39  ;;  %3495 = vlog2.f32 %v1961_v21  ;;  %v1676_v58 = vmax.f32 %v4892_v54, 0.0  ;;  %v1602_v39 = vpop.f32.mrf.mxu0 }
 0x1a5   : > { %v1988_v62 = vadd.f32 1.0, %v4992_v43  ;;  %v5000_v14 = vpop.eup %3485  ;;  %v5010_v35 = vadd.f32 %v4605_v40, %v1589_v19  ;;  %v1983_v61 = vadd.f32 1.0, %v1982_v49  ;;  %v1985_v34 = vand.u32 2147483647, %v4958_v57 }
 0x1a6   : > { %v2213_v5 = vsel %vm1701_vm4, %v4779_v55, %v2181_v51  ;;  %v1960_v11 = vsel %vm1959_vm8, %v1957_v44, %v1954_v1  ;;  %v1970_v37 = vadd.f32 1.0, %v5000_v14  ;;  %v1855_v55 = vmul.f32 1.442695, %v1808_v41  ;;  %v3198_v41 = vpop.f32.mrf.mxu0 }
 0x1a7   : > { %2245 = vst.msk [vmem:[#allocation3 + $0x20] sm:$0xff] %vm451_vm0, %v2213_v5  ;;  %v2184_v59 = vadd.f32 %v1960_v11, %v1672_v38  ;;  %3497 = vlog2.f32 %v1988_v62  ;;  %v1939_v38 = vmul.f32 %v4938_v63, %v1938_v7  ;;  %vm1707_vm10 = vcmp.ne.f32.partialorder %v4840_v56, %v4840_v56 }
 0x1a8   : > { %v3488_v42 = vpop.eup %3487  ;;  %v1964_v19 = vmul.f32 -0.5, %v4980_v0  ;;  %vm1941_vm11 = vcmp.lt.f32.partialorder %v1940_v20, 0.0004427343  ;;  %v1674_v46 = vmax.f32 %v4904_v48, 0.0  ;;  %3499 = vlog2.f32 %v1970_v37 }
 0x1a9   : > { %v2216_v10 = vsel %vm1704_vm6, %v4810_v26, %v2184_v59  ;;  %v1936_v21 = vmul.f32 0.6931472, %v3488_v42  ;;  %v5025_v47 = vadd.f32 %v3197_v53, %v4605_v40  ;;  %v5027_v44 = vpop.eup %3489  ;;  %v1991_v63 = vmul.f32 -0.5, %v4992_v43 }
 0x1aa   : > { %2248 = vst.msk [vmem:[#allocation3 + $0x38] sm:$0xff] %vm451_vm0, %v2216_v10  ;;  %3501 = vpow2.f32 %v1855_v55  ;;  %v1774_v30 = vand.u32 2147483647, %v5010_v35  ;;  %v1984_v49 = vmul.f32 %v4958_v57, %v1983_v61  ;;  %vm5032_vm12 = vcmp.lt.f32.partialorder %v1985_v34, 0.0004427343 }
 0x1ab   : > { %v1942_v26 = vsel %vm1941_vm11, %v1939_v38, %v1936_v21  ;;  %v3492_v51 = vpop.eup %3491  ;;  %v2015_v62 = vadd.f32 1.0, %v5027_v44  ;;  %v1965_v5 = vadd.f32 1.0, %v1964_v19  ;;  %v1967_v11 = vand.u32 2147483647, %v4980_v0 }
 0x1ac   : > { %v2182_v1 = vadd.f32 %v1942_v26, %v1670_v22  ;;  %v1981_v53 = vmul.f32 0.6931472, %v3492_v51  ;;  %v1806_v20 = vsub.f32 0.0, %v1774_v30  ;;  %vm1705_vm13 = vcmp.ne.f32.partialorder %v4889_v45, %v4889_v45  ;;  %v1605_v30 = vpop.f32.mrf.mxu0 }
 0x1ad   : > { %v1973_v57 = vmul.f32 -0.5, %v5000_v14  ;;  %3503 = vlog2.f32 %v2015_v62  ;;  %v1779_v22 = vand.u32 2147483647, %v5025_v47  ;;  %v5046_v42 = vpop.eup %3493  ;;  %v1992_v34 = vadd.f32 1.0, %v1991_v63 }
 0x1ae   : > { %v2214_v59 = vsel %vm1702_vm9, %v4819_v29, %v2182_v1  ;;  %v1987_v61 = vsel %vm5032_vm12, %v1984_v49, %v1981_v53  ;;  %v1851_v37 = vmul.f32 1.442695, %v1806_v20  ;;  %v5052_v55 = vadd.f32 %v4605_v40, %v1602_v39 }
 0x1af   : > { %2246 = vst.msk [vmem:[#allocation3 + $0x28] sm:$0xff] %vm451_vm0, %v2214_v59  ;;  %v2187_v29 = vadd.f32 %v1987_v61, %v1675_v36  ;;  %v1994_v10 = vand.u32 2147483647, %v4992_v43  ;;  %v2018_v21 = vmul.f32 -0.5, %v5027_v44  ;;  %v1997_v38 = vadd.f32 1.0, %v5046_v42 }
 0x1b0   : > { %v1966_v26 = vmul.f32 %v4980_v0, %v1965_v5  ;;  %vm1708_vm14 = vcmp.ne.f32.partialorder %v4892_v54, %v4892_v54  ;;  %v1976_v63 = vand.u32 2147483647, %v5000_v14  ;;  %3505 = vpow2.f32 %v1851_v37 }
 0x1b1   : > { %v3496_v19 = vpop.eup %3495  ;;  %v1811_v39 = vsub.f32 0.0, %v1779_v22  ;;  %v2219_v36 = vsel %vm1707_vm10, %v4840_v56, %v2187_v29  ;;  %v1974_v1 = vadd.f32 1.0, %v1973_v57  ;;  %3507 = vlog2.f32 %v1997_v38 }
 0x1b2   : > { %v1963_v51 = vmul.f32 0.6931472, %v3496_v19  ;;  %2251 = vst.msk [vmem:[#allocation3 + $0x50] sm:$0xff] %vm451_vm0, %v2219_v36  ;;  %vm1968_vm15 = vcmp.lt.f32.partialorder %v1967_v11, 0.0004427343  ;;  %v1993_v0 = vmul.f32 %v4992_v43, %v1992_v34  ;;  %vm1706_vm2 = vcmp.ne.f32.partialorder %v4904_v48, %v4904_v48 }
 0x1b3   : > { %v1861_v49 = vmul.f32 1.442695, %v1811_v39  ;;  %v1777_v7 = vand.u32 2147483647, %v5052_v55  ;;  %v2019_v5 = vadd.f32 1.0, %v2018_v21  ;;  %v5073_v20 = vadd.f32 %v3198_v41, %v4605_v40  ;;  %v3201_v41 = vpop.f32.mrf.mxu0 }
 0x1b4   : > { %v3498_v62 = vpop.eup %3497  ;;  %v1969_v53 = vsel %vm1968_vm15, %v1966_v26, %v1963_v51  ;;  %v5076_v56 = vadd.f32 %v4605_v40, %v1605_v30  ;;  %vm1995_vm3 = vcmp.lt.f32.partialorder %v1994_v10, 0.0004427343  ;;  %v1975_v57 = vmul.f32 %v5000_v14, %v1974_v1 }
 0x1b5   : > { %v2185_v11 = vadd.f32 %v1969_v53, %v1673_v52  ;;  %v1990_v59 = vmul.f32 0.6931472, %v3498_v62  ;;  %3509 = vpow2.f32 %v1861_v49  ;;  %v1809_v43 = vsub.f32 0.0, %v1777_v7  ;;  %v3500_v34 = vpop.eup %3499  ;;  %v1618_v51 = vpop.f32.mrf.mxu0 }
 0x1b6   : > { %vm5081_vm1 = vcmp.lt.f32.partialorder %v1976_v63, 0.0004427343  ;;  %v1780_v61 = vand.u32 2147483647, %v5073_v20  ;;  %v2000_v37 = vmul.f32 -0.5, %v5046_v42  ;;  %v2020_v26 = vmul.f32 %v5027_v44, %v2019_v5 }
 0x1b7   : > { %v2217_v40 = vsel %vm1705_vm13, %v4889_v45, %v2185_v11  ;;  %v1996_v52 = vsel %vm1995_vm3, %v1993_v0, %v1990_v59  ;;  %v1857_v29 = vmul.f32 1.442695, %v1809_v43  ;;  %v5091_v10 = vpop.eup %3501  ;;  %v1972_v21 = vmul.f32 0.6931472, %v3500_v34 }
 0x1b8   : > { %2249 = vst.msk [vmem:[#allocation3 + $0x40] sm:$0xff] %vm451_vm0, %v2217_v40  ;;  %v2188_v14 = vadd.f32 %v1996_v52, %v1676_v58  ;;  %v1812_v38 = vsub.f32 0.0, %v1780_v61  ;;  %v1778_v19 = vand.u32 2147483647, %v5076_v56  ;;  %v2021_v63 = vand.u32 2147483647, %v5027_v44 }
 0x1b9   : > { %v2024_v45 = vadd.f32 1.0, %v5091_v10  ;;  %3511 = vpow2.f32 %v1857_v29  ;;  %v1978_v58 = vsel %vm5081_vm1, %v1975_v57, %v1972_v21  ;;  %v2001_v0 = vadd.f32 1.0, %v2000_v37  ;;  %v3202_v57 = vpop.f32.mrf.mxu0 }
 0x1ba   : > { %v2220_v39 = vsel %vm1708_vm14, %v4892_v54, %v2188_v14  ;;  %v1863_v30 = vmul.f32 1.442695, %v1812_v38  ;;  %v1810_v36 = vsub.f32 0.0, %v1778_v19  ;;  %v3504_v1 = vpop.eup %3503  ;;  %v2186_v44 = vadd.f32 %v1978_v58, %v1674_v46  ;;  %v5111_v54 = vld [vmem:[%s3999_s11 + $0x1] ss:$0 sm:$0xff] }
 0x1bb   : > { %2252 = vst.msk [vmem:[#allocation3 + $0x58] sm:$0xff] %vm451_vm0, %v2220_v39  ;;  %v2003_v49 = vand.u32 2147483647, %v5046_v42  ;;  %3513 = vlog2.f32 %v2024_v45  ;;  %v2017_v7 = vmul.f32 0.6931472, %v3504_v1  ;;  %v5114_v53 = vadd.f32 %v5111_v54, %v3201_v41  ;;  %v1621_v58 = vpop.f32.mrf.mxu0 }
 0x1bc   : > { %3515 = vpow2.f32 %v1863_v30  ;;  %v1859_v62 = vmul.f32 1.442695, %v1810_v36  ;;  %v2218_v5 = vsel %vm1706_vm2, %v4904_v48, %v2186_v44  ;;  %v1679_v11 = vmax.f32 %v4927_v50, 0.0 }
 0x1bd   : > { %vm2022_vm4 = vcmp.lt.f32.partialorder %v2021_v63, 0.0004427343  ;;  %v5121_v46 = vpop.eup %3505  ;;  %2250 = vst.msk [vmem:[#allocation3 + $0x48] sm:$0xff] %vm451_vm0, %v2218_v5  ;;  %v5125_v43 = vadd.f32 %v5111_v54, %v1618_v51  ;;  %vm1711_vm5 = vcmp.ne.f32.partialorder %v4927_v50, %v4927_v50  ;;  %v1677_v48 = vmax.f32 %v4953_v60, 0.0 }
 0x1be   : > { %v2023_v59 = vsel %vm2022_vm4, %v2020_v26, %v2017_v7  ;;  %3517 = vpow2.f32 %v1859_v62  ;;  %v3508_v22 = vpop.eup %3507  ;;  %v2006_v41 = vadd.f32 1.0, %v5121_v46  ;;  %v2002_v40 = vmul.f32 %v5046_v42, %v2001_v0 }
 0x1bf   : > { %v2191_v61 = vadd.f32 %v2023_v59, %v1679_v11  ;;  %v1999_v34 = vmul.f32 0.6931472, %v3508_v22  ;;  %vm2004_vm6 = vcmp.lt.f32.partialorder %v2003_v49, 0.0004427343  ;;  %v1783_v52 = vand.u32 2147483647, %v5114_v53 }
 0x1c0   : > { %v2027_v29 = vmul.f32 -0.5, %v5091_v10  ;;  %3519 = vlog2.f32 %v2006_v41  ;;  %v5136_v14 = vadd.f32 %v5111_v54, %v3202_v57  ;;  %v1781_v26 = vand.u32 2147483647, %v5125_v43 }
 0x1c1   : > { %v2223_v37 = vsel %vm1711_vm5, %v4927_v50, %v2191_v61  ;;  %v2005_v38 = vsel %vm2004_vm6, %v2002_v40, %v1999_v34  ;;  %v1815_v19 = vsub.f32 0.0, %v1783_v52  ;;  %vm1709_vm7 = vcmp.ne.f32.partialorder %v4953_v60, %v4953_v60 }
 0x1c2   : > { %v5138_v21 = vpop.eup %3509  ;;  %2255 = vst.msk [vmem:[#allocation3 + $0x70] sm:$0xff] %vm451_vm0, %v2223_v37  ;;  %v2189_v42 = vadd.f32 %v2005_v38, %v1677_v48  ;;  %v2030_v50 = vand.u32 2147483647, %v5091_v10  ;;  %v1813_v39 = vsub.f32 0.0, %v1781_v26  ;;  %v2028_v36 = vadd.f32 1.0, %v2027_v29  ;;  %v3205_v48 = vpop.f32.mrf.mxu0 }
 0x1c3   : > { %v2051_v63 = vadd.f32 1.0, %v5138_v21  ;;  %v1869_v45 = vmul.f32 1.442695, %v1815_v19  ;;  %v1784_v51 = vand.u32 2147483647, %v5136_v14  ;;  %v2009_v44 = vmul.f32 -0.5, %v5121_v46 }
 0x1c4   : > { %v2221_v30 = vsel %vm1709_vm7, %v4953_v60, %v2189_v42  ;;  %v1865_v0 = vmul.f32 1.442695, %v1813_v39  ;;  %v5154_v7 = vadd.f32 %v5111_v54, %v1621_v58  ;;  %v1680_v60 = vmax.f32 %v4974_v23, 0.0 }
 0x1c5   : > { %3521 = vlog2.f32 %v2051_v63  ;;  %2253 = vst.msk [vmem:[#allocation3 + $0x60] sm:$0xff] %vm451_vm0, %v2221_v30  ;;  %vm5157_vm8 = vcmp.lt.f32.partialorder %v2030_v50, 0.0004427343  ;;  %v1816_v11 = vsub.f32 0.0, %v1784_v51  ;;  %v2029_v22 = vmul.f32 %v5091_v10, %v2028_v36 }
 0x1c6   : > { %v5148_v1 = vpop.eup %3511  ;;  %3523 = vpow2.f32 %v1869_v45  ;;  %v2012_v61 = vand.u32 2147483647, %v5121_v46  ;;  %v2010_v41 = vadd.f32 1.0, %v2009_v44  ;;  %v2054_v34 = vmul.f32 -0.5, %v5138_v21  ;;  %v1634_v45 = vpop.f32.mrf.mxu0 }
 0x1c7   : > { %v2033_v49 = vadd.f32 1.0, %v5148_v1  ;;  %3525 = vpow2.f32 %v1865_v0  ;;  %v1871_v52 = vmul.f32 1.442695, %v1816_v11  ;;  %vm1712_vm9 = vcmp.ne.f32.partialorder %v4974_v23, %v4974_v23 }
 0x1c8   : > { %v3514_v62 = vpop.eup %3513  ;;  %v1678_v10 = vmax.f32 %v5010_v35, 0.0  ;;  %v1782_v38 = vand.u32 2147483647, %v5154_v7  ;;  %vm1710_vm10 = vcmp.ne.f32.partialorder %v5010_v35, %v5010_v35  ;;  %v5178_v26 = vadd.f32 %v5111_v54, %v3205_v48 }
 0x1c9   : > { %v5161_v59 = vpop.eup %3515  ;;  %v2026_v57 = vmul.f32 0.6931472, %v3514_v62  ;;  %3527 = vlog2.f32 %v2033_v49  ;;  %vm5180_vm11 = vcmp.lt.f32.partialorder %v2012_v61, 0.0004427343  ;;  %v1683_v63 = vmax.f32 %v5025_v47, 0.0 }
 0x1ca   : > { %v2060_v40 = vadd.f32 1.0, %v5161_v59  ;;  %v2011_v30 = vmul.f32 %v5121_v46, %v2010_v41  ;;  %v2055_v36 = vadd.f32 1.0, %v2054_v34  ;;  %v1814_v51 = vsub.f32 0.0, %v1782_v38 }
 0x1cb   : > { %v5167_v37 = vpop.eup %3517  ;;  %v2032_v29 = vsel %vm5157_vm8, %v2029_v22, %v2026_v57  ;;  %vm1715_vm12 = vcmp.ne.f32.partialorder %v5025_v47, %v5025_v47  ;;  %v2057_v0 = vand.u32 2147483647, %v5138_v21  ;;  %v2036_v49 = vmul.f32 -0.5, %v5148_v1 }
 0x1cc   : > { %v2192_v19 = vadd.f32 %v2032_v29, %v1680_v60  ;;  %3529 = vlog2.f32 %v2060_v40  ;;  %v2042_v50 = vadd.f32 1.0, %v5167_v37  ;;  %v2039_v62 = vand.u32 2147483647, %v5148_v1  ;;  %v3206_v40 = vpop.f32.mrf.mxu0 }
 0x1cd   : > { %3531 = vpow2.f32 %v1871_v52  ;;  %v3520_v39 = vpop.eup %3519  ;;  %v1867_v60 = vmul.f32 1.442695, %v1814_v51  ;;  %v5196_v46 = vadd.f32 %v5111_v54, %v1634_v45  ;;  %v1681_v11 = vmax.f32 %v5052_v55, 0.0 }
 0x1ce   : > { %v2224_v58 = vsel %vm1712_vm9, %v4974_v23, %v2192_v19  ;;  %v2008_v44 = vmul.f32 0.6931472, %v3520_v39  ;;  %3533 = vlog2.f32 %v2042_v50  ;;  %v1787_v23 = vand.u32 2147483647, %v5178_v26 }
 0x1cf   : > { %2256 = vst.msk [vmem:[#allocation3 + $0x78] sm:$0xff] %vm451_vm0, %v2224_v58  ;;  %v1684_v57 = vmax.f32 %v5073_v20, 0.0  ;;  %v2063_v22 = vmul.f32 -0.5, %v5161_v59  ;;  %v2056_v41 = vmul.f32 %v5138_v21, %v2055_v36  ;;  %3535 = vpow2.f32 %v1867_v60 }
 0x1d0   : > { %v2014_v5 = vsel %vm5180_vm11, %v2011_v30, %v2008_v44  ;;  %v1819_v34 = vsub.f32 0.0, %v1787_v23  ;;  %vm1713_vm13 = vcmp.ne.f32.partialorder %v5052_v55, %v5052_v55  ;;  %v2037_v38 = vadd.f32 1.0, %v2036_v49 }
 0x1d1   : > { %v2190_v48 = vadd.f32 %v2014_v5, %v1678_v10  ;;  %v2045_v19 = vmul.f32 -0.5, %v5167_v37  ;;  %v1785_v42 = vand.u32 2147483647, %v5196_v46  ;;  %vm2058_vm14 = vcmp.lt.f32.partialorder %v2057_v0, 0.0004427343  ;;  %v1637_v0 = vpop.f32.mrf.mxu0 }
 0x1d2   : > { %v3522_v61 = vpop.eup %3521  ;;  %vm5214_vm15 = vcmp.lt.f32.partialorder %v2039_v62, 0.0004427343  ;;  %v2064_v58 = vadd.f32 1.0, %v2063_v22  ;;  %v1877_v30 = vmul.f32 1.442695, %v1819_v34  ;;  %v2038_v60 = vmul.f32 %v5148_v1, %v2037_v38 }
 0x1d3   : > { %v5204_v52 = vpop.eup %3523  ;;  %v2053_v29 = vmul.f32 0.6931472, %v3522_v61  ;;  %v2222_v10 = vsel %vm1710_vm10, %v5010_v35, %v2190_v48  ;;  %v1817_v36 = vsub.f32 0.0, %v1785_v42  ;;  %v2066_v49 = vand.u32 2147483647, %v5161_v59  ;;  %v3209_v21 = vpop.f32.mrf.mxu0 }
 0x1d4   : > { %v2087_v50 = vadd.f32 1.0, %v5204_v52  ;;  %v5219_v45 = vpop.eup %3525  ;;  %2254 = vst.msk [vmem:[#allocation3 + $0x68] sm:$0xff] %vm451_vm0, %v2222_v10  ;;  %v5224_v35 = vadd.f32 %v5111_v54, %v3206_v40  ;;  %v2046_v23 = vadd.f32 1.0, %v2045_v19  ;;  %v2065_v1 = vmul.f32 %v5161_v59, %v2064_v58 }
 0x1d5   : > { %v2059_v39 = vsel %vm2058_vm14, %v2056_v41, %v2053_v29  ;;  %v2069_v5 = vadd.f32 1.0, %v5219_v45  ;;  %v1873_v61 = vmul.f32 1.442695, %v1817_v36  ;;  %v5238_v34 = vadd.f32 %v5111_v54, %v1637_v0 }
 0x1d6   : > { %v3528_v51 = vpop.eup %3527  ;;  %v2195_v44 = vadd.f32 %v2059_v39, %v1683_v63  ;;  %3537 = vlog2.f32 %v2087_v50  ;;  %v2048_v63 = vand.u32 2147483647, %v5167_v37  ;;  %v1788_v38 = vand.u32 2147483647, %v5224_v35 }
 0x1d7   : > { %v2035_v62 = vmul.f32 0.6931472, %v3528_v51  ;;  %3539 = vpow2.f32 %v1877_v30  ;;  %vm2067_vm2 = vcmp.lt.f32.partialorder %v2066_v49, 0.0004427343  ;;  %v1682_v19 = vmax.f32 %v5076_v56, 0.0 }
 0x1d8   : > { %v2227_v22 = vsel %vm1715_vm12, %v5025_v47, %v2195_v44  ;;  %3541 = vlog2.f32 %v2069_v5  ;;  %v2047_v42 = vmul.f32 %v5167_v37, %v2046_v23  ;;  %v1820_v58 = vsub.f32 0.0, %v1788_v38 }
 0x1d9   : > { %v3530_v48 = vpop.eup %3529  ;;  %2259 = vst.msk [vmem:[#allocation3 + $0x90] sm:$0xff] %vm451_vm0, %v2227_v22  ;;  %v2041_v41 = vsel %vm5214_vm15, %v2038_v60, %v2035_v62  ;;  %3543 = vpow2.f32 %v1873_v61  ;;  %v2072_v51 = vmul.f32 -0.5, %v5219_v45  ;;  %vm1716_vm3 = vcmp.ne.f32.partialorder %v5073_v20, %v5073_v20 }
 0x1da   : > { %v5240_v40 = vpop.eup %3531  ;;  %v2193_v29 = vadd.f32 %v2041_v41, %v1681_v11  ;;  %v2062_v47 = vmul.f32 0.6931472, %v3530_v48  ;;  %v2090_v11 = vmul.f32 -0.5, %v5204_v52  ;;  %vm2049_vm1 = vcmp.lt.f32.partialorder %v2048_v63, 0.0004427343 }
 0x1db   : > { %v2096_v10 = vadd.f32 1.0, %v5240_v40  ;;  %v3534_v59 = vpop.eup %3533  ;;  %v1879_v37 = vmul.f32 1.442695, %v1820_v58  ;;  %v1786_v44 = vand.u32 2147483647, %v5238_v34  ;;  %v5260_v62 = vadd.f32 %v5111_v54, %v3209_v21 }
 0x1dc   : > { %v2225_v50 = vsel %vm1713_vm13, %v5052_v55, %v2193_v29  ;;  %v2068_v39 = vsel %vm2067_vm2, %v2065_v1, %v2062_v47  ;;  %v2044_v36 = vmul.f32 0.6931472, %v3534_v59  ;;  %v5256_v49 = vpop.eup %3535  ;;  %vm1714_vm4 = vcmp.ne.f32.partialorder %v5076_v56, %v5076_v56 }
 0x1dd   : > { %2257 = vst.msk [vmem:[#allocation3 + $0x80] sm:$0xff] %vm451_vm0, %v2225_v50  ;;  %v2196_v30 = vadd.f32 %v2068_v39, %v1684_v57  ;;  %3545 = vlog2.f32 %v2096_v10  ;;  %v1650_v57 = vpop.f32.mrf.mxu0  ;;  %v2091_v23 = vadd.f32 1.0, %v2090_v11  ;;  %v2078_v5 = vadd.f32 1.0, %v5256_v49 }
 0x1de   : > { %v2050_v0 = vsel %vm2049_vm1, %v2047_v42, %v2044_v36  ;;  %v2093_v22 = vand.u32 2147483647, %v5204_v52  ;;  %v2073_v63 = vadd.f32 1.0, %v2072_v51  ;;  %3547 = vpow2.f32 %v1879_v37 }
 0x1df   : > { %v2228_v55 = vsel %vm1716_vm3, %v5073_v20, %v2196_v30  ;;  %v2194_v60 = vadd.f32 %v2050_v0, %v1682_v19  ;;  %v1818_v61 = vsub.f32 0.0, %v1786_v44  ;;  %v1687_v48 = vmax.f32 %v5114_v53, 0.0  ;;  %v3210_v19 = vpop.f32.mrf.mxu0 }
 0x1e0   : > { %2260 = vst.msk [vmem:[#allocation3 + $0x98] sm:$0xff] %vm451_vm0, %v2228_v55  ;;  %v2099_v41 = vmul.f32 -0.5, %v5240_v40  ;;  %3549 = vlog2.f32 %v2078_v5  ;;  %vm1719_vm5 = vcmp.ne.f32.partialorder %v5114_v53, %v5114_v53  ;;  %v1791_v47 = vand.u32 2147483647, %v5260_v62 }
 0x1e1   : > { %v2226_v20 = vsel %vm1714_vm4, %v5076_v56, %v2194_v60  ;;  %v1875_v29 = vmul.f32 1.442695, %v1818_v61  ;;  %v5275_v38 = vadd.f32 %v5111_v54, %v1650_v57  ;;  %v2092_v56 = vmul.f32 %v5204_v52, %v2091_v23  ;;  %v1653_v57 = vpop.f32.mrf.mxu0 }
 0x1e2   : > { %2258 = vst.msk [vmem:[#allocation3 + $0x88] sm:$0xff] %vm451_vm0, %v2226_v20  ;;  %v1685_v10 = vmax.f32 %v5125_v43, 0.0  ;;  %v2075_v21 = vand.u32 2147483647, %v5219_v45  ;;  %vm2094_vm6 = vcmp.lt.f32.partialorder %v2093_v22, 0.0004427343  ;;  %v2074_v50 = vmul.f32 %v5219_v45, %v2073_v63 }
 0x1e3   : > { %v3538_v1 = vpop.eup %3537  ;;  %3551 = vpow2.f32 %v1875_v29  ;;  %v1823_v39 = vsub.f32 0.0, %v1791_v47  ;;  %v2100_v30 = vadd.f32 1.0, %v2099_v41  ;;  %v2081_v36 = vmul.f32 -0.5, %v5256_v49 }
 0x1e4   : > { %v2089_v42 = vmul.f32 0.6931472, %v3538_v1  ;;  %v5280_v59 = vpop.eup %3539  ;;  %v1789_v0 = vand.u32 2147483647, %v5275_v38  ;;  %vm2076_vm7 = vcmp.lt.f32.partialorder %v2075_v21, 0.0004427343  ;;  %vm1717_vm8 = vcmp.ne.f32.partialorder %v5125_v43, %v5125_v43 }
 0x1e5   : > { %v3542_v11 = vpop.eup %3541  ;;  %v2123_v51 = vadd.f32 1.0, %v5280_v59  ;;  %v1885_v55 = vmul.f32 1.442695, %v1823_v39  ;;  %v2102_v45 = vand.u32 2147483647, %v5240_v40  ;;  %v5297_v22 = vadd.f32 %v5111_v54, %v3210_v19 }
 0x1e6   : > { %v2095_v58 = vsel %vm2094_vm6, %v2092_v56, %v2089_v42  ;;  %v5285_v37 = vpop.eup %3543  ;;  %v2071_v44 = vmul.f32 0.6931472, %v3542_v11  ;;  %v1821_v20 = vsub.f32 0.0, %v1789_v0  ;;  %v2101_v1 = vmul.f32 %v5240_v40, %v2100_v30 }
 0x1e7   : > { %v2199_v52 = vadd.f32 %v2095_v58, %v1687_v48  ;;  %3553 = vlog2.f32 %v2123_v51  ;;  %v2105_v60 = vadd.f32 1.0, %v5285_v37  ;;  %v5301_v48 = vadd.f32 %v5111_v54, %v1653_v57 }
 0x1e8   : > { %v2077_v5 = vsel %vm2076_vm7, %v2074_v50, %v2071_v44  ;;  %v1688_v47 = vmax.f32 %v5136_v14, 0.0  ;;  %vm2103_vm9 = vcmp.lt.f32.partialorder %v2102_v45, 0.0004427343  ;;  %v1881_v19 = vmul.f32 1.442695, %v1821_v20 }
 0x1e9   : > { %v2231_v23 = vsel %vm1719_vm5, %v5114_v53, %v2199_v52  ;;  %v2197_v61 = vadd.f32 %v2077_v5, %v1685_v10  ;;  %3555 = vlog2.f32 %v2105_v60  ;;  %v2082_v53 = vadd.f32 1.0, %v2081_v36 }
 0x1ea   : > { %v3546_v63 = vpop.eup %3545  ;;  %2263 = vst.msk [vmem:[#allocation3 + $0xb0] sm:$0xff] %vm451_vm0, %v2231_v23  ;;  %3557 = vpow2.f32 %v1885_v55  ;;  %v2084_v56 = vand.u32 2147483647, %v5256_v49  ;;  %v1792_v10 = vand.u32 2147483647, %v5297_v22  ;;  %v2126_v40 = vmul.f32 -0.5, %v5280_v59 }
 0x1eb   : > { %v2098_v41 = vmul.f32 0.6931472, %v3546_v63  ;;  %v2229_v29 = vsel %vm1717_vm8, %v5125_v43, %v2197_v61  ;;  %v5309_v54 = vpop.eup %3547  ;;  %3559 = vpow2.f32 %v1881_v19  ;;  %v1790_v50 = vand.u32 2147483647, %v5301_v48 }
 0x1ec   : > { %2261 = vst.msk [vmem:[#allocation3 + $0xa0] sm:$0xff] %vm451_vm0, %v2229_v29  ;;  %vm1720_vm10 = vcmp.ne.f32.partialorder %v5136_v14, %v5136_v14  ;;  %v2083_v39 = vmul.f32 %v5256_v49, %v2082_v53  ;;  %v2132_v11 = vadd.f32 1.0, %v5309_v54  ;;  %v1824_v58 = vsub.f32 0.0, %v1792_v10 }
 0x1ed   : > { %v2104_v42 = vsel %vm2103_vm9, %v2101_v1, %v2098_v41  ;;  %v3550_v43 = vpop.eup %3549  ;;  %v2108_v51 = vmul.f32 -0.5, %v5285_v37  ;;  %v1822_v52 = vsub.f32 0.0, %v1790_v50  ;;  %v1686_v44 = vmax.f32 %v5154_v7, 0.0 }
 0x1ee   : > { %v2200_v21 = vadd.f32 %v2104_v42, %v1688_v47  ;;  %v2080_v36 = vmul.f32 0.6931472, %v3550_v43  ;;  %vm2085_vm11 = vcmp.lt.f32.partialorder %v2084_v56, 0.0004427343  ;;  %3561 = vlog2.f32 %v2132_v11 }
 0x1ef   : > { %v1887_v55 = vmul.f32 1.442695, %v1824_v58  ;;  %v2127_v49 = vadd.f32 1.0, %v2126_v40  ;;  %v1883_v45 = vmul.f32 1.442695, %v1822_v52  ;;  %vm1718_vm12 = vcmp.ne.f32.partialorder %v5154_v7, %v5154_v7 }
 0x1f0   : > { %v2232_v30 = vsel %vm1720_vm10, %v5136_v14, %v2200_v21  ;;  %v5321_v0 = vpop.eup %3551  ;;  %v2086_v57 = vsel %vm2085_vm11, %v2083_v39, %v2080_v36  ;;  %v2129_v23 = vand.u32 2147483647, %v5280_v59  ;;  %v2109_v5 = vadd.f32 1.0, %v2108_v51 }
 0x1f1   : > { %2264 = vst.msk [vmem:[#allocation3 + $0xb8] sm:$0xff] %vm451_vm0, %v2232_v30  ;;  %v2198_v60 = vadd.f32 %v2086_v57, %v1686_v44  ;;  %v2114_v14 = vadd.f32 1.0, %v5321_v0  ;;  %3563 = vpow2.f32 %v1887_v55  ;;  %v2111_v20 = vand.u32 2147483647, %v5285_v37 }
 0x1f2   : > { %v2128_v1 = vmul.f32 %v5280_v59, %v2127_v49  ;;  %v2135_v53 = vmul.f32 -0.5, %v5309_v54  ;;  %v1691_v47 = vmax.f32 %v5178_v26, 0.0  ;;  %vm2130_vm13 = vcmp.lt.f32.partialorder %v2129_v23, 0.0004427343 }
 0x1f3   : > { %v2230_v61 = vsel %vm1718_vm12, %v5154_v7, %v2198_v60  ;;  %3565 = vlog2.f32 %v2114_v14  ;;  %v2110_v7 = vmul.f32 %v5285_v37, %v2109_v5  ;;  %v1689_v21 = vmax.f32 %v5196_v46, 0.0 }
 0x1f4   : > { %v3554_v63 = vpop.eup %3553  ;;  %2262 = vst.msk [vmem:[#allocation3 + $0xa8] sm:$0xff] %vm451_vm0, %v2230_v61  ;;  %3567 = vpow2.f32 %v1883_v45  ;;  %vm2112_vm14 = vcmp.lt.f32.partialorder %v2111_v20, 0.0004427343  ;;  %vm1723_vm15 = vcmp.ne.f32.partialorder %v5178_v26, %v5178_v26  ;;  %v2136_v50 = vadd.f32 1.0, %v2135_v53 }
 0x1f5   : > { %v2125_v41 = vmul.f32 0.6931472, %v3554_v63  ;;  %v2117_v58 = vmul.f32 -0.5, %v5321_v0  ;;  %vm1721_vm2 = vcmp.ne.f32.partialorder %v5196_v46, %v5196_v46  ;;  %v2138_v37 = vand.u32 2147483647, %v5309_v54 }
 0x1f6   : > { %v3556_v29 = vpop.eup %3555  ;;  %v1692_v55 = vmax.f32 %v5224_v35, 0.0  ;;  %v2120_v57 = vand.u32 2147483647, %v5321_v0  ;;  %vm1724_vm1 = vcmp.ne.f32.partialorder %v5224_v35, %v5224_v35  ;;  %v1690_v63 = vmax.f32 %v5238_v34, 0.0 }
 0x1f7   : > { %v3558_v19 = vpop.eup %3557  ;;  %v2131_v42 = vsel %vm2130_vm13, %v2128_v1, %v2125_v41  ;;  %v2107_v56 = vmul.f32 0.6931472, %v3556_v29  ;;  %v2118_v44 = vadd.f32 1.0, %v2117_v58  ;;  %vm2139_vm3 = vcmp.lt.f32.partialorder %v2138_v37, 0.0004427343 }
 0x1f8   : > { %v2203_v10 = vadd.f32 %v2131_v42, %v1691_v47  ;;  %v2159_v40 = vadd.f32 1.0, %v3558_v19  ;;  %v3560_v43 = vpop.eup %3559  ;;  %v2162_v60 = vmul.f32 -0.5, %v3558_v19  ;;  %vm2121_vm4 = vcmp.lt.f32.partialorder %v2120_v57, 0.0004427343 }
 0x1f9   : > { %v2113_v59 = vsel %vm2112_vm14, %v2110_v7, %v2107_v56  ;;  %v2141_v30 = vadd.f32 1.0, %v3560_v43  ;;  %v2144_v41 = vmul.f32 -0.5, %v3560_v43  ;;  %v2165_v42 = vand.u32 2147483647, %v3558_v19 }
 0x1fa   : > { %v2235_v39 = vsel %vm1723_vm15, %v5178_v26, %v2203_v10  ;;  %v2201_v11 = vadd.f32 %v2113_v59, %v1689_v21  ;;  %3569 = vlog2.f32 %v2159_v40  ;;  %v2137_v26 = vmul.f32 %v5309_v54, %v2136_v50 }
 0x1fb   : > { %2267 = vst.msk [vmem:[#allocation3 + $0xd0] sm:$0xff] %vm451_vm0, %v2235_v39  ;;  %v3562_v51 = vpop.eup %3561  ;;  %3571 = vlog2.f32 %v2141_v30  ;;  %v2119_v54 = vmul.f32 %v5321_v0, %v2118_v44  ;;  %v2163_v53 = vadd.f32 1.0, %v2162_v60  ;;  %vm1722_vm5 = vcmp.ne.f32.partialorder %v5238_v34, %v5238_v34 }
 0x1fc   : > { %v2233_v36 = vsel %vm1721_vm2, %v5196_v46, %v2201_v11  ;;  %v2134_v52 = vmul.f32 0.6931472, %v3562_v51  ;;  %v2145_v0 = vadd.f32 1.0, %v2144_v41  ;;  %v2147_v21 = vand.u32 2147483647, %v3560_v43 }
 0x1fd   : > { %2265 = vst.msk [vmem:[#allocation3 + $0xc0] sm:$0xff] %vm451_vm0, %v2233_v36  ;;  %v2164_v10 = vmul.f32 %v3558_v19, %v2163_v53  ;;  %v1695_v40 = vmax.f32 %v5260_v62, 0.0  ;;  %vm2166_vm6 = vcmp.lt.f32.partialorder %v2165_v42, 0.0004427343  ;;  %vm1727_vm7 = vcmp.ne.f32.partialorder %v5260_v62, %v5260_v62 }
 0x1fe   : > { %v3564_v49 = vpop.eup %3563  ;;  %v2140_v45 = vsel %vm2139_vm3, %v2137_v26, %v2134_v52  ;;  %v2146_v37 = vmul.f32 %v3560_v43, %v2145_v0  ;;  %vm2148_vm8 = vcmp.lt.f32.partialorder %v2147_v21, 0.0004427343  ;;  %vm1725_vm9 = vcmp.ne.f32.partialorder %v5275_v38, %v5275_v38 }
 0x1ff   : > { %v2204_v14 = vadd.f32 %v2140_v45, %v1692_v55  ;;  %v2168_v5 = vadd.f32 1.0, %v3564_v49  ;;  %v2171_v59 = vmul.f32 -0.5, %v3564_v49  ;;  %v2174_v26 = vand.u32 2147483647, %v3564_v49 }
 0x200   : > { %v3566_v23 = vpop.eup %3565  ;;  %vm1728_vm11 = vcmp.ne.f32.partialorder %v5297_v22, %v5297_v22  ;;  %vm1726_vm13 = vcmp.ne.f32.partialorder %v5301_v48, %v5301_v48 }
 0x201   : > { %v3568_v46 = vpop.eup %3567  ;;  %v2116_v61 = vmul.f32 0.6931472, %v3566_v23  ;;  %v2236_v20 = vsel %vm1724_vm1, %v5224_v35, %v2204_v14  ;;  %3573 = vlog2.f32 %v2168_v5  ;;  %v2172_v51 = vadd.f32 1.0, %v2171_v59 }
 0x202   : > { %2268 = vst.msk [vmem:[#allocation3 + $0xd8] sm:$0xff] %vm451_vm0, %v2236_v20  ;;  %v2150_v29 = vadd.f32 1.0, %v3568_v46  ;;  %v2153_v30 = vmul.f32 -0.5, %v3568_v46  ;;  %v2156_v60 = vand.u32 2147483647, %v3568_v46 }
 0x203   : > { %v2122_v1 = vsel %vm2121_vm4, %v2119_v54, %v2116_v61  ;;  %v2173_v45 = vmul.f32 %v3564_v49, %v2172_v51  ;;  %vm2175_vm10 = vcmp.lt.f32.partialorder %v2174_v26, 0.0004427343  ;;  %v1694_v54 = vmax.f32 %v5301_v48, 0.0 }
 0x204   : > { %v2202_v47 = vadd.f32 %v2122_v1, %v1690_v63  ;;  %3575 = vlog2.f32 %v2150_v29  ;;  %v2154_v55 = vadd.f32 1.0, %v2153_v30  ;;  %vm2157_vm12 = vcmp.lt.f32.partialorder %v2156_v60, 0.0004427343 }
 0x205   : > { %v3642_v1 = vmov 0.0  }
 0x206   : > { %v2234_v7 = vsel %vm1722_vm5, %v5238_v34, %v2202_v47  ;;  %v1693_v34 = vmax.f32 %v5275_v38, 0.0  ;;  %v2155_v61 = vmul.f32 %v3568_v46, %v2154_v55  ;;  %v3638_v46 = vmov 0.0  }
 0x207   : > { %v3570_v56 = vpop.eup %3569  ;;  %2266 = vst.msk [vmem:[#allocation3 + $0xc8] sm:$0xff] %vm451_vm0, %v2234_v7 }
 0x208   : > { %v2161_v35 = vmul.f32 0.6931472, %v3570_v56  ;;  %v3572_v50 = vpop.eup %3571 }
 0x209   : > { %v2143_v58 = vmul.f32 0.6931472, %v3572_v50 }
 0x20a   : > { %v2167_v39 = vsel %vm2166_vm6, %v2164_v10, %v2161_v35 }
 0x20b   : > { %v2207_v11 = vadd.f32 %v2167_v39, %v1695_v40  ;;  %v2149_v19 = vsel %vm2148_vm8, %v2146_v37, %v2143_v58 }
 0x20c   : > { %v2205_v52 = vadd.f32 %v2149_v19, %v1693_v34 }
 0x20d   : > { %v2239_v36 = vsel %vm1727_vm7, %v5260_v62, %v2207_v11  ;;  %v1696_v62 = vmax.f32 %v5297_v22, 0.0 }
 0x20e   : > { %2271 = vst.msk [vmem:[#allocation3 + $0xf0] sm:$0xff] %vm451_vm0, %v2239_v36  ;;  %v3574_v44 = vpop.eup %3573  ;;  %v2237_v43 = vsel %vm1725_vm9, %v5275_v38, %v2205_v52 }
 0x20f   : > { %2269 = vst.msk [vmem:[#allocation3 + $0xe0] sm:$0xff] %vm451_vm0, %v2237_v43  ;;  %v2170_v57 = vmul.f32 0.6931472, %v3574_v44 }
 0x211   : > { %v3576_v23 = vpop.eup %3575  ;;  %v2176_v14 = vsel %vm2175_vm10, %v2173_v45, %v2170_v57 }
 0x212   : > { %v2208_v5 = vadd.f32 %v2176_v14, %v1696_v62  ;;  %v2152_v63 = vmul.f32 0.6931472, %v3576_v23 }
 0x214   : > { %v2240_v38 = vsel %vm1728_vm11, %v5297_v22, %v2208_v5  ;;  %v2158_v20 = vsel %vm2157_vm12, %v2155_v61, %v2152_v63 }
 0x215   : > { %2272 = vst.msk [vmem:[#allocation3 + $0xf8] sm:$0xff] %vm451_vm0, %v2240_v38  ;;  %v2206_v49 = vadd.f32 %v2158_v20, %v1694_v54 }
 0x217   : > { %v2238_v41 = vsel %vm1726_vm13, %v5301_v48, %v2206_v49 }
 0x218   : > { %2270 = vst.msk [vmem:[#allocation3 + $0xe8] sm:$0xff] %vm451_vm0, %v2238_v41 }
 0x219 LB: >> { %v3650_v22 = vmov 1   ;;  %v3651_v53 = vmov 0   ;;  %s5384_s12 = ssub.s32 255, %s3648_s30  ;;  %s2498_s13 = scalar_lea.vmem [#allocation4], %s3648_s30  ;;  %vm2519_vm14 = vcmask 253952   ;;  %s3648_s30 = sphi %s5378_s30, %s2491_s30   ;;  %v3644_v1 = vphi %v3642_v1, %v2511_v1   ;;  %v3640_v46 = vphi %v3638_v46, %v2539_v46  }
 0x21a   : >> { %3580 = vset.pattern.permute.xlu1 %v3650_v22  ;;  %3579 = vset.pattern.permute.xlu0 %v3651_v53  ;;  %v2499_v48 = vld [vmem:[%s2498_s13] sm:$0x1]  ;;  %s2526_s15 = scalar_lea.vmem [#allocation5], %s5384_s12  ;;  %s2496_s16 = scalar_lea.vmem [#allocation2], %s3648_s30 }
 0x21b   : >> { %2513 = vperm.xlu1 %3580, %v2499_v48   ;;  %2507 = vperm.xlu0 %3579, %v2499_v48   ;;  %v2527_v29 = vld [vmem:[%s2526_s15] sm:$0x1]  ;;  %s2524_s18 = scalar_lea.vmem [#allocation3], %s5384_s12  ;;  %s2494_s19 = scalar_lea.vmem %s3728_s14, %s3648_s30 }
 0x21c   : >> { %v2497_v47 = vld [vmem:[%s2496_s16] sm:$0x1]  ;;  %s2522_s21 = scalar_lea.vmem %s3728_s14, %s5384_s12  ;;  %s2518_s22 = scalar_lea.vmem [#allocation6], %s3648_s30 }
 0x21d   : >> { %v2501_v42 = vmul.f32 %v2497_v47, %v3798_v16  ;;  %v2495_v10 = vld [vmem:[%s2494_s19] sm:$0x1]  ;;  %s2546_s28 = scalar_lea.vmem [#allocation7], %s5384_s12  ;;  %s2491_s30 = sadd.s32 1, %s3648_s30  }
 0x21e   : >> { %v2500_v40 = vmul.f32 %v2497_v47, %v2495_v10  ;;  %v2523_v59 = vld [vmem:[%s2522_s21] sm:$0x1]  ;;  %p2488_p7 = scmp.ge.s32.totalorder %s2491_s30, 256  }
 0x21f   : >> { %2541 = vperm.xlu1 %3580, %v2527_v29   ;;  %2535 = vperm.xlu0 %3579, %v2527_v29   ;;  %v2525_v56 = vld [vmem:[%s2524_s18] sm:$0x1]  ;;  %v2502_v7 = vmul.f32 1.442695, %v2501_v42  ;;  %v3026_v43 = vld [vmem:[%s3749_s20 + $0x1] sm:$0x1] (%p2488_p7)  ;;  %v2553_v55 = vlaneseq (%p2488_p7) }
 0x220   : >> { %v2529_v0 = vmul.f32 %v3800_v17, %v2525_v56  ;;  %v2528_v37 = vmul.f32 %v2525_v56, %v2523_v59  ;;  %v2548_v44 = vld [vmem:[%s3749_s20] sm:$0x1] (%p2488_p7) }
 0x221   : >> { %3582 = vpow2.f32 %v2502_v7  ;;  %v2551_v23 = vadd.f32 (%p2488_p7), %v3026_v43, %v2548_v44  ;;  %v2554_v14 = vshrl.u32 (%p2488_p7), %v2553_v55, 7 }
 0x222   : >> { %v2530_v35 = vmul.f32 1.442695, %v2529_v0 }
 0x223   : >> { %3581 = vset.pattern.permute.xlu0 %v3650_v22  ;;  %v2555_v49 = vsub.s32 (%p2488_p7), 0, %v2554_v14 }
 0x224   : >> { %3584 = vpow2.f32 %v2530_v35 }
 0x225   : > { %v5403_v29 = vrot.slane (%p2488_p7), %v2551_v23, %v2555_v49 }
 0x227   : > { %v2558_v59 = vmul.f32 (%p2488_p7), %v5403_v29, %v3737_v2  ;;  %v2565_v2 = vmul.f32 (%p2488_p7), %v5403_v29, %v3790_v13 }
 0x22e   : >> { %v3583_v21 = vpop.eup %3582 }
 0x22f   : >> { %v2504_v50 = vmul.f32 %v3644_v1, %v3583_v21 }
 0x231   : >> { %v3585_v39 = vpop.eup %3584 }
 0x232   : >> { %v2532_v30 = vmul.f32 %v3640_v46, %v3585_v39  ;;  %v2560_v39 = vmul.f32 (%p2488_p7), %v5403_v29, %v3743_v4 }
 0x296   : >> { %v2508_v11 = vpop.permute.xlu0 %2507  ;;  %v2514_v34 = vpop.permute.xlu1 %2513 }
 0x297   : >> { %v2510_v58 = vmul.f32 %v2508_v11, %v2500_v40  ;;  %v2561_v11 = vmul.f32 (%p2488_p7), %v5403_v29, %v3756_v6 }
 0x299   : >> { %v2511_v1 = vadd.f32 %v2510_v58, %v2504_v50   ;;  %v2559_v50 = vmul.f32 (%p2488_p7), %v5403_v29, %v3740_v3  ;;  %v2562_v58 = vmul.f32 (%p2488_p7), %v5403_v29, %v3760_v8 }
 0x29a   : >> { %v2536_v36 = vpop.permute.xlu0 %2535  ;;  %v2542_v52 = vpop.permute.xlu1 %2541 }
 0x29b   : >> { %v2516_v19 = vmul.f32 %v2514_v34, %v2511_v1  ;;  %v2538_v51 = vmul.f32 %v2536_v36, %v2528_v37  ;;  %v2563_v37 = vmul.f32 (%p2488_p7), %v5403_v29, %v3763_v9  ;;  %v2564_v34 = vmul.f32 (%p2488_p7), %v5403_v29, %v3787_v12 }
 0x29d   : >> { %2520 = vst.msk [vmem:[%s2518_s22] sm:$0x1] %vm2519_vm14, %v2516_v19  ;;  %v2539_v46 = vadd.f32 %v2538_v51, %v2532_v30   ;;  %2490 = sbr.rel (!%p2488_p7) target bundleno = 537 (0x219), region = 109 }
 0x29f   : >> { %v2544_v26 = vmul.f32 %v2542_v52, %v2539_v46 }
 0x2a1   : >> { %2547 = vst.msk [vmem:[%s2546_s28] sm:$0x1] %vm2519_vm14, %v2544_v26 }
 0x2a4   : > { %v2590_v57 = vld [vmem:[#allocation6] sm:$0xff]  ;;  %v2591_v60 = vld [vmem:[#allocation6 + $0x8] sm:$0xff]  ;;  %v2592_v5 = vld [vmem:[#allocation6 + $0x10] sm:$0xff] }
 0x2a5   : > { %v2593_v61 = vld [vmem:[#allocation6 + $0x18] sm:$0xff]  ;;  %v2594_v38 = vld [vmem:[#allocation6 + $0x20] sm:$0xff]  ;;  %v2595_v41 = vld [vmem:[#allocation6 + $0x28] sm:$0xff] }
 0x2a6   : > { %v2596_v16 = vld [vmem:[#allocation6 + $0x30] sm:$0xff]  ;;  %v2597_v53 = vld [vmem:[#allocation6 + $0x38] sm:$0xff]  ;;  %v2598_v7 = vld [vmem:[#allocation6 + $0x40] sm:$0xff] }
 0x2a7   : > { %v2599_v30 = vld [vmem:[#allocation6 + $0x48] sm:$0xff]  ;;  %v2600_v4 = vld [vmem:[#allocation6 + $0x50] sm:$0xff]  ;;  %v2601_v52 = vld [vmem:[#allocation6 + $0x58] sm:$0xff] }
 0x2a8   : > { %v2622_v45 = vld [vmem:[#allocation7] sm:$0xff]  ;;  %v2623_v62 = vld [vmem:[#allocation7 + $0x8] sm:$0xff]  ;;  %v2624_v63 = vld [vmem:[#allocation7 + $0x10] sm:$0xff] }
 0x2a9   : > { %v2625_v54 = vld [vmem:[#allocation7 + $0x18] sm:$0xff]  ;;  %v2626_v20 = vld [vmem:[#allocation7 + $0x20] sm:$0xff]  ;;  %v2627_v46 = vld [vmem:[#allocation7 + $0x28] sm:$0xff]  ;;  %v2654_v17 = vadd.f32 %v2622_v45, %v2590_v57  ;;  %v2655_v1 = vadd.f32 %v2623_v62, %v2591_v60  ;;  %v2656_v47 = vadd.f32 %v2624_v63, %v2592_v5  ;;  %v2566_v57 = vmul.f32 %v5403_v29, %v3796_v15 }
 0x2aa   : > { %v2628_v22 = vld [vmem:[#allocation7 + $0x30] sm:$0xff]  ;;  %v2629_v48 = vld [vmem:[#allocation7 + $0x38] sm:$0xff]  ;;  %v2657_v42 = vadd.f32 %v2625_v54, %v2593_v61  ;;  %v2658_v56 = vadd.f32 %v2626_v20, %v2594_v38  ;;  %v2630_v0 = vld [vmem:[#allocation7 + $0x40] sm:$0xff]  ;;  %v2659_v35 = vadd.f32 %v2627_v46, %v2595_v41  ;;  %v2567_v45 = vmul.f32 %v5403_v29, %v3805_v18 }
 0x2ab   : > { %v2660_v10 = vadd.f32 %v2628_v22, %v2596_v16  ;;  %v2661_v21 = vadd.f32 %v2629_v48, %v2597_v53  ;;  %v2662_v40 = vadd.f32 %v2630_v0, %v2598_v7  ;;  %v2631_v3 = vld [vmem:[#allocation7 + $0x48] sm:$0xff]  ;;  %v2686_v36 = vadd.f32 %v2654_v17, %v2558_v59  ;;  %v2632_v51 = vld [vmem:[#allocation7 + $0x50] sm:$0xff]  ;;  %v2633_v9 = vld [vmem:[#allocation7 + $0x58] sm:$0xff] }
 0x2ac   : > { %v2687_v6 = vadd.f32 %v2655_v1, %v2559_v50  ;;  %v2688_v19 = vadd.f32 %v2656_v47, %v2560_v39  ;;  %v2689_v8 = vadd.f32 %v2657_v42, %v2561_v11  ;;  %v2690_v26 = vadd.f32 %v2658_v56, %v2562_v58  ;;  %v2602_v43 = vld [vmem:[#allocation6 + $0x60] sm:$0xff]  ;;  %v2603_v23 = vld [vmem:[#allocation6 + $0x68] sm:$0xff]  ;;  %v2604_v5 = vld [vmem:[#allocation6 + $0x70] sm:$0xff] }
 0x2ad   : > { %v2691_v44 = vadd.f32 %v2659_v35, %v2563_v37  ;;  %v2692_v12 = vadd.f32 %v2660_v10, %v2564_v34  ;;  %v2693_v13 = vadd.f32 %v2661_v21, %v2565_v2  ;;  %v2634_v55 = vld [vmem:[#allocation7 + $0x60] sm:$0xff]  ;;  %2718 = vst.msk [vmem:[%s3733_s17] sm:$0xff] %vm451_vm0, %v2686_v36  ;;  %v2663_v60 = vadd.f32 %v2631_v3, %v2599_v30  ;;  %v2635_v14 = vld [vmem:[#allocation7 + $0x68] sm:$0xff]  ;;  %v2605_v54 = vld [vmem:[#allocation6 + $0x78] sm:$0xff] }
 0x2ae   : > { %2719 = vst.msk [vmem:[%s3733_s17 + $0x8] sm:$0xff] %vm451_vm0, %v2687_v6  ;;  %2720 = vst.msk [vmem:[%s3733_s17 + $0x10] sm:$0xff] %vm451_vm0, %v2688_v19  ;;  %v2568_v62 = vmul.f32 %v5403_v29, %v3823_v24  ;;  %v2664_v63 = vadd.f32 %v2632_v51, %v2600_v4  ;;  %v2569_v15 = vmul.f32 %v5403_v29, %v3826_v25  ;;  %v2636_v24 = vld [vmem:[#allocation7 + $0x70] sm:$0xff]  ;;  %v2637_v38 = vld [vmem:[#allocation7 + $0x78] sm:$0xff] }
 0x2af   : > { %2721 = vst.msk [vmem:[%s3733_s17 + $0x18] sm:$0xff] %vm451_vm0, %v2689_v8  ;;  %2722 = vst.msk [vmem:[%s3733_s17 + $0x20] sm:$0xff] %vm451_vm0, %v2690_v26  ;;  %v2665_v18 = vadd.f32 %v2633_v9, %v2601_v52  ;;  %v2570_v61 = vmul.f32 %v5403_v29, %v3830_v27  ;;  %v2694_v20 = vadd.f32 %v2662_v40, %v2566_v57  ;;  %v2606_v16 = vld [vmem:[#allocation6 + $0x80] sm:$0xff]  ;;  %v2607_v53 = vld [vmem:[#allocation6 + $0x88] sm:$0xff] }
 0x2b0   : > { %2723 = vst.msk [vmem:[%s3733_s17 + $0x28] sm:$0xff] %vm451_vm0, %v2691_v44  ;;  %2724 = vst.msk [vmem:[%s3733_s17 + $0x30] sm:$0xff] %vm451_vm0, %v2692_v12  ;;  %v2695_v49 = vadd.f32 %v2663_v60, %v2567_v45  ;;  %v2666_v41 = vadd.f32 %v2634_v55, %v2602_v43  ;;  %v2571_v46 = vmul.f32 %v5403_v29, %v3833_v28  ;;  %v2638_v17 = vld [vmem:[#allocation7 + $0x80] sm:$0xff]  ;;  %v2639_v48 = vld [vmem:[#allocation7 + $0x88] sm:$0xff] }
 0x2b1   : > { %2725 = vst.msk [vmem:[%s3733_s17 + $0x38] sm:$0xff] %vm451_vm0, %v2693_v13  ;;  %v2696_v1 = vadd.f32 %v2664_v63, %v2568_v62  ;;  %v2697_v25 = vadd.f32 %v2665_v18, %v2569_v15  ;;  %v2667_v22 = vadd.f32 %v2635_v14, %v2603_v23  ;;  %v2572_v27 = vmul.f32 %v5403_v29, %v3852_v31  ;;  %v2608_v47 = vld [vmem:[#allocation6 + $0x90] sm:$0xff]  ;;  %v2609_v35 = vld [vmem:[#allocation6 + $0x98] sm:$0xff]  ;;  %v5652_v59 = vld [vmem:[#allocation8_spill] sm:$0xff] }
 0x2b2   : > { %2726 = vst.msk [vmem:[%s3733_s17 + $0x40] sm:$0xff] %vm451_vm0, %v2694_v20  ;;  %2727 = vst.msk [vmem:[%s3733_s17 + $0x48] sm:$0xff] %vm451_vm0, %v2695_v49  ;;  %v2698_v42 = vadd.f32 %v2666_v41, %v2570_v61  ;;  %v2668_v28 = vadd.f32 %v2636_v24, %v2604_v5  ;;  %v2573_v56 = vmul.f32 %v5403_v29, %v3855_v32  ;;  %v2640_v0 = vld [vmem:[#allocation7 + $0x90] sm:$0xff]  ;;  %v2641_v10 = vld [vmem:[#allocation7 + $0x98] sm:$0xff] }
 0x2b3   : > { %v2669_v7 = vadd.f32 %v2637_v38, %v2605_v54  ;;  %2728 = vst.msk [vmem:[%s3733_s17 + $0x50] sm:$0xff] %vm451_vm0, %v2696_v1  ;;  %2729 = vst.msk [vmem:[%s3733_s17 + $0x58] sm:$0xff] %vm451_vm0, %v2697_v25  ;;  %v2699_v31 = vadd.f32 %v2667_v22, %v2571_v46  ;;  %v2574_v21 = vmul.f32 %v5403_v29, %v3858_v33  ;;  %v2610_v39 = vld [vmem:[#allocation6 + $0xa0] sm:$0xff]  ;;  %v5653_v34 = vld [vmem:[#allocation9_spill] sm:$0xff] }
 0x2b4   : > { %v2670_v40 = vadd.f32 %v2638_v17, %v2606_v16  ;;  %v2575_v50 = vmul.f32 %v5403_v29, %v5652_v59  ;;  %v2642_v11 = vld [vmem:[#allocation7 + $0xa0] sm:$0xff]  ;;  %2730 = vst.msk [vmem:[%s3733_s17 + $0x60] sm:$0xff] %vm451_vm0, %v2698_v42  ;;  %v2700_v32 = vadd.f32 %v2668_v28, %v2572_v27  ;;  %v2671_v37 = vadd.f32 %v2639_v48, %v2607_v53  ;;  %v2611_v30 = vld [vmem:[#allocation6 + $0xa8] sm:$0xff]  ;;  %v2612_v4 = vld [vmem:[#allocation6 + $0xb0] sm:$0xff] }
 0x2b5   : > { %v2701_v58 = vadd.f32 %v2669_v7, %v2573_v56  ;;  %v2576_v2 = vmul.f32 %v5403_v29, %v5653_v34  ;;  %v2643_v3 = vld [vmem:[#allocation7 + $0xa8] sm:$0xff]  ;;  %2731 = vst.msk [vmem:[%s3733_s17 + $0x68] sm:$0xff] %vm451_vm0, %v2699_v31  ;;  %v2672_v36 = vadd.f32 %v2640_v0, %v2608_v47  ;;  %v5654_v6 = vld [vmem:[#allocation10_spill] sm:$0xff]  ;;  %v2673_v8 = vadd.f32 %v2641_v10, %v2609_v35  ;;  %v2613_v52 = vld [vmem:[#allocation6 + $0xb8] sm:$0xff] }
 0x2b6   : > { %v2702_v33 = vadd.f32 %v2670_v40, %v2574_v21  ;;  %v2577_v19 = vmul.f32 %v5403_v29, %v5654_v6  ;;  %v2644_v51 = vld [vmem:[#allocation7 + $0xb0] sm:$0xff]  ;;  %v2645_v9 = vld [vmem:[#allocation7 + $0xb8] sm:$0xff]  ;;  %2732 = vst.msk [vmem:[%s3733_s17 + $0x70] sm:$0xff] %vm451_vm0, %v2700_v32  ;;  %v2703_v26 = vadd.f32 %v2671_v37, %v2575_v50  ;;  %v2674_v13 = vadd.f32 %v2642_v11, %v2610_v39  ;;  %v5656_v43 = vld [vmem:[#allocation12_spill] sm:$0xff] }
 0x2b7   : > { %2733 = vst.msk [vmem:[%s3733_s17 + $0x78] sm:$0xff] %vm451_vm0, %v2701_v58  ;;  %v5655_v44 = vld [vmem:[#allocation11_spill] sm:$0xff]  ;;  %v2579_v55 = vmul.f32 %v5403_v29, %v5656_v43  ;;  %v2614_v57 = vld [vmem:[#allocation6 + $0xc0] sm:$0xff]  ;;  %v2704_v60 = vadd.f32 %v2672_v36, %v2576_v2  ;;  %v2675_v23 = vadd.f32 %v2643_v3, %v2611_v30  ;;  %v5657_v14 = vld [vmem:[#allocation13_spill] sm:$0xff]  ;;  %v2676_v24 = vadd.f32 %v2644_v51, %v2612_v4 }
 0x2b8   : > { %v2578_v12 = vmul.f32 %v5403_v29, %v5655_v44  ;;  %v2646_v45 = vld [vmem:[#allocation7 + $0xc0] sm:$0xff]  ;;  %2734 = vst.msk [vmem:[%s3733_s17 + $0x80] sm:$0xff] %vm451_vm0, %v2702_v33  ;;  %v2705_v62 = vadd.f32 %v2673_v8, %v2577_v19  ;;  %v2580_v5 = vmul.f32 %v5403_v29, %v5657_v14  ;;  %v2615_v63 = vld [vmem:[#allocation6 + $0xc8] sm:$0xff]  ;;  %v2616_v18 = vld [vmem:[#allocation6 + $0xd0] sm:$0xff]  ;;  %v2677_v20 = vadd.f32 %v2645_v9, %v2613_v52 }
 0x2b9   : > { %v2647_v15 = vld [vmem:[#allocation7 + $0xc8] sm:$0xff]  ;;  %2735 = vst.msk [vmem:[%s3733_s17 + $0x88] sm:$0xff] %vm451_vm0, %v2703_v26  ;;  %v5658_v54 = vld [vmem:[#allocation14_spill] sm:$0xff]  ;;  %v2617_v41 = vld [vmem:[#allocation6 + $0xd8] sm:$0xff]  ;;  %v2707_v16 = vadd.f32 %v2675_v23, %v2579_v55  ;;  %v2678_v25 = vadd.f32 %v2646_v45, %v2614_v57 }
 0x2ba   : > { %v2706_v61 = vadd.f32 %v2674_v13, %v2578_v12  ;;  %v2581_v38 = vmul.f32 %v5403_v29, %v5658_v54  ;;  %v2648_v49 = vld [vmem:[#allocation7 + $0xd0] sm:$0xff]  ;;  %v2649_v46 = vld [vmem:[#allocation7 + $0xd8] sm:$0xff]  ;;  %2736 = vst.msk [vmem:[%s3733_s17 + $0x90] sm:$0xff] %vm451_vm0, %v2704_v60  ;;  %2737 = vst.msk [vmem:[%s3733_s17 + $0x98] sm:$0xff] %vm451_vm0, %v2705_v62  ;;  %v2708_v47 = vadd.f32 %v2676_v24, %v2580_v5 }
 0x2bb   : > { %v5659_v17 = vld [vmem:[#allocation15_spill] sm:$0xff]  ;;  %v5660_v22 = vld [vmem:[#allocation16_spill] sm:$0xff]  ;;  %v2679_v28 = vadd.f32 %v2647_v15, %v2615_v63  ;;  %v5661_v56 = vld [vmem:[#allocation17_spill] sm:$0xff]  ;;  %2739 = vst.msk [vmem:[%s3733_s17 + $0xa8] sm:$0xff] %vm451_vm0, %v2707_v16  ;;  %v2680_v21 = vadd.f32 %v2648_v49, %v2616_v18  ;;  %v2681_v50 = vadd.f32 %v2649_v46, %v2617_v41 }
 0x2bc   : > { %v2582_v1 = vmul.f32 %v5403_v29, %v5659_v17  ;;  %v2583_v27 = vmul.f32 %v5403_v29, %v5660_v22  ;;  %v2618_v53 = vld [vmem:[#allocation6 + $0xe0] sm:$0xff]  ;;  %2738 = vst.msk [vmem:[%s3733_s17 + $0xa0] sm:$0xff] %vm451_vm0, %v2706_v61  ;;  %v2709_v42 = vadd.f32 %v2677_v20, %v2581_v38  ;;  %v2584_v7 = vmul.f32 %v5403_v29, %v5661_v56  ;;  %v2619_v0 = vld [vmem:[#allocation6 + $0xe8] sm:$0xff]  ;;  %v2620_v10 = vld [vmem:[#allocation6 + $0xf0] sm:$0xff] }
 0x2bd   : > { %v2650_v48 = vld [vmem:[#allocation7 + $0xe0] sm:$0xff]  ;;  %v2651_v35 = vld [vmem:[#allocation7 + $0xe8] sm:$0xff]  ;;  %v5662_v40 = vld [vmem:[#allocation18_spill] sm:$0xff]  ;;  %2740 = vst.msk [vmem:[%s3733_s17 + $0xb0] sm:$0xff] %vm451_vm0, %v2708_v47 }
 0x2be   : > { %v2710_v31 = vadd.f32 %v2678_v25, %v2582_v1  ;;  %v2585_v59 = vmul.f32 %v5403_v29, %v5662_v40  ;;  %v2652_v39 = vld [vmem:[#allocation7 + $0xf0] sm:$0xff]  ;;  %v2621_v11 = vld [vmem:[#allocation6 + $0xf8] sm:$0xff]  ;;  %2741 = vst.msk [vmem:[%s3733_s17 + $0xb8] sm:$0xff] %vm451_vm0, %v2709_v42  ;;  %v2711_v58 = vadd.f32 %v2679_v28, %v2583_v27  ;;  %v2682_v2 = vadd.f32 %v2650_v48, %v2618_v53  ;;  %v5664_v30 = vld [vmem:[#allocation20_spill] sm:$0xff] }
 0x2bf   : > { %v2653_v32 = vld [vmem:[#allocation7 + $0xf8] sm:$0xff]  ;;  %v2587_v3 = vmul.f32 %v5403_v29, %v5664_v30  ;;  %v2712_v4 = vadd.f32 %v2680_v21, %v2584_v7  ;;  %v2683_v36 = vadd.f32 %v2651_v35, %v2619_v0  ;;  %v5665_v6 = vld [vmem:[#allocation21_spill] sm:$0xff]  ;;  %v2684_v51 = vadd.f32 %v2652_v39, %v2620_v10  ;;  %v5666_v52 = vld [vmem:[#allocation22_spill] sm:$0xff] }
 0x2c0   : > { %v5663_v37 = vld [vmem:[#allocation19_spill] sm:$0xff]  ;;  %2742 = vst.msk [vmem:[%s3733_s17 + $0xc0] sm:$0xff] %vm451_vm0, %v2710_v31  ;;  %v2713_v33 = vadd.f32 %v2681_v50, %v2585_v59  ;;  %v2588_v19 = vmul.f32 %v5403_v29, %v5665_v6  ;;  %2743 = vst.msk [vmem:[%s3733_s17 + $0xc8] sm:$0xff] %vm451_vm0, %v2711_v58  ;;  %v2589_v9 = vmul.f32 %v5403_v29, %v5666_v52 }
 0x2c1   : > { %v2586_v34 = vmul.f32 %v5403_v29, %v5663_v37  ;;  %v2685_v26 = vadd.f32 %v2653_v32, %v2621_v11  ;;  %2744 = vst.msk [vmem:[%s3733_s17 + $0xd0] sm:$0xff] %vm451_vm0, %v2712_v4  ;;  %v2715_v44 = vadd.f32 %v2683_v36, %v2587_v3 }
 0x2c2   : > { %2745 = vst.msk [vmem:[%s3733_s17 + $0xd8] sm:$0xff] %vm451_vm0, %v2713_v33  ;;  %v2716_v12 = vadd.f32 %v2684_v51, %v2588_v19 }
 0x2c3   : > { %v2714_v8 = vadd.f32 %v2682_v2, %v2586_v34  ;;  %v2717_v13 = vadd.f32 %v2685_v26, %v2589_v9  ;;  %2747 = vst.msk [vmem:[%s3733_s17 + $0xe8] sm:$0xff] %vm451_vm0, %v2715_v44 }
 0x2c4   : > { %2748 = vst.msk [vmem:[%s3733_s17 + $0xf0] sm:$0xff] %vm451_vm0, %v2716_v12 }
 0x2c5   : > { %2746 = vst.msk [vmem:[%s3733_s17 + $0xe0] sm:$0xff] %vm451_vm0, %v2714_v8  ;;  %2749 = vst.msk [vmem:[%s3733_s17 + $0xf8] sm:$0xff] %vm451_vm0, %v2717_v13 }
 0x2c6 PF: > { %s16_s25 = sadd.s32 1, %s3636_s25   ;;  %s5667_s21 = smov %s3628_s23 }
 0x2c7   : > { %p13_p8 = scmp.ge.s32.totalorder %s16_s25, 6   ;;  %s5668_s22 = smov %s3632_s24 }
 0x2c8   : > { %s5669_s23 = smov %s5672_s26  ;;  %s5670_s24 = smov %s5676_s27 }
 0x2c9   :  { %15 = sbr.rel (!%p13_p8) target bundleno = 3 (0x3), region = 120 }

</bundles_post_ra>
